<compile_context>
chip_gen: v7x
topology: tpu7x:2x2x1
jax: 0.10.0
libtpu: 0.0.40
codegen_flags: <defaults>
</compile_context>

<pallas_src>
import jax
import jax.numpy as jnp
from jax import lax
from jax.experimental import pallas as pl
from jax.experimental.pallas import tpu as pltpu

_LANE = 128


def _round_up(x, m):
    return ((x + m - 1) // m) * m


def _conv3x3_bn_relu(pad_ref, w_ref, scale, shift, Hp, Wp):
    """3x3 'same' conv as 9 tap-accumulating MXU dots + fused BN + ReLU.

    pad_ref : (Hp+2, Wp+2, Cin_p) bf16 VMEM scratch (zero halo, interior filled)
    w_ref   : (9*Cin_p, Cout_p) bf16, HWIO flattened host-side in the same
              (ky, kx, cin) tap order used below.
    scale, shift : (1, Cout_p) f32 (conv bias already folded into shift).
    Returns (Hp*Wp, Cout_p) f32.
    """
    c = pad_ref.shape[-1]
    cout = w_ref.shape[1]
    # Single live f32 accumulator; per-tap bf16 window is transient.  Total MXU
    # work equals the old single im2col matmul (same 9*Cin_p weight rows).
    acc = jnp.zeros((Hp * Wp, cout), jnp.float32)
    for tap in range(9):
        ky, kx = tap // 3, tap % 3
        win = pad_ref[ky:ky + Hp, kx:kx + Wp, :].reshape(Hp * Wp, c)   # bf16
        acc = acc + jnp.dot(win, w_ref[tap * c:(tap + 1) * c, :],
                            preferred_element_type=jnp.float32)
    acc = acc * scale + shift          # BN (+ folded conv bias)
    return jnp.maximum(acc, 0.0)       # ReLU


def down_kernel(x_ref, w1_ref, s1_ref, t1_ref, w2_ref, s2_ref, t2_ref,
                o_ref, pad1_ref, pad2_ref):
    H = x_ref.shape[1]
    Wp = x_ref.shape[2]            # W/2 : column pairs pre-folded into lane dim
    cin = x_ref.shape[3] // 2      # padded Cin
    Hp = H // 2
    cmid = w1_ref.shape[1]
    cout = w2_ref.shape[1]

    # Zero only the top/bottom halo rows (full-width leading-dim slices ->
    # unmasked stores).  Left/right zero columns are folded into the interior
    # stores below.  Done every step: cheap, and safe under "parallel"
    # semantics where a core's scratch may never see program_id == 0.
    zrow1 = jnp.zeros((1, Wp + 2, cin), pad1_ref.dtype)
    pad1_ref[0:1, :, :] = zrow1
    pad1_ref[Hp + 1:Hp + 2, :, :] = zrow1
    zrow2 = jnp.zeros((1, Wp + 2, cmid), pad2_ref.dtype)
    pad2_ref[0:1, :, :] = zrow2
    pad2_ref[Hp + 1:Hp + 2, :, :] = zrow2

    # ---- MaxPool2d(kernel=2, stride=2), computed in bf16 ----
    # Even/odd columns are lane-aligned slices (wrapper folded column pairs into
    # the lane dim); row pairs come from a leading-dim split (layout-free).
    x = x_ref[0]                                          # (H, Wp, 2*Cin) bf16
    xcol = jnp.maximum(x[:, :, :cin], x[:, :, cin:])      # (H, Wp, Cin)
    xrow = xcol.reshape(Hp, 2, Wp, cin)
    pooled = jnp.maximum(xrow[:, 0], xrow[:, 1])          # (Hp, Wp, Cin) bf16
    zc1 = jnp.zeros((Hp, 1, cin), pad1_ref.dtype)
    pad1_ref[1:Hp + 1, :, :] = jnp.concatenate([zc1, pooled, zc1], axis=1)

    # ---- Conv1 + BN + ReLU : written straight into conv2's padded scratch ----
    h = _conv3x3_bn_relu(pad1_ref, w1_ref, s1_ref[...], t1_ref[...], Hp, Wp)
    h = h.reshape(Hp, Wp, cmid).astype(pad2_ref.dtype)    # single f32->bf16 cast
    zc2 = jnp.zeros((Hp, 1, cmid), pad2_ref.dtype)
    pad2_ref[1:Hp + 1, :, :] = jnp.concatenate([zc2, h, zc2], axis=1)

    # ---- Conv2 + BN + ReLU ----
    out = _conv3x3_bn_relu(pad2_ref, w2_ref, s2_ref[...], t2_ref[...], Hp, Wp)
    o_ref[0] = out.reshape(Hp, Wp, cout).astype(o_ref.dtype)   # bf16, lane-dense


def down_forward(x_nchw, kparams):
    """x_nchw: (N, Cin, H, W) float32 -> (N, Cout, H/2, W/2) float32."""
    w1, s1, t1 = kparams["w1"], kparams["s1"], kparams["t1"]
    w2, s2, t2 = kparams["w2"], kparams["s2"], kparams["t2"]
    cin, cout = kparams["in_channels"], kparams["out_channels"]

    N, Cin, H, W = x_nchw.shape
    assert Cin == cin and H % 2 == 0 and W % 2 == 0
    Hp, Wp = H // 2, W // 2
    cin_p = w1.shape[0] // 9
    cmid_p = w1.shape[1]
    cout_p = w2.shape[1]

    # Layout glue: NCHW -> NHWC, cast to bf16 (halves input DMA; max-pool is
    # invariant under monotone rounding and conv operands are bf16 anyway),
    # lane-pad channels, fold column pairs into lanes.
    x = jnp.transpose(x_nchw, (0, 2, 3, 1)).astype(jnp.bfloat16)
    x = jnp.pad(x, ((0, 0), (0, 0), (0, 0), (0, cin_p - Cin)))
    x = x.reshape(N, H, Wp, 2 * cin_p)

    # VMEM budget derived from the actual footprint (double-buffered in/out
    # blocks + resident weights + scratches), with headroom; clamped so it is
    # valid on every generation (v7x physical VMEM = 64 MiB).
    in_blk = H * Wp * (2 * cin_p) * 2                        # bf16 input block
    out_blk = Hp * Wp * cout_p * 2                           # bf16 output block
    w_blk = (9 * cin_p * cmid_p + 9 * cmid_p * cout_p) * 2   # bf16 weights
    sc_blk = (Hp + 2) * (Wp + 2) * (cin_p + cmid_p) * 2      # bf16 scratches
    vmem_bytes = 2 * (in_blk + out_blk) + w_blk + sc_blk
    vmem_limit = int(min(max(2 * vmem_bytes, 32 << 20), 56 << 20))

    out_nhwc = pl.pallas_call(
        down_kernel,
        out_shape=jax.ShapeDtypeStruct((N, Hp, Wp, cout_p), jnp.bfloat16),
        grid_spec=pltpu.PrefetchScalarGridSpec(
            num_scalar_prefetch=0,
            grid=(N,),
            in_specs=[
                pl.BlockSpec((1, H, Wp, 2 * cin_p), lambda n: (n, 0, 0, 0)),
                # Constant index_maps: weight / scale / shift blocks stay
                # resident in VMEM, no per-step re-DMA.
                pl.BlockSpec((9 * cin_p, cmid_p), lambda n: (0, 0)),
                pl.BlockSpec((1, cmid_p), lambda n: (0, 0)),
                pl.BlockSpec((1, cmid_p), lambda n: (0, 0)),
                pl.BlockSpec((9 * cmid_p, cout_p), lambda n: (0, 0)),
                pl.BlockSpec((1, cout_p), lambda n: (0, 0)),
                pl.BlockSpec((1, cout_p), lambda n: (0, 0)),
            ],
            out_specs=pl.BlockSpec((1, Hp, Wp, cout_p), lambda n: (n, 0, 0, 0)),
            scratch_shapes=[
                pltpu.VMEM((Hp + 2, Wp + 2, cin_p), jnp.bfloat16),
                pltpu.VMEM((Hp + 2, Wp + 2, cmid_p), jnp.bfloat16),
            ],
        ),
        compiler_params=pltpu.CompilerParams(
            dimension_semantics=("parallel",),      # shard batch across TCs (v7x)
            vmem_limit_bytes=vmem_limit,
        ),
    )(x, w1, s1, t1, w2, s2, t2)

    out = out_nhwc[..., :cout].astype(jnp.float32)  # drop lane padding, back to f32
    return jnp.transpose(out, (0, 3, 1, 2))         # NHWC -> NCHW


def _prep_conv(w_oihw, bias, scale, shift):
    """Host-side param prep: fold bias into BN shift, pad channels to lane
    multiples, flatten HWIO weights to im2col form (9*Cin_p, Cout_p) in bf16."""
    cout, cin = w_oihw.shape[0], w_oihw.shape[1]
    cin_p = _round_up(cin, _LANE)
    cout_p = _round_up(cout, _LANE)
    shift = shift + bias * scale                       # fold conv bias
    w = jnp.transpose(w_oihw, (2, 3, 1, 0))            # OIHW -> HWIO
    w = jnp.pad(w, ((0, 0), (0, 0), (0, cin_p - cin), (0, cout_p - cout)))
    w = w.reshape(9 * cin_p, cout_p).astype(jnp.bfloat16)
    s = jnp.pad(scale, (0, cout_p - cout))[None, :].astype(jnp.float32)
    t = jnp.pad(shift, (0, cout_p - cout))[None, :].astype(jnp.float32)
    return w, s, t


def init_params(key, in_channels, out_channels):
    """Deterministic synthetic parameters (shapes match the PyTorch module)."""
    mid = out_channels
    eps = 1e-5
    ks = jax.random.split(key, 12)

    w1_oihw = 0.1 * jax.random.normal(ks[0], (mid, in_channels, 3, 3), jnp.float32)
    b1 = 0.1 * jax.random.normal(ks[1], (mid,), jnp.float32)
    w2_oihw = 0.1 * jax.random.normal(ks[2], (out_channels, mid, 3, 3), jnp.float32)
    b2 = 0.1 * jax.random.normal(ks[3], (out_channels,), jnp.float32)

    g1 = 1.0 + 0.1 * jax.random.normal(ks[4], (mid,), jnp.float32)
    beta1 = 0.1 * jax.random.normal(ks[5], (mid,), jnp.float32)
    m1 = 0.1 * jax.random.normal(ks[6], (mid,), jnp.float32)
    v1 = 0.5 + jax.random.uniform(ks[7], (mid,), jnp.float32)
    g2 = 1.0 + 0.1 * jax.random.normal(ks[8], (out_channels,), jnp.float32)
    beta2 = 0.1 * jax.random.normal(ks[9], (out_channels,), jnp.float32)
    m2 = 0.1 * jax.random.normal(ks[10], (out_channels,), jnp.float32)
    v2 = 0.5 + jax.random.uniform(ks[11], (out_channels,), jnp.float32)

    scale1 = g1 / jnp.sqrt(v1 + eps)
    shift1 = beta1 - m1 * scale1
    scale2 = g2 / jnp.sqrt(v2 + eps)
    shift2 = beta2 - m2 * scale2

    w1k, s1k, t1k = _prep_conv(w1_oihw, b1, scale1, shift1)
    w2k, s2k, t2k = _prep_conv(w2_oihw, b2, scale2, shift2)
    kparams = {
        "w1": w1k, "s1": s1k, "t1": t1k,
        "w2": w2k, "s2": s2k, "t2": t2k,
        "in_channels": in_channels, "out_channels": out_channels,
    }
    torch_like = (w1_oihw, b1, scale1, shift1, w2_oihw, b2, scale2, shift2)
    return kparams, torch_like


def reference_forward(x, w1_oihw, b1, s1, t1, w2_oihw, b2, s2, t2):
    """Pure-JAX reference matching the PyTorch forward (eval-mode BN)."""
    dn = ("NCHW", "OIHW", "NCHW")
    y = lax.reduce_window(x, -jnp.inf, lax.max, (1, 1, 2, 2), (1, 1, 2, 2), "VALID")
    y = lax.conv_general_dilated(y, w1_oihw, (1, 1), "SAME", dimension_numbers=dn,
                                 precision=lax.Precision.HIGHEST)
    y = y + b1[None, :, None, None]
    y = jnp.maximum(y * s1[None, :, None, None] + t1[None, :, None, None], 0.0)
    y = lax.conv_general_dilated(y, w2_oihw, (1, 1), "SAME", dimension_numbers=dn,
                                 precision=lax.Precision.HIGHEST)
    y = y + b2[None, :, None, None]
    y = jnp.maximum(y * s2[None, :, None, None] + t2[None, :, None, None], 0.0)
    return y


if __name__ == "__main__":
    key = jax.random.PRNGKey(0)
    k_x, k_p = jax.random.split(key)

    N, Cin, H, W = 2, 4, 16, 16
    Cout = 8

    x = jax.random.normal(k_x, (N, Cin, H, W), jnp.float32)
    kparams, torch_like = init_params(k_p, Cin, Cout)

    out = jax.block_until_ready(down_forward(x, kparams))
    ref = jax.block_until_ready(reference_forward(x, *torch_like))

    assert out.shape == (N, Cout, H // 2, W // 2), out.shape
    assert bool(jnp.all(jnp.isfinite(out)))
    max_err = float(jnp.max(jnp.abs(out - ref)))
    # bf16 input/operands/output (f32 accumulation) vs. a full-f32 reference:
    # deliberate accuracy tradeoff, not bitwise-comparable to PyTorch f32.
    assert jnp.allclose(out, ref, atol=3e-2, rtol=3e-2), max_err

    print("KERNEL_OK")
</pallas_src>

<mosaic_0001>
module attributes {stable_mosaic.version = 11 : i64} {
  func.func @down_kernel(%arg0: i32, %arg1: memref<1x16x8x256xbf16, #tpu.memory_space<vmem>>, %arg2: memref<1152x128xbf16, #tpu.memory_space<vmem>>, %arg3: memref<1x128xf32, #tpu.memory_space<vmem>>, %arg4: memref<1x128xf32, #tpu.memory_space<vmem>>, %arg5: memref<1152x128xbf16, #tpu.memory_space<vmem>>, %arg6: memref<1x128xf32, #tpu.memory_space<vmem>>, %arg7: memref<1x128xf32, #tpu.memory_space<vmem>>, %arg8: memref<1x8x8x128xbf16, #tpu.memory_space<vmem>>, %arg9: memref<10x10x128xbf16, #tpu.memory_space<vmem>>, %arg10: memref<10x10x128xbf16, #tpu.memory_space<vmem>>) attributes {dimension_semantics = [#tpu.dimension_semantics<parallel>], iteration_bounds = array<i64: 2>, scalar_prefetch = 0 : i64, scratch_operands = 2 : i64, tpu.core_type = #tpu.core_type<tc>, window_params = [{transform_indices = @transform_0, window_bounds = array<i64: 1, 16, 8, 256>}, {pipeline_mode = #tpu.pipeline_mode<synchronous>, transform_indices = @transform_1, window_bounds = array<i64: 1152, 128>}, {pipeline_mode = #tpu.pipeline_mode<synchronous>, transform_indices = @transform_2, window_bounds = array<i64: 1, 128>}, {pipeline_mode = #tpu.pipeline_mode<synchronous>, transform_indices = @transform_3, window_bounds = array<i64: 1, 128>}, {pipeline_mode = #tpu.pipeline_mode<synchronous>, transform_indices = @transform_4, window_bounds = array<i64: 1152, 128>}, {pipeline_mode = #tpu.pipeline_mode<synchronous>, transform_indices = @transform_5, window_bounds = array<i64: 1, 128>}, {pipeline_mode = #tpu.pipeline_mode<synchronous>, transform_indices = @transform_6, window_bounds = array<i64: 1, 128>}, {transform_indices = @transform_7, window_bounds = array<i64: 1, 8, 8, 128>}]} {
    %cst = arith.constant 0.000000e+00 : bf16
    %0 = vector.broadcast %cst : bf16 to vector<1x10x128xbf16>
    %c0 = arith.constant 0 : index
    %c0_0 = arith.constant 0 : index
    %c0_1 = arith.constant 0 : index
    %1 = vector.load %arg9[%c0, %c0_0, %c0_1] : memref<10x10x128xbf16, #tpu.memory_space<vmem>>, vector<1x10x128xbf16>
    tpu.vector_store %arg9[%c0, %c0_0, %c0_1], %0 {strides = array<i32>} : memref<10x10x128xbf16, #tpu.memory_space<vmem>>, vector<1x10x128xbf16>,
    %c9 = arith.constant 9 : index
    %c0_2 = arith.constant 0 : index
    %c0_3 = arith.constant 0 : index
    %2 = vector.load %arg9[%c9, %c0_2, %c0_3] : memref<10x10x128xbf16, #tpu.memory_space<vmem>>, vector<1x10x128xbf16>
    tpu.vector_store %arg9[%c9, %c0_2, %c0_3], %0 {strides = array<i32>} : memref<10x10x128xbf16, #tpu.memory_space<vmem>>, vector<1x10x128xbf16>,
    %cst_4 = arith.constant 0.000000e+00 : bf16
    %3 = vector.broadcast %cst_4 : bf16 to vector<1x10x128xbf16>
    %c0_5 = arith.constant 0 : index
    %c0_6 = arith.constant 0 : index
    %c0_7 = arith.constant 0 : index
    %4 = vector.load %arg10[%c0_5, %c0_6, %c0_7] : memref<10x10x128xbf16, #tpu.memory_space<vmem>>, vector<1x10x128xbf16>
    tpu.vector_store %arg10[%c0_5, %c0_6, %c0_7], %3 {strides = array<i32>} : memref<10x10x128xbf16, #tpu.memory_space<vmem>>, vector<1x10x128xbf16>,
    %c9_8 = arith.constant 9 : index
    %c0_9 = arith.constant 0 : index
    %c0_10 = arith.constant 0 : index
    %5 = vector.load %arg10[%c9_8, %c0_9, %c0_10] : memref<10x10x128xbf16, #tpu.memory_space<vmem>>, vector<1x10x128xbf16>
    tpu.vector_store %arg10[%c9_8, %c0_9, %c0_10], %3 {strides = array<i32>} : memref<10x10x128xbf16, #tpu.memory_space<vmem>>, vector<1x10x128xbf16>,
    %c0_11 = arith.constant 0 : index
    %c0_12 = arith.constant 0 : index
    %c0_13 = arith.constant 0 : index
    %c0_14 = arith.constant 0 : index
    %6 = vector.load %arg1[%c0_11, %c0_12, %c0_13, %c0_14] : memref<1x16x8x256xbf16, #tpu.memory_space<vmem>>, vector<1x16x8x256xbf16>
    %7 = vector.shape_cast %6 : vector<1x16x8x256xbf16> to vector<16x8x256xbf16>
    %8 = vector.extract_strided_slice %7 {offsets = [0, 0, 0], sizes = [16, 8, 128], strides = [1, 1, 1]} : vector<16x8x256xbf16> to vector<16x8x128xbf16>
    %9 = vector.extract_strided_slice %7 {offsets = [0, 0, 128], sizes = [16, 8, 128], strides = [1, 1, 1]} : vector<16x8x256xbf16> to vector<16x8x128xbf16>
    %10 = arith.maximumf %8, %9 : vector<16x8x128xbf16>
    %11 = vector.shape_cast %10 : vector<16x8x128xbf16> to vector<8x2x8x128xbf16>
    %12 = vector.extract_strided_slice %11 {offsets = [0, 0, 0, 0], sizes = [8, 1, 8, 128], strides = [1, 1, 1, 1]} : vector<8x2x8x128xbf16> to vector<8x1x8x128xbf16>
    %13 = vector.shape_cast %12 : vector<8x1x8x128xbf16> to vector<8x8x128xbf16>
    %14 = vector.extract_strided_slice %11 {offsets = [0, 1, 0, 0], sizes = [8, 1, 8, 128], strides = [1, 1, 1, 1]} : vector<8x2x8x128xbf16> to vector<8x1x8x128xbf16>
    %15 = vector.shape_cast %14 : vector<8x1x8x128xbf16> to vector<8x8x128xbf16>
    %16 = arith.maximumf %13, %15 : vector<8x8x128xbf16>
    %cst_15 = arith.constant 0.000000e+00 : bf16
    %17 = vector.broadcast %cst_15 : bf16 to vector<8x1x128xbf16>
    %18 = tpu.concatenate %17, %16, %17 in 1 : vector<8x1x128xbf16>, vector<8x8x128xbf16>, vector<8x1x128xbf16> -> vector<8x10x128xbf16>
    %c1 = arith.constant 1 : index
    %c0_16 = arith.constant 0 : index
    %c0_17 = arith.constant 0 : index
    %19 = vector.load %arg9[%c1, %c0_16, %c0_17] : memref<10x10x128xbf16, #tpu.memory_space<vmem>>, vector<8x10x128xbf16>
    tpu.vector_store %arg9[%c1, %c0_16, %c0_17], %18 {strides = array<i32>} : memref<10x10x128xbf16, #tpu.memory_space<vmem>>, vector<8x10x128xbf16>,
    %c0_18 = arith.constant 0 : index
    %c0_19 = arith.constant 0 : index
    %20 = vector.load %arg3[%c0_18, %c0_19] : memref<1x128xf32, #tpu.memory_space<vmem>>, vector<1x128xf32>
    %c0_20 = arith.constant 0 : index
    %c0_21 = arith.constant 0 : index
    %21 = vector.load %arg4[%c0_20, %c0_21] : memref<1x128xf32, #tpu.memory_space<vmem>>, vector<1x128xf32>
    %cst_22 = arith.constant 0.000000e+00 : f32
    %22 = vector.broadcast %cst_22 : f32 to vector<64x128xf32>
    %c0_23 = arith.constant 0 : index
    %c0_24 = arith.constant 0 : index
    %c0_25 = arith.constant 0 : index
    %23 = vector.load %arg9[%c0_23, %c0_24, %c0_25] : memref<10x10x128xbf16, #tpu.memory_space<vmem>>, vector<8x8x128xbf16>
    %24 = vector.shape_cast %23 : vector<8x8x128xbf16> to vector<64x128xbf16>
    %c0_26 = arith.constant 0 : index
    %c0_27 = arith.constant 0 : index
    %25 = vector.load %arg2[%c0_26, %c0_27] : memref<1152x128xbf16, #tpu.memory_space<vmem>>, vector<128x128xbf16>
    %cst_28 = arith.constant dense<0.000000e+00> : vector<64x128xf32>
    %26 = tpu.matmul %24, %25, %cst_28 {dimension_numbers = #tpu.dot_dimension_numbers<[1], [0], [0], [1], [0, 0, 1, 1], [], []>} : vector<64x128xbf16>, vector<128x128xbf16>, vector<64x128xf32> -> vector<64x128xf32>
    %27 = arith.addf %22, %26 : vector<64x128xf32>
    %c0_29 = arith.constant 0 : index
    %c1_30 = arith.constant 1 : index
    %c0_31 = arith.constant 0 : index
    %28 = vector.load %arg9[%c0_29, %c1_30, %c0_31] : memref<10x10x128xbf16, #tpu.memory_space<vmem>>, vector<8x8x128xbf16>
    %29 = vector.shape_cast %28 : vector<8x8x128xbf16> to vector<64x128xbf16>
    %c128 = arith.constant 128 : index
    %c0_32 = arith.constant 0 : index
    %30 = vector.load %arg2[%c128, %c0_32] : memref<1152x128xbf16, #tpu.memory_space<vmem>>, vector<128x128xbf16>
    %cst_33 = arith.constant dense<0.000000e+00> : vector<64x128xf32>
    %31 = tpu.matmul %29, %30, %cst_33 {dimension_numbers = #tpu.dot_dimension_numbers<[1], [0], [0], [1], [0, 0, 1, 1], [], []>} : vector<64x128xbf16>, vector<128x128xbf16>, vector<64x128xf32> -> vector<64x128xf32>
    %32 = arith.addf %27, %31 : vector<64x128xf32>
    %c0_34 = arith.constant 0 : index
    %c2 = arith.constant 2 : index
    %c0_35 = arith.constant 0 : index
    %33 = vector.load %arg9[%c0_34, %c2, %c0_35] : memref<10x10x128xbf16, #tpu.memory_space<vmem>>, vector<8x8x128xbf16>
    %34 = vector.shape_cast %33 : vector<8x8x128xbf16> to vector<64x128xbf16>
    %c256 = arith.constant 256 : index
    %c0_36 = arith.constant 0 : index
    %35 = vector.load %arg2[%c256, %c0_36] : memref<1152x128xbf16, #tpu.memory_space<vmem>>, vector<128x128xbf16>
    %cst_37 = arith.constant dense<0.000000e+00> : vector<64x128xf32>
    %36 = tpu.matmul %34, %35, %cst_37 {dimension_numbers = #tpu.dot_dimension_numbers<[1], [0], [0], [1], [0, 0, 1, 1], [], []>} : vector<64x128xbf16>, vector<128x128xbf16>, vector<64x128xf32> -> vector<64x128xf32>
    %37 = arith.addf %32, %36 : vector<64x128xf32>
    %c1_38 = arith.constant 1 : index
    %c0_39 = arith.constant 0 : index
    %c0_40 = arith.constant 0 : index
    %38 = vector.load %arg9[%c1_38, %c0_39, %c0_40] : memref<10x10x128xbf16, #tpu.memory_space<vmem>>, vector<8x8x128xbf16>
    %39 = vector.shape_cast %38 : vector<8x8x128xbf16> to vector<64x128xbf16>
    %c384 = arith.constant 384 : index
    %c0_41 = arith.constant 0 : index
    %40 = vector.load %arg2[%c384, %c0_41] : memref<1152x128xbf16, #tpu.memory_space<vmem>>, vector<128x128xbf16>
    %cst_42 = arith.constant dense<0.000000e+00> : vector<64x128xf32>
    %41 = tpu.matmul %39, %40, %cst_42 {dimension_numbers = #tpu.dot_dimension_numbers<[1], [0], [0], [1], [0, 0, 1, 1], [], []>} : vector<64x128xbf16>, vector<128x128xbf16>, vector<64x128xf32> -> vector<64x128xf32>
    %42 = arith.addf %37, %41 : vector<64x128xf32>
    %c1_43 = arith.constant 1 : index
    %c1_44 = arith.constant 1 : index
    %c0_45 = arith.constant 0 : index
    %43 = vector.load %arg9[%c1_43, %c1_44, %c0_45] : memref<10x10x128xbf16, #tpu.memory_space<vmem>>, vector<8x8x128xbf16>
    %44 = vector.shape_cast %43 : vector<8x8x128xbf16> to vector<64x128xbf16>
    %c512 = arith.constant 512 : index
    %c0_46 = arith.constant 0 : index
    %45 = vector.load %arg2[%c512, %c0_46] : memref<1152x128xbf16, #tpu.memory_space<vmem>>, vector<128x128xbf16>
    %cst_47 = arith.constant dense<0.000000e+00> : vector<64x128xf32>
    %46 = tpu.matmul %44, %45, %cst_47 {dimension_numbers = #tpu.dot_dimension_numbers<[1], [0], [0], [1], [0, 0, 1, 1], [], []>} : vector<64x128xbf16>, vector<128x128xbf16>, vector<64x128xf32> -> vector<64x128xf32>
    %47 = arith.addf %42, %46 : vector<64x128xf32>
    %c1_48 = arith.constant 1 : index
    %c2_49 = arith.constant 2 : index
    %c0_50 = arith.constant 0 : index
    %48 = vector.load %arg9[%c1_48, %c2_49, %c0_50] : memref<10x10x128xbf16, #tpu.memory_space<vmem>>, vector<8x8x128xbf16>
    %49 = vector.shape_cast %48 : vector<8x8x128xbf16> to vector<64x128xbf16>
    %c640 = arith.constant 640 : index
    %c0_51 = arith.constant 0 : index
    %50 = vector.load %arg2[%c640, %c0_51] : memref<1152x128xbf16, #tpu.memory_space<vmem>>, vector<128x128xbf16>
    %cst_52 = arith.constant dense<0.000000e+00> : vector<64x128xf32>
    %51 = tpu.matmul %49, %50, %cst_52 {dimension_numbers = #tpu.dot_dimension_numbers<[1], [0], [0], [1], [0, 0, 1, 1], [], []>} : vector<64x128xbf16>, vector<128x128xbf16>, vector<64x128xf32> -> vector<64x128xf32>
    %52 = arith.addf %47, %51 : vector<64x128xf32>
    %c2_53 = arith.constant 2 : index
    %c0_54 = arith.constant 0 : index
    %c0_55 = arith.constant 0 : index
    %53 = vector.load %arg9[%c2_53, %c0_54, %c0_55] : memref<10x10x128xbf16, #tpu.memory_space<vmem>>, vector<8x8x128xbf16>
    %54 = vector.shape_cast %53 : vector<8x8x128xbf16> to vector<64x128xbf16>
    %c768 = arith.constant 768 : index
    %c0_56 = arith.constant 0 : index
    %55 = vector.load %arg2[%c768, %c0_56] : memref<1152x128xbf16, #tpu.memory_space<vmem>>, vector<128x128xbf16>
    %cst_57 = arith.constant dense<0.000000e+00> : vector<64x128xf32>
    %56 = tpu.matmul %54, %55, %cst_57 {dimension_numbers = #tpu.dot_dimension_numbers<[1], [0], [0], [1], [0, 0, 1, 1], [], []>} : vector<64x128xbf16>, vector<128x128xbf16>, vector<64x128xf32> -> vector<64x128xf32>
    %57 = arith.addf %52, %56 : vector<64x128xf32>
    %c2_58 = arith.constant 2 : index
    %c1_59 = arith.constant 1 : index
    %c0_60 = arith.constant 0 : index
    %58 = vector.load %arg9[%c2_58, %c1_59, %c0_60] : memref<10x10x128xbf16, #tpu.memory_space<vmem>>, vector<8x8x128xbf16>
    %59 = vector.shape_cast %58 : vector<8x8x128xbf16> to vector<64x128xbf16>
    %c896 = arith.constant 896 : index
    %c0_61 = arith.constant 0 : index
    %60 = vector.load %arg2[%c896, %c0_61] : memref<1152x128xbf16, #tpu.memory_space<vmem>>, vector<128x128xbf16>
    %cst_62 = arith.constant dense<0.000000e+00> : vector<64x128xf32>
    %61 = tpu.matmul %59, %60, %cst_62 {dimension_numbers = #tpu.dot_dimension_numbers<[1], [0], [0], [1], [0, 0, 1, 1], [], []>} : vector<64x128xbf16>, vector<128x128xbf16>, vector<64x128xf32> -> vector<64x128xf32>
    %62 = arith.addf %57, %61 : vector<64x128xf32>
    %c2_63 = arith.constant 2 : index
    %c2_64 = arith.constant 2 : index
    %c0_65 = arith.constant 0 : index
    %63 = vector.load %arg9[%c2_63, %c2_64, %c0_65] : memref<10x10x128xbf16, #tpu.memory_space<vmem>>, vector<8x8x128xbf16>
    %64 = vector.shape_cast %63 : vector<8x8x128xbf16> to vector<64x128xbf16>
    %c1024 = arith.constant 1024 : index
    %c0_66 = arith.constant 0 : index
    %65 = vector.load %arg2[%c1024, %c0_66] : memref<1152x128xbf16, #tpu.memory_space<vmem>>, vector<128x128xbf16>
    %cst_67 = arith.constant dense<0.000000e+00> : vector<64x128xf32>
    %66 = tpu.matmul %64, %65, %cst_67 {dimension_numbers = #tpu.dot_dimension_numbers<[1], [0], [0], [1], [0, 0, 1, 1], [], []>} : vector<64x128xbf16>, vector<128x128xbf16>, vector<64x128xf32> -> vector<64x128xf32>
    %67 = arith.addf %62, %66 : vector<64x128xf32>
    %68 = vector.broadcast %20 : vector<1x128xf32> to vector<64x128xf32>
    %69 = arith.mulf %67, %68 : vector<64x128xf32>
    %70 = vector.broadcast %21 : vector<1x128xf32> to vector<64x128xf32>
    %71 = arith.addf %69, %70 : vector<64x128xf32>
    %cst_68 = arith.constant 0.000000e+00 : f32
    %72 = vector.broadcast %cst_68 : f32 to vector<64x128xf32>
    %73 = arith.maximumf %71, %72 : vector<64x128xf32>
    %74 = vector.shape_cast %73 : vector<64x128xf32> to vector<8x8x128xf32>
    %75 = arith.truncf %74 : vector<8x8x128xf32> to vector<8x8x128xbf16>
    %cst_69 = arith.constant 0.000000e+00 : bf16
    %76 = vector.broadcast %cst_69 : bf16 to vector<8x1x128xbf16>
    %77 = tpu.concatenate %76, %75, %76 in 1 : vector<8x1x128xbf16>, vector<8x8x128xbf16>, vector<8x1x128xbf16> -> vector<8x10x128xbf16>
    %c1_70 = arith.constant 1 : index
    %c0_71 = arith.constant 0 : index
    %c0_72 = arith.constant 0 : index
    %78 = vector.load %arg10[%c1_70, %c0_71, %c0_72] : memref<10x10x128xbf16, #tpu.memory_space<vmem>>, vector<8x10x128xbf16>
    tpu.vector_store %arg10[%c1_70, %c0_71, %c0_72], %77 {strides = array<i32>} : memref<10x10x128xbf16, #tpu.memory_space<vmem>>, vector<8x10x128xbf16>,
    %c0_73 = arith.constant 0 : index
    %c0_74 = arith.constant 0 : index
    %79 = vector.load %arg6[%c0_73, %c0_74] : memref<1x128xf32, #tpu.memory_space<vmem>>, vector<1x128xf32>
    %c0_75 = arith.constant 0 : index
    %c0_76 = arith.constant 0 : index
    %80 = vector.load %arg7[%c0_75, %c0_76] : memref<1x128xf32, #tpu.memory_space<vmem>>, vector<1x128xf32>
    %cst_77 = arith.constant 0.000000e+00 : f32
    %81 = vector.broadcast %cst_77 : f32 to vector<64x128xf32>
    %c0_78 = arith.constant 0 : index
    %c0_79 = arith.constant 0 : index
    %c0_80 = arith.constant 0 : index
    %82 = vector.load %arg10[%c0_78, %c0_79, %c0_80] : memref<10x10x128xbf16, #tpu.memory_space<vmem>>, vector<8x8x128xbf16>
    %83 = vector.shape_cast %82 : vector<8x8x128xbf16> to vector<64x128xbf16>
    %c0_81 = arith.constant 0 : index
    %c0_82 = arith.constant 0 : index
    %84 = vector.load %arg5[%c0_81, %c0_82] : memref<1152x128xbf16, #tpu.memory_space<vmem>>, vector<128x128xbf16>
    %cst_83 = arith.constant dense<0.000000e+00> : vector<64x128xf32>
    %85 = tpu.matmul %83, %84, %cst_83 {dimension_numbers = #tpu.dot_dimension_numbers<[1], [0], [0], [1], [0, 0, 1, 1], [], []>} : vector<64x128xbf16>, vector<128x128xbf16>, vector<64x128xf32> -> vector<64x128xf32>
    %86 = arith.addf %81, %85 : vector<64x128xf32>
    %c0_84 = arith.constant 0 : index
    %c1_85 = arith.constant 1 : index
    %c0_86 = arith.constant 0 : index
    %87 = vector.load %arg10[%c0_84, %c1_85, %c0_86] : memref<10x10x128xbf16, #tpu.memory_space<vmem>>, vector<8x8x128xbf16>
    %88 = vector.shape_cast %87 : vector<8x8x128xbf16> to vector<64x128xbf16>
    %c128_87 = arith.constant 128 : index
    %c0_88 = arith.constant 0 : index
    %89 = vector.load %arg5[%c128_87, %c0_88] : memref<1152x128xbf16, #tpu.memory_space<vmem>>, vector<128x128xbf16>
    %cst_89 = arith.constant dense<0.000000e+00> : vector<64x128xf32>
    %90 = tpu.matmul %88, %89, %cst_89 {dimension_numbers = #tpu.dot_dimension_numbers<[1], [0], [0], [1], [0, 0, 1, 1], [], []>} : vector<64x128xbf16>, vector<128x128xbf16>, vector<64x128xf32> -> vector<64x128xf32>
    %91 = arith.addf %86, %90 : vector<64x128xf32>
    %c0_90 = arith.constant 0 : index
    %c2_91 = arith.constant 2 : index
    %c0_92 = arith.constant 0 : index
    %92 = vector.load %arg10[%c0_90, %c2_91, %c0_92] : memref<10x10x128xbf16, #tpu.memory_space<vmem>>, vector<8x8x128xbf16>
    %93 = vector.shape_cast %92 : vector<8x8x128xbf16> to vector<64x128xbf16>
    %c256_93 = arith.constant 256 : index
    %c0_94 = arith.constant 0 : index
    %94 = vector.load %arg5[%c256_93, %c0_94] : memref<1152x128xbf16, #tpu.memory_space<vmem>>, vector<128x128xbf16>
    %cst_95 = arith.constant dense<0.000000e+00> : vector<64x128xf32>
    %95 = tpu.matmul %93, %94, %cst_95 {dimension_numbers = #tpu.dot_dimension_numbers<[1], [0], [0], [1], [0, 0, 1, 1], [], []>} : vector<64x128xbf16>, vector<128x128xbf16>, vector<64x128xf32> -> vector<64x128xf32>
    %96 = arith.addf %91, %95 : vector<64x128xf32>
    %c1_96 = arith.constant 1 : index
    %c0_97 = arith.constant 0 : index
    %c0_98 = arith.constant 0 : index
    %97 = vector.load %arg10[%c1_96, %c0_97, %c0_98] : memref<10x10x128xbf16, #tpu.memory_space<vmem>>, vector<8x8x128xbf16>
    %98 = vector.shape_cast %97 : vector<8x8x128xbf16> to vector<64x128xbf16>
    %c384_99 = arith.constant 384 : index
    %c0_100 = arith.constant 0 : index
    %99 = vector.load %arg5[%c384_99, %c0_100] : memref<1152x128xbf16, #tpu.memory_space<vmem>>, vector<128x128xbf16>
    %cst_101 = arith.constant dense<0.000000e+00> : vector<64x128xf32>
    %100 = tpu.matmul %98, %99, %cst_101 {dimension_numbers = #tpu.dot_dimension_numbers<[1], [0], [0], [1], [0, 0, 1, 1], [], []>} : vector<64x128xbf16>, vector<128x128xbf16>, vector<64x128xf32> -> vector<64x128xf32>
    %101 = arith.addf %96, %100 : vector<64x128xf32>
    %c1_102 = arith.constant 1 : index
    %c1_103 = arith.constant 1 : index
    %c0_104 = arith.constant 0 : index
    %102 = vector.load %arg10[%c1_102, %c1_103, %c0_104] : memref<10x10x128xbf16, #tpu.memory_space<vmem>>, vector<8x8x128xbf16>
    %103 = vector.shape_cast %102 : vector<8x8x128xbf16> to vector<64x128xbf16>
    %c512_105 = arith.constant 512 : index
    %c0_106 = arith.constant 0 : index
    %104 = vector.load %arg5[%c512_105, %c0_106] : memref<1152x128xbf16, #tpu.memory_space<vmem>>, vector<128x128xbf16>
    %cst_107 = arith.constant dense<0.000000e+00> : vector<64x128xf32>
    %105 = tpu.matmul %103, %104, %cst_107 {dimension_numbers = #tpu.dot_dimension_numbers<[1], [0], [0], [1], [0, 0, 1, 1], [], []>} : vector<64x128xbf16>, vector<128x128xbf16>, vector<64x128xf32> -> vector<64x128xf32>
    %106 = arith.addf %101, %105 : vector<64x128xf32>
    %c1_108 = arith.constant 1 : index
    %c2_109 = arith.constant 2 : index
    %c0_110 = arith.constant 0 : index
    %107 = vector.load %arg10[%c1_108, %c2_109, %c0_110] : memref<10x10x128xbf16, #tpu.memory_space<vmem>>, vector<8x8x128xbf16>
    %108 = vector.shape_cast %107 : vector<8x8x128xbf16> to vector<64x128xbf16>
    %c640_111 = arith.constant 640 : index
    %c0_112 = arith.constant 0 : index
    %109 = vector.load %arg5[%c640_111, %c0_112] : memref<1152x128xbf16, #tpu.memory_space<vmem>>, vector<128x128xbf16>
    %cst_113 = arith.constant dense<0.000000e+00> : vector<64x128xf32>
    %110 = tpu.matmul %108, %109, %cst_113 {dimension_numbers = #tpu.dot_dimension_numbers<[1], [0], [0], [1], [0, 0, 1, 1], [], []>} : vector<64x128xbf16>, vector<128x128xbf16>, vector<64x128xf32> -> vector<64x128xf32>
    %111 = arith.addf %106, %110 : vector<64x128xf32>
    %c2_114 = arith.constant 2 : index
    %c0_115 = arith.constant 0 : index
    %c0_116 = arith.constant 0 : index
    %112 = vector.load %arg10[%c2_114, %c0_115, %c0_116] : memref<10x10x128xbf16, #tpu.memory_space<vmem>>, vector<8x8x128xbf16>
    %113 = vector.shape_cast %112 : vector<8x8x128xbf16> to vector<64x128xbf16>
    %c768_117 = arith.constant 768 : index
    %c0_118 = arith.constant 0 : index
    %114 = vector.load %arg5[%c768_117, %c0_118] : memref<1152x128xbf16, #tpu.memory_space<vmem>>, vector<128x128xbf16>
    %cst_119 = arith.constant dense<0.000000e+00> : vector<64x128xf32>
    %115 = tpu.matmul %113, %114, %cst_119 {dimension_numbers = #tpu.dot_dimension_numbers<[1], [0], [0], [1], [0, 0, 1, 1], [], []>} : vector<64x128xbf16>, vector<128x128xbf16>, vector<64x128xf32> -> vector<64x128xf32>
    %116 = arith.addf %111, %115 : vector<64x128xf32>
    %c2_120 = arith.constant 2 : index
    %c1_121 = arith.constant 1 : index
    %c0_122 = arith.constant 0 : index
    %117 = vector.load %arg10[%c2_120, %c1_121, %c0_122] : memref<10x10x128xbf16, #tpu.memory_space<vmem>>, vector<8x8x128xbf16>
    %118 = vector.shape_cast %117 : vector<8x8x128xbf16> to vector<64x128xbf16>
    %c896_123 = arith.constant 896 : index
    %c0_124 = arith.constant 0 : index
    %119 = vector.load %arg5[%c896_123, %c0_124] : memref<1152x128xbf16, #tpu.memory_space<vmem>>, vector<128x128xbf16>
    %cst_125 = arith.constant dense<0.000000e+00> : vector<64x128xf32>
    %120 = tpu.matmul %118, %119, %cst_125 {dimension_numbers = #tpu.dot_dimension_numbers<[1], [0], [0], [1], [0, 0, 1, 1], [], []>} : vector<64x128xbf16>, vector<128x128xbf16>, vector<64x128xf32> -> vector<64x128xf32>
    %121 = arith.addf %116, %120 : vector<64x128xf32>
    %c2_126 = arith.constant 2 : index
    %c2_127 = arith.constant 2 : index
    %c0_128 = arith.constant 0 : index
    %122 = vector.load %arg10[%c2_126, %c2_127, %c0_128] : memref<10x10x128xbf16, #tpu.memory_space<vmem>>, vector<8x8x128xbf16>
    %123 = vector.shape_cast %122 : vector<8x8x128xbf16> to vector<64x128xbf16>
    %c1024_129 = arith.constant 1024 : index
    %c0_130 = arith.constant 0 : index
    %124 = vector.load %arg5[%c1024_129, %c0_130] : memref<1152x128xbf16, #tpu.memory_space<vmem>>, vector<128x128xbf16>
    %cst_131 = arith.constant dense<0.000000e+00> : vector<64x128xf32>
    %125 = tpu.matmul %123, %124, %cst_131 {dimension_numbers = #tpu.dot_dimension_numbers<[1], [0], [0], [1], [0, 0, 1, 1], [], []>} : vector<64x128xbf16>, vector<128x128xbf16>, vector<64x128xf32> -> vector<64x128xf32>
    %126 = arith.addf %121, %125 : vector<64x128xf32>
    %127 = vector.broadcast %79 : vector<1x128xf32> to vector<64x128xf32>
    %128 = arith.mulf %126, %127 : vector<64x128xf32>
    %129 = vector.broadcast %80 : vector<1x128xf32> to vector<64x128xf32>
    %130 = arith.addf %128, %129 : vector<64x128xf32>
    %cst_132 = arith.constant 0.000000e+00 : f32
    %131 = vector.broadcast %cst_132 : f32 to vector<64x128xf32>
    %132 = arith.maximumf %130, %131 : vector<64x128xf32>
    %133 = vector.shape_cast %132 : vector<64x128xf32> to vector<8x8x128xf32>
    %134 = arith.truncf %133 : vector<8x8x128xf32> to vector<8x8x128xbf16>
    %c0_133 = arith.constant 0 : index
    %c0_134 = arith.constant 0 : index
    %c0_135 = arith.constant 0 : index
    %c0_136 = arith.constant 0 : index
    %135 = vector.load %arg8[%c0_133, %c0_134, %c0_135, %c0_136] : memref<1x8x8x128xbf16, #tpu.memory_space<vmem>>, vector<1x8x8x128xbf16>
    %136 = vector.shape_cast %135 : vector<1x8x8x128xbf16> to vector<8x8x128xbf16>
    %137 = vector.shape_cast %134 : vector<8x8x128xbf16> to vector<1x8x8x128xbf16>
    tpu.vector_store %arg8[%c0_133, %c0_134, %c0_135, %c0_136], %137 {strides = array<i32>} : memref<1x8x8x128xbf16, #tpu.memory_space<vmem>>, vector<1x8x8x128xbf16>,
    return
  }
  func.func @transform_0(%arg0: i32) -> (i32, i32, i32, i32) {
    %c0_i32 = arith.constant 0 : i32
    %c0_i32_0 = arith.constant 0 : i32
    %c0_i32_1 = arith.constant 0 : i32
    %c0_i32_2 = arith.constant 0 : i32
    return %arg0, %c0_i32, %c0_i32_0, %c0_i32_1 : i32, i32, i32, i32
  }
  func.func @transform_1(%arg0: i32) -> (i32, i32) {
    %c0_i32 = arith.constant 0 : i32
    %c0_i32_0 = arith.constant 0 : i32
    %c0_i32_1 = arith.constant 0 : i32
    return %c0_i32, %c0_i32_0 : i32, i32
  }
  func.func @transform_2(%arg0: i32) -> (i32, i32) {
    %c0_i32 = arith.constant 0 : i32
    %c0_i32_0 = arith.constant 0 : i32
    %c0_i32_1 = arith.constant 0 : i32
    return %c0_i32, %c0_i32_0 : i32, i32
  }
  func.func @transform_3(%arg0: i32) -> (i32, i32) {
    %c0_i32 = arith.constant 0 : i32
    %c0_i32_0 = arith.constant 0 : i32
    %c0_i32_1 = arith.constant 0 : i32
    return %c0_i32, %c0_i32_0 : i32, i32
  }
  func.func @transform_4(%arg0: i32) -> (i32, i32) {
    %c0_i32 = arith.constant 0 : i32
    %c0_i32_0 = arith.constant 0 : i32
    %c0_i32_1 = arith.constant 0 : i32
    return %c0_i32, %c0_i32_0 : i32, i32
  }
  func.func @transform_5(%arg0: i32) -> (i32, i32) {
    %c0_i32 = arith.constant 0 : i32
    %c0_i32_0 = arith.constant 0 : i32
    %c0_i32_1 = arith.constant 0 : i32
    return %c0_i32, %c0_i32_0 : i32, i32
  }
  func.func @transform_6(%arg0: i32) -> (i32, i32) {
    %c0_i32 = arith.constant 0 : i32
    %c0_i32_0 = arith.constant 0 : i32
    %c0_i32_1 = arith.constant 0 : i32
    return %c0_i32, %c0_i32_0 : i32, i32
  }
  func.func @transform_7(%arg0: i32) -> (i32, i32, i32, i32) {
    %c0_i32 = arith.constant 0 : i32
    %c0_i32_0 = arith.constant 0 : i32
    %c0_i32_1 = arith.constant 0 : i32
    %c0_i32_2 = arith.constant 0 : i32
    return %arg0, %c0_i32, %c0_i32_0, %c0_i32_1 : i32, i32, i32, i32
  }
}

</mosaic_0001>

<bundles_post_ra>
// kernel: tpu_custom_call.1
= control target key start
LH: loop header
LB: loop body
LE: loop exit
PB: predicated region body
PF: predicated region fallthrough
CT: control target
= control target key end

     0   :  { %12 = vsyncpa [#allocation5], 0  ;;  %s7338_s0 = inlined_call_operand.hbm [shape: bf16[2,16,8,256], index: 0, kind: input, shape index: {}]   ;;  %s7339_s1 = inlined_call_operand.hbm [shape: bf16[1152,128], index: 1, kind: input, shape index: {}]   ;;  %s7340_s2 = inlined_call_operand.vmem [shape: f32[1,128], index: 2, kind: input, shape index: {}]   ;;  %s7341_s3 = inlined_call_operand.vmem [shape: f32[1,128], index: 3, kind: input, shape index: {}]   ;;  %s7342_s4 = inlined_call_operand.hbm [shape: bf16[1152,128], index: 4, kind: input, shape index: {}]   ;;  %s7343_s5 = inlined_call_operand.vmem [shape: f32[1,128], index: 5, kind: input, shape index: {}]   ;;  %s7344_s6 = inlined_call_operand.vmem [shape: f32[1,128], index: 6, kind: input, shape index: {}]   ;;  %s7345_s7 = inlined_call_operand.hbm [shape: bf16[2,8,8,128], index: 7, kind: output, shape index: {}]  }
   0x1   :  { %14 = vsyncpa [#allocation5 + $0x1], 0 }
   0x2   :  { %15 = vsyncpa [#allocation8], 0 }
   0x3   :  { %16 = vsyncpa [#allocation6], 0 }
   0x4   :  { %18 = vsyncpa [#allocation6 + $0x1], 0  ;;  %s6459_s24 = smov 0   ;;  %s6461_s25 = smov 0  }
   0x5   :  { %s6463_s26 = smov 0   ;;  %s6465_s27 = smov 0  }
   0x6 LB: > { %s6480_s28 = sadd.s32 4294967295, %s6406_s27   ;;  %s4881_s29 = sadd.s32 4294967294, %s6406_s27   ;;  %s6406_s27 = sphi %s6465_s27, %s7373_s27   ;;  %s6402_s26 = sphi %s6463_s26, %s7372_s26   ;;  %s6398_s25 = sphi %s6461_s25, %s7371_s25   ;;  %s6394_s24 = sphi %s6459_s24, %s7370_s24  }
   0x7   : > { %p44_p0 = scmp.ne.s32.totalorder %s6398_s25, %s6394_s24  ;;  %p7346_p1 = scmp.eq.s32.totalorder %s6480_s28, 0 }
   0x8   : > { %p200_p3 = scmp.eq.s32.totalorder %s4881_s29, 1  ;;  %p4882_p5 = scmp.ge.s32.totalorder %s6406_s27, 1 }
   0x9   : > { %p6489_p4 = por %p7346_p1, %p44_p0  ;;  %p207_p7 = scmp.lt.s32.totalorder %s6406_s27, 3 }
   0xa   : > { %p6494_p6 = por %p200_p3, %p44_p0  ;;  %s6408_s10 = smov [#allocation7]  }
   0xb   : > { %s7349_s30 = scalar_select %p6489_p4, 1, 0 }
   0xc   : > { %s7350_s8 = scalar_select %p6494_p6, 1, 0 }
   0xd   : > { %p6499_p8 = pnand %p4882_p5, %p207_p7  ;;  %s219_s11 = sshll.u32 %s6408_s10, 4  ;;  %s6503_s11 = int_to_ptr.vmem [resolvable:$true] %s219_s11 }
   0xe   : > { %s6409_s13 = smov [#allocation9]   ;;  %s6250_s17 = scalar_lea.hbm %s7339_s1, 9216 }
   0xf   : > { %p6020_p9 = pneg %p6499_p8  ;;  %s238_s14 = sshll.u32 %s6409_s13, 4  ;;  %s6514_s14 = int_to_ptr.vmem [resolvable:$true] %s238_s14 }
  0x10   : > { %p6251_p12 = scmp.ne.s32.totalorder %s7339_s1, %s6250_s17  ;;  %p6257_p5 = scmp.lt.u32.totalorder %s6250_s17, %s7339_s1 }
  0x11   : > { %p6510_p11 = pnand %p6020_p9, %p7346_p1 }
  0x13   : > { %p6252_p13 = pneg %p6510_p11 }
  0x15   : > { %p6253_p0 = pnand %p6252_p13, %p6251_p12 }
  0x17   : > { %p6254_p3 = pneg %p6253_p0 }
  0x19   : > { %p6259_p7 = pnand %p6257_p5, %p6254_p3 }
  0x1b   : > { %6262 = shalt.err (!%p6259_p7)
}
  0x1c   : > { %s6263_s22 = scalar_lea.vmem %s6503_s11, 9216  ;;  %p6271_p2 = scmp.lt.s32.totalorder %s6503_s11, %s6503_s11 }
  0x1d   : > { %p6264_p9 = scmp.ne.s32.totalorder %s6503_s11, %s6263_s22  ;;  %p6272_p12 = scmp.lt.s32.totalorder %s6263_s22, %s6263_s22 }
  0x1f   : > { %p6266_p10 = pnand %p6264_p9, %p6252_p13  ;;  %p6273_p0 = por %p6272_p12, %p6271_p2 }
  0x21   : > { %p6267_p1 = pneg %p6266_p10 }
  0x23   : > { %p6274_p6 = pnand %p6273_p0, %p6267_p1 }
  0x25   : > { %6277 = shalt.err (!%p6274_p6)
}
  0x26   : > { %s6410_s23 = smov 64   ;;  %s6411_s29 = smov 4  }
  0x27   : > { %6023 = dma.hbm_to_vmem [thread:$0]  (!%p6510_p11), %s7339_s1, 9216, %s6503_s11, [#allocation8], %s6410_s23, %s6410_s23, %s6411_s29  }
  0x28   : > { %s6278_s17 = scalar_lea.hbm %s7342_s4, 9216 }
  0x29   : > { %p6279_p2 = scmp.ne.s32.totalorder %s7342_s4, %s6278_s17  ;;  %p6285_p10 = scmp.lt.u32.totalorder %s6278_s17, %s7342_s4 }
  0x2b   : > { %p6281_p1 = pnand %p6279_p2, %p6252_p13 }
  0x2d   : > { %p6282_p6 = pneg %p6281_p1 }
  0x2f   : > { %p6287_p3 = pnand %p6285_p10, %p6282_p6 }
  0x31   : > { %6290 = shalt.err (!%p6287_p3)
}
  0x32   : > { %s6291_s11 = scalar_lea.vmem %s6514_s14, 9216  ;;  %p6299_p12 = scmp.lt.s32.totalorder %s6514_s14, %s6514_s14 }
  0x33   : > { %p6292_p5 = scmp.ne.s32.totalorder %s6514_s14, %s6291_s11  ;;  %p6300_p0 = scmp.lt.s32.totalorder %s6291_s11, %s6291_s11 }
  0x35   : > { %p6294_p7 = pnand %p6292_p5, %p6252_p13  ;;  %p6301_p2 = por %p6300_p0, %p6299_p12 }
  0x37   : > { %p6295_p9 = pneg %p6294_p7 }
  0x39   : > { %p6302_p1 = pnand %p6301_p2, %p6295_p9 }
  0x3b   : > { %6305 = shalt.err (!%p6302_p1)
}
  0x3c   : > { %6026 = dma.hbm_to_vmem [thread:$0]  (!%p6510_p11), %s7342_s4, 9216, %s6514_s14, [#allocation8], %s6410_s23, %s6410_s23, %s6411_s29  }
  0x3d   : > { %s6569_s13 = sadd.s32 1, %s6406_s27   ;;  %s31_s12 = sadd.s32 1, %s6402_s26 }
  0x3e   : > { %s28_s15 = ssub.s32 %s6406_s27, %s6569_s13  ;;  %p38_p13 = scmp.ne.s32.totalorder %s6402_s26, %s6398_s25 }
  0x3f   : > { %p29_p6 = scmp.eq.s32.totalorder %s28_s15, 0  ;;  %p39_p10 = scmp.eq.s32.totalorder %s6406_s27, 0 }
  0x40   : > { %p7353_p3 = scmp.eq.s32.totalorder %s6480_s28, 1  ;;  %p6037_p7 = scmp.lt.s32.totalorder %s6406_s27, 2 }
  0x41   : > { %s6585_s17 = scalar_select %p29_p6, %s6402_s26, %s31_s12  }
  0x42   : > { %p6579_p5 = por %p7353_p3, %p38_p13  ;;  %p40_p9 = por %p39_p10, %p38_p13 }
  0x43   : > { %s258_s18 = sand.u32 1, %s6402_s26   ;;  %s5207_s14 = sshll.u32 %s6406_s27, 11 }
  0x44   : > { %s7354_s16 = scalar_select %p6579_p5, 1, 0 }
  0x45   : > { %s4886_s19 = sshll.u32 %s258_s18, 7  ;;  %s6592_s20 = scalar_lea.hbm %s7338_s0, %s5207_s14 }
  0x46   : > { %s262_s21 = scalar_lea.vmem [#allocation4], %s4886_s19  ;;  %p6596_p11 = pnand %p6037_p7, %p40_p9 }
  0x47   : > { %s269_s11 = sshll.u32 %s262_s21, 4  ;;  %s6600_s10 = scalar_lea.sflag [#allocation5], %s258_s18  ;;  %s6594_s11 = int_to_ptr.vmem [resolvable:$true] %s269_s11 }
  0x48   : > { %s6306_s12 = scalar_lea.hbm %s6592_s20, 2048  ;;  %p6308_p0 = pneg %p6596_p11 }
  0x49   : > { %p6307_p12 = scmp.ne.s32.totalorder %s6592_s20, %s6306_s12  ;;  %s6311_s14 = scalar_lea.hbm %s7338_s0, 4096 }
  0x4a   : > { %p6312_p13 = scmp.lt.u32.totalorder %s6592_s20, %s7338_s0  ;;  %p6313_p6 = scmp.lt.u32.totalorder %s6311_s14, %s6306_s12 }
  0x4b   : > { %p6309_p2 = pnand %p6308_p0, %p6307_p12  ;;  %p6315_p3 = scmp.lt.u32.totalorder %s6306_s12, %s6592_s20 }
  0x4c   : > { %p6314_p10 = por %p6313_p6, %p6312_p13 }
  0x4d   : > { %p6310_p1 = pneg %p6309_p2 }
  0x4e   : > { %p6316_p7 = por %p6315_p3, %p6314_p10 }
  0x50   : > { %p6317_p9 = pnand %p6316_p7, %p6310_p1 }
  0x52   : > { %6320 = shalt.err (!%p6317_p9)
}
  0x53   : > { %s6321_s18 = scalar_lea.vmem %s6594_s11, 2048  ;;  %s6412_s21 = smov [#allocation4]  }
  0x54   : > { %p6322_p12 = scmp.ne.s32.totalorder %s6594_s11, %s6321_s18  ;;  %s6326_s15 = sshll.u32 %s6412_s21, 4  ;;  %s6327_s15 = int_to_ptr.vmem [resolvable:$false] %s6326_s15 }
  0x55   : > { %s6328_s19 = scalar_lea.vmem %s6327_s15, 4096  ;;  %p6329_p4 = scmp.lt.s32.totalorder %s6594_s11, %s6327_s15 }
  0x56   : > { %p6324_p2 = pnand %p6322_p12, %p6308_p0  ;;  %p6330_p13 = scmp.lt.s32.totalorder %s6328_s19, %s6321_s18 }
  0x58   : > { %p6325_p5 = pneg %p6324_p2  ;;  %p6331_p6 = por %p6330_p13, %p6329_p4 }
  0x5a   : > { %p6332_p10 = pnand %p6331_p6, %p6325_p5 }
  0x5c   : > { %6335 = shalt.err (!%p6332_p10)
}
  0x5d   : > { %s6413_s12 = smov 128   ;;  %s6414_s14 = smov 8  }
  0x5e   : > { %6030 = dma.hbm_to_vmem [thread:$0]  (!%p6596_p11), %s6592_s20, 2048, %s6594_s11, %s6600_s10, %s6413_s12, %s6413_s12, %s6414_s14  }
  0x5f   : > { %281 = sbr.rel (%p6499_p8) target bundleno = 1166 (0x48e), region = 48  ;;  %s6631_s23 = sand.u32 (!%p6499_p8), 1, %s6398_s25  }
  0x60   : > { %s4890_s29 = sshll.u32 (!%p6499_p8), %s6631_s23, 7  ;;  %s284_s18 = scalar_lea.sflag (!%p6499_p8), [#allocation5], %s6631_s23 }
  0x61   : > { %s6635_s21 = scalar_lea.vmem (!%p6499_p8), [#allocation4], %s4890_s29  ;;  %p7356_p4 = scmp.ne.s32.totalorder (!%p6499_p8), %s7349_s30, 0 }
  0x66   : > { %6381 = dma.done.wait (%p7356_p4), %s284_s18, 2048  }
  0x67   : > { %6383 = vsyncadd (%p7356_p4), %s284_s18, 4294965248  ;;  %p7357_p5 = scmp.eq.s32.totalorder %s6480_s28, 0 }
  0x69   : > { %6385 = dma.done.wait (%p7357_p5), [#allocation8], 18432   ;;  %p7358_p8 = pmov %p7357_p5 }
  0x6a   : > { %v6415_v0 = vmov 0   ;;  %v6082_v1 = vld [vmem:[#allocation7 + $0x40] sm:$0xff]   ;;  %v6083_v2 = vld [vmem:[#allocation7 + $0x48] sm:$0xff]   ;;  %v6084_v3 = vld [vmem:[#allocation7 + $0x50] sm:$0xff]   ;;  %vm514_vm0 = vsmask.f32 256 }
  0x6b   : > { %6387 = vsyncadd (%p7358_p8), [#allocation8], 4294948864  ;;  %327 = vst [vmem:[#allocation2] sm:$0xf] %v6415_v0  ;;  %5448 = vmatprep.subr.bf16.mxu0 %v6082_v1  ;;  %v6085_v4 = vld [vmem:[#allocation7 + $0x58] sm:$0xff]   ;;  %v337_v5 = vld [vmem:[%s6635_s21] sm:$0xff] }
  0x6c   : > { %328 = vst [vmem:[#allocation2 + $0x4] sm:$0x1] %v6415_v0  ;;  %330 = vst [vmem:[#allocation2 + $0x48] sm:$0xf] %v6415_v0  ;;  %5449 = vmatpush3.bf16.msra.mxu0 %v6082_v1  ;;  %v338_v6 = vld [vmem:[%s6635_s21 + $0x8] sm:$0xff]  ;;  %v369_v7 = vrot.slane %v337_v5, 4 }
  0x6d   : > { %331 = vst [vmem:[#allocation2 + $0x4c] sm:$0x1] %v6415_v0  ;;  %332 = vst [vmem:[#allocation3] sm:$0xf] %v6415_v0  ;;  %5450 = vmatprep.subr.bf16.mxu0 %v6083_v2  ;;  %v370_v8 = vrot.slane %v338_v6, 4  ;;  %v339_v12 = vld [vmem:[%s6635_s21 + $0x10] sm:$0xff] }
  0x6e   : > { %333 = vst [vmem:[#allocation3 + $0x4] sm:$0x1] %v6415_v0  ;;  %335 = vst [vmem:[#allocation3 + $0x48] sm:$0xf] %v6415_v0  ;;  %v401_v9 = vmax.bf16 %v369_v7, %v337_v5  ;;  %vm525_vm1 = vsmask.f32 4352 }
  0x6f   : > { %336 = vst [vmem:[#allocation3 + $0x4c] sm:$0x1] %v6415_v0  ;;  %v402_v10 = vmax.bf16 %v370_v8, %v338_v6  ;;  %v340_v13 = vld [vmem:[%s6635_s21 + $0x18] sm:$0xff]  ;;  %v6086_v14 = vld [vmem:[#allocation7 + $0x60] sm:$0xff]   ;;  %vm513_vm2 = vcmask 1040384   ;;  %v342_v16 = vld [vmem:[%s6635_s21 + $0x28] sm:$0xff] }
  0x70   : > { %5451 = vmatpush3.bf16.msra.mxu0 %v6083_v2  ;;  %v341_v15 = vld [vmem:[%s6635_s21 + $0x20] sm:$0xff]  ;;  %v371_v17 = vrot.slane %v339_v12, 4  ;;  %v372_v18 = vrot.slane %v340_v13, 4  ;;  %v374_v21 = vrot.slane %v342_v16, 4  ;;  %v6087_v30 = vld [vmem:[#allocation7 + $0x68] sm:$0xff]   ;;  %vm524_vm3 = vcmask 1044480   ;;  %vm6659_vm4 = vmand %vm513_vm2, %vm514_vm0 }
  0x71   : > { %5452 = vmatprep.subr.bf16.mxu0 %v6084_v3  ;;  %v417_v19 = vmax.bf16 %v402_v10, %v401_v9  ;;  %v373_v20 = vrot.slane %v341_v15, 4  ;;  %v343_v40 = vld [vmem:[%s6635_s21 + $0x30] sm:$0xff]  ;;  %v344_v41 = vld [vmem:[%s6635_s21 + $0x38] sm:$0xff]  ;;  %v345_v45 = vld [vmem:[%s6635_s21 + $0x40] sm:$0xff]  ;;  %vm642_vm6 = vsmask.f32 3328 }
  0x72   : > { %v6647_v11 = vld [vmem:[#allocation2] sm:$0xf]  ;;  %v403_v24 = vmax.bf16 %v371_v17, %v339_v12  ;;  %v404_v25 = vmax.bf16 %v372_v18, %v340_v13  ;;  %v406_v29 = vmax.bf16 %v374_v21, %v342_v16  ;;  %v6088_v42 = vld [vmem:[#allocation7 + $0x70] sm:$0xff]   ;;  %v346_v46 = vld [vmem:[%s6635_s21 + $0x48] sm:$0xff]  ;;  %v375_v47 = vrot.slane %v343_v40, 4  ;;  %s4893_s12 = sshll.u32 %s6631_s23, 5 }
  0x73   : > { %v646_v22 = vshrl.u32 %v6647_v11, 16  ;;  %v649_v23 = vshll.u32 %v6647_v11, 16  ;;  %v4894_v26 = vcombine.low %v417_v19, %v417_v19  ;;  %v6655_v27 = vld [vmem:[#allocation2 + $0x4] sm:$0x1]  ;;  %v405_v28 = vmax.bf16 %v373_v20, %v341_v15  ;;  %vm6674_vm5 = vmand %vm524_vm3, %vm525_vm1  ;;  %v347_v58 = vld [vmem:[%s6635_s21 + $0x50] sm:$0xff]  ;;  %s325_s14 = scalar_lea.vmem [#allocation10], %s4893_s12 }
  0x74   : > { %5453 = vmatpush3.bf16.msra.mxu0 %v6084_v3  ;;  %v418_v31 = vmax.bf16 %v404_v25, %v403_v24  ;;  %v655_v38 = vshll.u32 %v6655_v27, 16  ;;  %v376_v48 = vrot.slane %v344_v41, 4  ;;  %v377_v52 = vrot.slane %v345_v45, 4  ;;  %v348_v59 = vld [vmem:[%s6635_s21 + $0x58] sm:$0xff]  ;;  %v349_v0 = vld [vmem:[%s6635_s21 + $0x60] sm:$0xff]  ;;  %v350_v1 = vld [vmem:[%s6635_s21 + $0x68] sm:$0xff] }
  0x75   : > { %5454 = vmatprep.subr.bf16.mxu0 %v6085_v4  ;;  %v450_v32 = vshrl.u32 %v4894_v26, 16  ;;  %v453_v33 = vshll.u32 %v4894_v26, 16  ;;  %v419_v34 = vmax.bf16 %v406_v29, %v405_v28  ;;  %v6663_v36 = vrot.slane %v646_v22, 4  ;;  %v6089_v6 = vld [vmem:[#allocation7 + $0x78] sm:$0xff]   ;;  %v6692_v24 = vld [vmem:[#allocation7] sm:$0xff]   ;;  %s4789_s29 = sshll.u32 %s325_s14, 4  ;;  %s7289_s29 = int_to_ptr.vmem [resolvable:$true] %s4789_s29 }
  0x76   : > { %v6665_v37 = vrot.slane %v649_v23, 5  ;;  %v4895_v39 = vcombine.low %v418_v31, %v418_v31  ;;  %v378_v53 = vrot.slane %v346_v46, 4  ;;  %v407_v57 = vmax.bf16 %v375_v47, %v343_v40  ;;  %s5208_s18 = sshll.u32 %s6480_s28, 9  ;;  %s4776_s20 = scalar_lea.sflag [#allocation6], %s6631_s23 }
  0x77   : > { %v452_v43 = vrot.slane %v450_v32, 7  ;;  %v4896_v44 = vcombine.low %v419_v34, %v419_v34  ;;  %v408_v61 = vmax.bf16 %v376_v48, %v344_v41  ;;  %v409_v62 = vmax.bf16 %v377_v52, %v345_v45  ;;  %s7294_s9 = scalar_lea.hbm %s7345_s7, %s5208_s18  ;;  %s6336_s28 = scalar_lea.vmem %s7289_s29, 512 }
  0x78   : > { %5455 = vmatpush3.bf16.msra.mxu0 %v6085_v4  ;;  %v457_v50 = vshrl.u32 %v4895_v39, 16  ;;  %v460_v51 = vshll.u32 %v4895_v39, 16  ;;  %v410_v63 = vmax.bf16 %v378_v53, %v346_v46  ;;  %v379_v4 = vrot.slane %v347_v58, 4  ;;  %p6337_p11 = scmp.ne.s32.totalorder %s7289_s29, %s6336_s28  ;;  %p7367_p0 = scmp.ne.s32.totalorder %s7354_s16, 0 }
  0x79   : > { %5456 = vmatprep.subr.bf16.mxu0 %v6086_v14  ;;  %v455_v54 = vor.u32 %v453_v33, %v452_v43  ;;  %v464_v55 = vshrl.u32 %v4896_v44, 16  ;;  %v467_v56 = vshll.u32 %v4896_v44, 16  ;;  %v380_v5 = vrot.slane %v348_v59, 4  ;;  %s6416_s11 = smov [#allocation10]  }
  0x7a   : > { %v459_v60 = vrot.slane %v457_v50, 7  ;;  %v420_v9 = vmax.bf16 %v408_v61, %v407_v57  ;;  %v421_v10 = vmax.bf16 %v410_v63, %v409_v62  ;;  %v381_v15 = vrot.slane %v349_v0, 4  ;;  %p6338_p1 = pnand %p6337_p11, %p7367_p0  ;;  %s6340_s22 = sshll.u32 %s6416_s11, 4  ;;  %s6341_s22 = int_to_ptr.vmem [resolvable:$false] %s6340_s22 }
  0x7b   : > { %v516_v2 = vsel %vm6659_vm4, 0, %v455_v54  ;;  %v466_v3 = vrot.slane %v464_v55, 7  ;;  %v382_v19 = vrot.slane %v350_v1, 4  ;;  %v411_v22 = vmax.bf16 %v379_v4, %v347_v58  ;;  %s6342_s10 = scalar_lea.vmem %s6341_s22, 1024  ;;  %p6343_p7 = scmp.lt.s32.totalorder %s7289_s29, %s6341_s22 }
  0x7c   : > { %5457 = vmatpush3.bf16.msra.mxu0 %v6086_v14  ;;  %v527_v7 = vsel %vm6674_vm5, %v516_v2, 0  ;;  %v462_v8 = vor.u32 %v460_v51, %v459_v60  ;;  %v4897_v17 = vcombine.low %v420_v9, %v420_v9  ;;  %v4898_v18 = vcombine.low %v421_v10, %v421_v10  ;;  %p6339_p3 = pneg %p6338_p1  ;;  %p6344_p9 = scmp.lt.s32.totalorder %s6342_s10, %s6336_s28 }
  0x7d   : > { %5458 = vmatprep.subr.bf16.mxu0 %v6087_v30  ;;  %v4902_v12 = vcombine.low %v527_v7, %v527_v7  ;;  %v4903_v13 = vcombine.high %v527_v7, %v527_v7  ;;  %v469_v14 = vor.u32 %v467_v56, %v466_v3  ;;  %v412_v23 = vmax.bf16 %v380_v5, %v348_v59 }
  0x7e   : > { %v517_v16 = vsel %vm6659_vm4, 0, %v462_v8  ;;  %v471_v29 = vshrl.u32 %v4897_v17, 16  ;;  %v474_v32 = vshll.u32 %v4897_v17, 16  ;;  %v478_v33 = vshrl.u32 %v4898_v18, 16  ;;  %p6345_p12 = por %p6344_p9, %p6343_p7 }
  0x7f   : > { %592 = vst [vmem:[#allocation2 + $0x8] sm:$0xf] %v4902_v12  ;;  %593 = vst [vmem:[#allocation2 + $0xc] sm:$0x1] %v4903_v13  ;;  %v518_v20 = vsel %vm6659_vm4, 0, %v469_v14  ;;  %v528_v21 = vsel %vm6674_vm5, %v517_v16, 0  ;;  %v413_v40 = vmax.bf16 %v381_v15, %v349_v0  ;;  %v414_v41 = vmax.bf16 %v382_v19, %v350_v1 }
  0x80   : > { %5459 = vmatpush3.bf16.msra.mxu0 %v6087_v30  ;;  %v529_v25 = vsel %vm6674_vm5, %v518_v20, 0  ;;  %v4904_v26 = vcombine.low %v528_v21, %v528_v21  ;;  %v4905_v28 = vcombine.high %v528_v21, %v528_v21  ;;  %v473_v34 = vrot.slane %v471_v29, 7  ;;  %p6346_p2 = pnand %p6345_p12, %p6339_p3 }
  0x81   : > { %5460 = vmatprep.subr.bf16.mxu0 %v6088_v42  ;;  %v4906_v30 = vcombine.low %v529_v25, %v529_v25  ;;  %v4907_v31 = vcombine.high %v529_v25, %v529_v25  ;;  %v481_v39 = vshll.u32 %v4898_v18, 16  ;;  %v480_v43 = vrot.slane %v478_v33, 7 }
  0x82   : > { %594 = vst [vmem:[#allocation2 + $0x10] sm:$0xf] %v4904_v26  ;;  %595 = vst [vmem:[#allocation2 + $0x14] sm:$0x1] %v4905_v28  ;;  %v422_v44 = vmax.bf16 %v412_v23, %v411_v22  ;;  %v476_v45 = vor.u32 %v474_v32, %v473_v34  ;;  %v423_v46 = vmax.bf16 %v414_v41, %v413_v40  ;;  %vm643_vm7 = vsmask.f32 7440 }
  0x83   : > { %596 = vst [vmem:[#allocation2 + $0x18] sm:$0xf] %v4906_v30  ;;  %597 = vst [vmem:[#allocation2 + $0x1c] sm:$0x1] %v4907_v31  ;;  %v483_v47 = vor.u32 %v481_v39, %v480_v43  ;;  %vm1063_vm9 = vcmask 1042432   ;;  %vm1064_vm10 = vcmask 1046532  }
  0x84   : > { %5461 = vmatpush3.bf16.msra.mxu0 %v6088_v42  ;;  %v652_v42 = vor.u32 %v6665_v37, %v6663_v36  ;;  %v6699_v48 = vcombine.low %v422_v44, %v422_v44  ;;  %v657_v36 = vrot.slane %v655_v38, 5  ;;  %v519_v37 = vsel %vm6659_vm4, 0, %v476_v45  ;;  %vm6719_vm8 = vmor %vm642_vm6, %vm643_vm7  ;;  %v6247_v38 = vld [vmem:[#allocation9 + $0x228] sm:$0xff]  }
  0x85   : > { %5462 = vmatprep.subr.bf16.mxu0 %v6089_v6  ;;  %v520_v56 = vsel %vm6659_vm4, 0, %v483_v47  ;;  %v530_v57 = vsel %vm6674_vm5, %v519_v37, 0  ;;  %v4900_v58 = vcombine.low %v423_v46, %v423_v46  ;;  %vm6775_vm11 = vmor %vm1063_vm9, %vm1064_vm10 }
  0x86   : > { %v6701_v50 = vld [vmem:[#allocation2 + $0x8] sm:$0xf]  ;;  %v6703_v51 = vld [vmem:[#allocation2 + $0xc] sm:$0x1]  ;;  %v653_v52 = vrot.slane %v652_v42, 4  ;;  %v485_v59 = vshrl.u32 %v6699_v48, 16  ;;  %v4908_v4 = vcombine.low %v530_v57, %v530_v57  ;;  %v4909_v5 = vcombine.high %v530_v57, %v530_v57 }
  0x87   : > { %v660_v53 = vshrl.u32 %v6701_v50, 16  ;;  %v663_v54 = vshll.u32 %v6701_v50, 16  ;;  %v669_v55 = vshll.u32 %v6703_v51, 16  ;;  %v531_v0 = vsel %vm6674_vm5, %v520_v56, 0  ;;  %v6091_v57 = vld [vmem:[#allocation7 + $0x8] sm:$0xff]  }
  0x88   : > { %5463 = vmatpush3.bf16.msra.mxu0 %v6089_v6  ;;  %v4910_v6 = vcombine.low %v531_v0, %v531_v0  ;;  %v4911_v7 = vcombine.high %v531_v0, %v531_v0  ;;  %598 = vst [vmem:[#allocation2 + $0x20] sm:$0xf] %v4908_v4  ;;  %599 = vst [vmem:[#allocation2 + $0x24] sm:$0x1] %v4909_v5  ;;  %v658_v16 = vsel %vm6719_vm8, %v653_v52, %v657_v36 }
  0x89   : > { %5472 = vmatprep.subr.bf16.mxu0 %v6692_v24  ;;  %v662_v60 = vrot.slane %v660_v53, 4  ;;  %v665_v61 = vrot.slane %v663_v54, 5  ;;  %v671_v62 = vrot.slane %v669_v55, 5  ;;  %v6723_v63 = vld [vmem:[#allocation2 + $0x10] sm:$0xf]  ;;  %v488_v23 = vshll.u32 %v6699_v48, 16 }
  0x8a   : > { %v6727_v1 = vld [vmem:[#allocation2 + $0x18] sm:$0xf]  ;;  %v6729_v2 = vld [vmem:[#allocation2 + $0x14] sm:$0x1]  ;;  %v6731_v3 = vld [vmem:[#allocation2 + $0x1c] sm:$0x1] }
  0x8b   : > { %v666_v8 = vor.u32 %v665_v61, %v662_v60  ;;  %v674_v9 = vshrl.u32 %v6723_v63, 16  ;;  %v677_v10 = vshll.u32 %v6723_v63, 16  ;;  %v683_v12 = vshll.u32 %v6729_v2, 16  ;;  %600 = vst [vmem:[#allocation2 + $0x28] sm:$0xf] %v4910_v6 }
  0x8c   : > { %v688_v13 = vshrl.u32 %v6727_v1, 16  ;;  %v691_v14 = vshll.u32 %v6727_v1, 16  ;;  %v697_v15 = vshll.u32 %v6731_v3, 16  ;;  %601 = vst [vmem:[#allocation2 + $0x2c] sm:$0x1] %v4911_v7  ;;  %v487_v28 = vrot.slane %v485_v59, 7 }
  0x8d   : > { %v667_v17 = vrot.slane %v666_v8, 4  ;;  %v676_v18 = vrot.slane %v674_v9, 4  ;;  %v679_v19 = vrot.slane %v677_v10, 5  ;;  %v685_v20 = vrot.slane %v683_v12, 5  ;;  %v1041_v40 = vld [vmem:[#allocation2 + $0x10] sm:$0xe] }
  0x8e   : > { %v690_v21 = vrot.slane %v688_v13, 4  ;;  %v693_v22 = vrot.slane %v691_v14, 5  ;;  %v492_v29 = vshrl.u32 %v4900_v58, 16  ;;  %v699_v32 = vrot.slane %v697_v15, 5  ;;  %v1042_v7 = vld [vmem:[#allocation2 + $0x18] sm:$0xe] }
  0x8f   : > { %v672_v25 = vsel %vm6719_vm8, %v667_v17, %v671_v62  ;;  %v680_v26 = vor.u32 %v679_v19, %v676_v18  ;;  %v495_v33 = vshll.u32 %v4900_v58, 16  ;;  %v1076_v42 = vrot.slane %v6729_v2, 5  ;;  %v6748_v46 = vld [vmem:[#allocation2 + $0x20] sm:$0xf]  ;;  %v6752_v48 = vld [vmem:[#allocation2 + $0x24] sm:$0x1] }
  0x90   : > { %v4918_v30 = vcombine.low %v658_v16, %v672_v25  ;;  %v694_v31 = vor.u32 %v693_v22, %v690_v21  ;;  %v494_v39 = vrot.slane %v492_v29, 7  ;;  %v1080_v43 = vrot.slane %v6731_v3, 5  ;;  %v6092_v8 = vld [vmem:[#allocation7 + $0x10] sm:$0xff]  }
  0x91   : > { %v681_v34 = vrot.slane %v680_v26, 4  ;;  %v490_v44 = vor.u32 %v488_v23, %v487_v28  ;;  %v702_v53 = vshrl.u32 %v6748_v46, 16  ;;  %v705_v54 = vshll.u32 %v6748_v46, 16  ;;  %v6093_v23 = vld [vmem:[#allocation7 + $0x18] sm:$0xff]  }
  0x92   : > { %5464 = vmatprep.mubr.bf16.mxu0 %v4918_v30  ;;  %v695_v41 = vrot.slane %v694_v31, 4  ;;  %v6750_v47 = vld [vmem:[#allocation2 + $0x28] sm:$0xf]  ;;  %v497_v36 = vor.u32 %v495_v33, %v494_v39  ;;  %v711_v55 = vshll.u32 %v6752_v48, 16  ;;  %v4944_v2 = vrot.slane %v1041_v40, 9  ;;  %v6094_v31 = vld [vmem:[#allocation7 + $0x20] sm:$0xff]  }
  0x93   : > { %v686_v45 = vsel %vm6719_vm8, %v681_v34, %v685_v20  ;;  %v6756_v52 = vld [vmem:[#allocation2 + $0x2c] sm:$0x1]  ;;  %v716_v58 = vshrl.u32 %v6750_v47, 16  ;;  %v719_v59 = vshll.u32 %v6750_v47, 16  ;;  %v704_v61 = vrot.slane %v702_v53, 4 }
  0x94   : > { %v700_v37 = vsel %vm6719_vm8, %v695_v41, %v699_v32  ;;  %v725_v60 = vshll.u32 %v6756_v52, 16  ;;  %v707_v62 = vrot.slane %v705_v54, 5  ;;  %v521_v0 = vsel %vm6659_vm4, 0, %v490_v44 }
  0x95   : > { %v4919_v56 = vcombine.low %v686_v45, %v700_v37  ;;  %v713_v3 = vrot.slane %v711_v55, 5  ;;  %v718_v4 = vrot.slane %v716_v58, 4  ;;  %v721_v5 = vrot.slane %v719_v59, 5  ;;  %v6096_v58 = vld [vmem:[#allocation7 + $0x30] sm:$0xff]  }
  0x96   : > { %v522_v6 = vsel %vm6659_vm4, 0, %v497_v36  ;;  %v708_v9 = vor.u32 %v707_v62, %v704_v61  ;;  %v727_v10 = vrot.slane %v725_v60, 5  ;;  %v532_v12 = vsel %vm6674_vm5, %v521_v0, 0  ;;  %v6095_v36 = vld [vmem:[#allocation7 + $0x28] sm:$0xff]   ;;  %v351_v62 = vld [vmem:[%s6635_s21 + $0x70] sm:$0xff]  ;;  %v352_v0 = vld [vmem:[%s6635_s21 + $0x78] sm:$0xff] }
  0x97   : > { %5465 = vmatmul.mubr.bf16.vlgmr.msra.gmra.mrb[0].mxu0 %v4919_v56  ;;  %v533_v13 = vsel %vm6674_vm5, %v522_v6, 0  ;;  %v722_v15 = vor.u32 %v721_v5, %v718_v4  ;;  %v4912_v16 = vcombine.low %v532_v12, %v532_v12  ;;  %v4913_v17 = vcombine.high %v532_v12, %v532_v12  ;;  %v6097_v12 = vld [vmem:[#allocation7 + $0x38] sm:$0xff]  }
  0x98   : > { %5473 = vmatpush3.bf16.msra.mxu0 %v6692_v24  ;;  %v4914_v24 = vcombine.low %v533_v13, %v533_v13  ;;  %v709_v18 = vrot.slane %v708_v9, 4  ;;  %v4915_v19 = vcombine.high %v533_v13, %v533_v13  ;;  %v6781_v21 = vsel %vm6775_vm11, %v4944_v2, %v1076_v42 }
  0x99   : > { %5474 = vmatprep.subr.bf16.mxu0 %v6091_v57  ;;  %v723_v20 = vrot.slane %v722_v15, 4  ;;  %602 = vst [vmem:[#allocation2 + $0x30] sm:$0xf] %v4912_v16  ;;  %603 = vst [vmem:[#allocation2 + $0x34] sm:$0x1] %v4913_v17  ;;  %v4945_v22 = vrot.slane %v1042_v7, 9  ;;  %v4930_v7 = vcombine.low %v6647_v11, %v6701_v50 }
  0x9a   : > { %604 = vst [vmem:[#allocation2 + $0x38] sm:$0xf] %v4914_v24  ;;  %v714_v25 = vsel %vm6719_vm8, %v709_v18, %v713_v3  ;;  %605 = vst [vmem:[#allocation2 + $0x3c] sm:$0x1] %v4915_v19  ;;  %v383_v3 = vrot.slane %v351_v62, 4  ;;  %v384_v4 = vrot.slane %v352_v0, 4 }
  0x9b   : > { %v728_v26 = vsel %vm6719_vm8, %v723_v20, %v727_v10  ;;  %v6789_v28 = vsel %vm6775_vm11, %v4945_v22, %v1080_v43  ;;  %v6099_v16 = vld [vmem:[#allocation7 + $0x80] sm:$0xff]   ;;  %v1040_v24 = vld [vmem:[#allocation2 + $0x8] sm:$0xe]  ;;  %v4931_v20 = vcombine.low %v6723_v63, %v6727_v1  ;;  %v1068_v11 = vrot.slane %v6655_v27, 5  ;;  %v6102_v27 = vld [vmem:[#allocation7 + $0x90] sm:$0xff]  }
  0x9c   : > { %5475 = vmatpush3.bf16.msra.mxu0 %v6091_v57  ;;  %v4920_v29 = vcombine.low %v714_v25, %v728_v26  ;;  %v4951_v30 = vcombine.low %v6781_v21, %v6789_v28  ;;  %v416_v9 = vmax.bf16 %v384_v4, %v352_v0  ;;  %v1039_v17 = vld [vmem:[#allocation2] sm:$0xe]  ;;  %v6101_v50 = vld [vmem:[#allocation7 + $0x88] sm:$0xff]   ;;  %v4932_v22 = vcombine.low %v6748_v46, %v6750_v47  ;;  %v6112_v4 = vld [vmem:[#allocation7 + $0xd0] sm:$0xff]  }
  0x9d   : > { %5476 = vmatprep.subr.bf16.mxu0 %v6092_v8  ;;  %v1072_v26 = vrot.slane %v6703_v51, 5  ;;  %v1420_v21 = vld [vmem:[#allocation2 + $0x8] sm:$0xf] }
  0x9e   : > { %5468 = vmatprep.mubr.bf16.mxu0 %v4920_v29  ;;  %v4943_v29 = vrot.slane %v1040_v24, 9  ;;  %v6115_v28 = vld [vmem:[#allocation7 + $0xe8] sm:$0xff]  }
  0xa0   : > { %5477 = vmatpush3.bf16.msra.mxu0 %v6092_v8  ;;  %v6793_v32 = vld [vmem:[#allocation2 + $0x30] sm:$0xf]  ;;  %v6797_v34 = vld [vmem:[#allocation2 + $0x34] sm:$0x1]  ;;  %v415_v8 = vmax.bf16 %v383_v3, %v351_v62  ;;  %v1073_v46 = vsel %vm6775_vm11, %v4943_v29, %v1072_v26  ;;  %v6111_v3 = vld [vmem:[#allocation7 + $0xc8] sm:$0xff]  }
  0xa1   : > { %5478 = vmatprep.subr.bf16.mxu0 %v6093_v23  ;;  %v6795_v33 = vld [vmem:[#allocation2 + $0x38] sm:$0xf]  ;;  %v6799_v39 = vld [vmem:[#allocation2 + $0x3c] sm:$0x1]  ;;  %v730_v40 = vshrl.u32 %v6793_v32, 16  ;;  %v733_v41 = vshll.u32 %v6793_v32, 16 }
  0xa2   : > { %v739_v42 = vshll.u32 %v6797_v34, 16  ;;  %v744_v43 = vshrl.u32 %v6795_v33, 16  ;;  %v747_v44 = vshll.u32 %v6795_v33, 16  ;;  %v753_v45 = vshll.u32 %v6799_v39, 16 }
  0xa3   : > { %v732_v37 = vrot.slane %v730_v40, 4  ;;  %v735_v53 = vrot.slane %v733_v41, 5  ;;  %v424_v13 = vmax.bf16 %v416_v9, %v415_v8  ;;  %v4933_v41 = vcombine.low %v6793_v32, %v6795_v33  ;;  %v6114_v8 = vld [vmem:[#allocation7 + $0xe0] sm:$0xff]  }
  0xa4   : > { %5479 = vmatpush3.bf16.msra.mxu0 %v6093_v23  ;;  %v746_v54 = vrot.slane %v744_v43, 4  ;;  %v749_v55 = vrot.slane %v747_v44, 5  ;;  %v741_v57 = vrot.slane %v739_v42, 5  ;;  %v755_v60 = vrot.slane %v753_v45, 5  ;;  %v6103_v43 = vld [vmem:[#allocation7 + $0x98] sm:$0xff]   ;;  %v6104_v44 = vld [vmem:[#allocation7 + $0xa0] sm:$0xff]  }
  0xa5   : > { %5480 = vmatprep.subr.bf16.mxu0 %v6094_v31  ;;  %v736_v56 = vor.u32 %v735_v53, %v732_v37  ;;  %v4901_v15 = vcombine.low %v424_v13, %v424_v13  ;;  %v4942_v23 = vrot.slane %v1039_v17, 9  ;;  %v6105_v45 = vld [vmem:[#allocation7 + $0xa8] sm:$0xff]   ;;  %v1043_v37 = vld [vmem:[#allocation2 + $0x20] sm:$0xe]  ;;  %v1084_v33 = vrot.slane %v6752_v48, 5 }
  0xa6   : > { %v750_v59 = vor.u32 %v749_v55, %v746_v54  ;;  %v1044_v53 = vld [vmem:[#allocation2 + $0x28] sm:$0xe]  ;;  %v4946_v32 = vrot.slane %v1043_v37, 9  ;;  %v1088_v55 = vrot.slane %v6756_v52, 5  ;;  %v1092_v48 = vrot.slane %v6797_v34, 5  ;;  %v6113_v34 = vld [vmem:[#allocation7 + $0xd8] sm:$0xff]  }
  0xa7   : > { %v737_v61 = vrot.slane %v736_v56, 4  ;;  %v499_v18 = vshrl.u32 %v4901_v15, 16  ;;  %v502_v19 = vshll.u32 %v4901_v15, 16  ;;  %v1069_v1 = vsel %vm6775_vm11, %v4942_v23, %v1068_v11  ;;  %v6109_v56 = vld [vmem:[#allocation7 + $0xb8] sm:$0xff]   ;;  %v6846_v17 = vld [vmem:[#allocation2 + $0xc] sm:$0x1] }
  0xa8   : > { %5481 = vmatpush3.bf16.msra.mxu0 %v6094_v31  ;;  %v751_v2 = vrot.slane %v750_v59, 4  ;;  %v4950_v42 = vcombine.low %v1069_v1, %v1073_v46  ;;  %v4947_v54 = vrot.slane %v1044_v53, 9  ;;  %v1085_v59 = vsel %vm6775_vm11, %v4946_v32, %v1084_v33  ;;  %v6122_v32 = vld [vmem:[#allocation7 + $0x110] sm:$0xff]   ;;  %v1428_v33 = vld [vmem:[#allocation2 + $0x28] sm:$0xf] }
  0xa9   : > { %5482 = vmatprep.subr.bf16.mxu0 %v6095_v36  ;;  %v742_v5 = vsel %vm6719_vm8, %v737_v61, %v741_v57  ;;  %v501_v25 = vrot.slane %v499_v18, 7  ;;  %v6110_v57 = vld [vmem:[#allocation7 + $0xc0] sm:$0xff]   ;;  %v1046_v61 = vld [vmem:[#allocation2 + $0x38] sm:$0xe]  ;;  %v1096_v52 = vrot.slane %v6799_v39, 5  ;;  %v1437_v9 = vshrl.u32 %v1420_v21, 16 }
  0xaa   : > { %v756_v6 = vsel %vm6719_vm8, %v751_v2, %v755_v60  ;;  %v1089_v60 = vsel %vm6775_vm11, %v4947_v54, %v1088_v55  ;;  %v4949_v2 = vrot.slane %v1046_v61, 9  ;;  %v6118_v39 = vld [vmem:[#allocation2 + $0x8] ss:$8 sps:$4 sm:$0xff]   ;;  %v1496_v61 = vshll.u32 %v1428_v33, 16 }
  0xab   : > { %v4921_v10 = vcombine.low %v742_v5, %v756_v6  ;;  %v504_v31 = vor.u32 %v502_v19, %v501_v25  ;;  %v4952_v62 = vcombine.low %v1085_v59, %v1089_v60  ;;  %v1439_v24 = vrot.slane %v1437_v9, 4  ;;  %v6848_v19 = vld [vmem:[#allocation2 + $0x14] sm:$0x1] }
  0xac   : > { %5483 = vmatpush3.bf16.msra.mxu0 %v6095_v36  ;;  %v6107_v36 = vld [vmem:[#allocation7 + $0xb0] sm:$0xff]   ;;  %v1097_v6 = vsel %vm6775_vm11, %v4949_v2, %v1096_v52  ;;  %v1446_v25 = vshll.u32 %v6846_v17, 16  ;;  %v1460_v26 = vshll.u32 %v6848_v19, 16  ;;  %v1493_v60 = vshrl.u32 %v1428_v33, 16  ;;  %v6860_v2 = vld [vmem:[#allocation2 + $0x2c] sm:$0x1] }
  0xad   : > { %5484 = vmatprep.subr.bf16.mxu0 %v6096_v58  ;;  %5469 = vmatmul.mubr.bf16.gmra.mrb[4].mxu0 %v4921_v10  ;;  %v523_v63 = vsel %vm6659_vm4, 0, %v504_v31  ;;  %v1440_v10 = vshll.u32 %v1420_v21, 16  ;;  %v6119_v31 = vld [vmem:[#allocation7 + $0x100] sm:$0xff]   ;;  %v1498_v9 = vrot.slane %v1496_v61, 5 }
  0xae   : > { %5488 = vmatprep.mubr.bf16.mxu0 %v4930_v7  ;;  %v534_v51 = vsel %vm6674_vm5, %v523_v63, 0  ;;  %v1495_v21 = vrot.slane %v1493_v60, 4 }
  0xaf   : > { %v4916_v47 = vcombine.low %v534_v51, %v534_v51  ;;  %v4917_v40 = vcombine.high %v534_v51, %v534_v51  ;;  %v1442_v18 = vrot.slane %v1440_v10, 5  ;;  %v6120_v51 = vld [vmem:[#allocation2 + $0x18] ss:$8 sps:$4 sm:$0xff]  }
  0xb0   : > { %5485 = vmatpush3.bf16.msra.mxu0 %v6096_v58  ;;  %v1045_v58 = vld [vmem:[#allocation2 + $0x30] sm:$0xe] }
  0xb1   : > { %5486 = vmatprep.subr.bf16.mxu0 %v6097_v12  ;;  %606 = vst [vmem:[#allocation2 + $0x40] sm:$0xf] %v4916_v47  ;;  %607 = vst [vmem:[#allocation2 + $0x44] sm:$0x1] %v4917_v40  ;;  %v4948_v0 = vrot.slane %v1045_v58, 9  ;;  %v1443_v23 = vor.u32 %v1442_v18, %v1439_v24  ;;  %v6121_v47 = vld [vmem:[#allocation7 + $0x108] sm:$0xff]  }
  0xb2   : > { %v6126_v40 = vld [vmem:[#allocation2 + $0x28] ss:$8 sps:$4 sm:$0xff]  }
  0xb3   : > { %v1093_v5 = vsel %vm6775_vm11, %v4948_v0, %v1092_v48  ;;  %v1430_v58 = vld [vmem:[#allocation2 + $0x30] sm:$0xf]  ;;  %v6124_v0 = vld [vmem:[#allocation7 + $0x120] sm:$0xff]  }
  0xb4   : > { %5487 = vmatpush3.bf16.msra.mxu0 %v6097_v12  ;;  %v4953_v7 = vcombine.low %v1093_v5, %v1097_v6  ;;  %v6116_v12 = vld [vmem:[#allocation7 + $0xf0] sm:$0xff]   ;;  %v6858_v48 = vld [vmem:[#allocation2 + $0x24] sm:$0x1]  ;;  %v1507_v52 = vshrl.u32 %v1430_v58, 16 }
  0xb5   : > { %5496 = vmatprep.subr.bf16.mxu0 %v6099_v16  ;;  %v6127_v24 = vld [vmem:[#allocation7 + $0x130] sm:$0xff]  }
  0xb6   : > { %v1509_v10 = vrot.slane %v1507_v52, 4 }
  0xb7   : > { %5489 = vmatmul.mubr.bf16.vlgmr.msra.gmra.mrb[0].mxu0 %v4931_v20 }
  0xb8   : > { %5497 = vmatpush3.bf16.msra.mxu0 %v6099_v16  ;;  %5492 = vmatprep.mubr.bf16.mxu0 %v4932_v22  ;;  %v6117_v16 = vld [vmem:[#allocation7 + $0xf8] sm:$0xff]   ;;  %v1426_v22 = vld [vmem:[#allocation2 + $0x20] sm:$0xf] }
  0xb9   : > { %5498 = vmatprep.subr.bf16.mxu0 %v6101_v50  ;;  %v1479_v1 = vshrl.u32 %v1426_v22, 16  ;;  %v1482_v46 = vshll.u32 %v1426_v22, 16  ;;  %v6128_v54 = vld [vmem:[#allocation2 + $0x38] ss:$8 sps:$4 sm:$0xff]  }
  0xbb   : > { %v1481_v37 = vrot.slane %v1479_v1, 4  ;;  %v1484_v53 = vrot.slane %v1482_v46, 5 }
  0xbc   : > { %5499 = vmatpush3.bf16.msra.mxu0 %v6101_v50  ;;  %v1424_v50 = vld [vmem:[#allocation2 + $0x18] sm:$0xf] }
  0xbd   : > { %5500 = vmatprep.subr.bf16.mxu0 %v6102_v27  ;;  %v1465_v29 = vshrl.u32 %v1424_v50, 16 }
  0xbf   : > { %5493 = vmatmul.mubr.bf16.gmra.mrb[4].mxu0 %v4933_v41  ;;  %v1444_v41 = vrot.slane %v1443_v23, 4 }
  0xc0   : > { %5501 = vmatpush3.bf16.msra.mxu0 %v6102_v27  ;;  %5512 = vmatprep.mubr.bf16.mxu0 %v4950_v42  ;;  %v1468_v27 = vshll.u32 %v1424_v50, 16  ;;  %v1448_v42 = vrot.slane %v1446_v25, 5  ;;  %v1499_v25 = vor.u32 %v1498_v9, %v1495_v21  ;;  %v6133_v21 = vld [vmem:[#allocation7 + $0x158] sm:$0xff]   ;;  %v6134_v9 = vld [vmem:[#allocation7 + $0x160] sm:$0xff]  }
  0xc1   : > { %5502 = vmatprep.subr.bf16.mxu0 %v6103_v43 }
  0xc2   : > { %v1449_v55 = vsel %vm6719_vm8, %v1444_v41, %v1448_v42  ;;  %v1701_v41 = vld [vmem:[#allocation2 + $0x8] sm:$0xe]  ;;  %v1500_v42 = vrot.slane %v1499_v25, 4  ;;  %v1743_v25 = vrot.slane %v6860_v2, 5 }
  0xc4   : > { %5503 = vmatpush3.bf16.msra.mxu0 %v6103_v43  ;;  %v1462_v43 = vrot.slane %v1460_v26, 5 }
  0xc5   : > { %5504 = vmatprep.subr.bf16.mxu0 %v6104_v44 }
  0xc8   : > { %5505 = vmatpush3.bf16.msra.mxu0 %v6104_v44  ;;  %v1467_v44 = vrot.slane %v1465_v29, 4 }
  0xc9   : > { %5506 = vmatprep.subr.bf16.mxu0 %v6105_v45 }
  0xcc   : > { %5507 = vmatpush3.bf16.msra.mxu0 %v6105_v45 }
  0xcd   : > { %5508 = vmatprep.subr.bf16.mxu0 %v6107_v36 }
  0xd0   : > { %5509 = vmatpush3.bf16.msra.mxu0 %v6107_v36  ;;  %v1470_v36 = vrot.slane %v1468_v27, 5  ;;  %v6870_v27 = vld [vmem:[#allocation2 + $0x44] sm:$0x1] }
  0xd1   : > { %5510 = vmatprep.subr.bf16.mxu0 %v6109_v56 }
  0xd2   : > { %v1471_v5 = vor.u32 %v1470_v36, %v1467_v44  ;;  %v1702_v44 = vld [vmem:[#allocation2 + $0x10] sm:$0xe] }
  0xd3   : > { %v4987_v61 = vrot.slane %v1702_v44, 9  ;;  %v6139_v44 = vld [vmem:[#allocation7 + $0x188] sm:$0xff]  }
  0xd4   : > { %5511 = vmatpush3.bf16.msra.mxu0 %v6109_v56 }
  0xd5   : > { %5520 = vmatprep.subr.bf16.mxu0 %v6110_v57 }
  0xd7   : > { %5513 = vmatmul.mubr.bf16.vlgmr.msra.gmra.mrb[0].mxu0 %v4951_v30  ;;  %v1422_v30 = vld [vmem:[#allocation2 + $0x10] sm:$0xf] }
  0xd8   : > { %5521 = vmatpush3.bf16.msra.mxu0 %v6110_v57  ;;  %5516 = vmatprep.mubr.bf16.mxu0 %v4952_v62  ;;  %v1451_v13 = vshrl.u32 %v1422_v30, 16  ;;  %v1454_v15 = vshll.u32 %v1422_v30, 16  ;;  %v6123_v57 = vld [vmem:[#allocation7 + $0x118] sm:$0xff]   ;;  %v1434_v30 = vld [vmem:[#allocation2 + $0x40] sm:$0xf] }
  0xd9   : > { %5522 = vmatprep.subr.bf16.mxu0 %v6111_v3  ;;  %v6856_v62 = vld [vmem:[#allocation2 + $0x1c] sm:$0x1]  ;;  %v1535_v18 = vshrl.u32 %v1434_v30, 16 }
  0xda   : > { %v1453_v20 = vrot.slane %v1451_v13, 4  ;;  %v1456_v11 = vrot.slane %v1454_v15, 5  ;;  %v1474_v6 = vshll.u32 %v6856_v62, 16 }
  0xdc   : > { %5523 = vmatpush3.bf16.msra.mxu0 %v6111_v3  ;;  %v1457_v63 = vor.u32 %v1456_v11, %v1453_v20  ;;  %v1510_v3 = vshll.u32 %v1430_v58, 16  ;;  %v1538_v20 = vshll.u32 %v1434_v30, 16  ;;  %v1472_v11 = vrot.slane %v1471_v5, 4 }
  0xdd   : > { %5524 = vmatprep.subr.bf16.mxu0 %v6112_v4  ;;  %v1476_v50 = vrot.slane %v1474_v6, 5  ;;  %v1727_v58 = vrot.slane %v6846_v17, 5 }
  0xde   : > { %v1458_v45 = vrot.slane %v1457_v63, 4  ;;  %v6868_v63 = vld [vmem:[#allocation2 + $0x3c] sm:$0x1] }
  0xdf   : > { %5517 = vmatmul.mubr.bf16.gmra.mrb[4].mxu0 %v4953_v7  ;;  %v6125_v7 = vld [vmem:[#allocation7 + $0x128] sm:$0xff]   ;;  %v1530_v36 = vshll.u32 %v6868_v63, 16 }
  0xe0   : > { %5525 = vmatpush3.bf16.msra.mxu0 %v6112_v4  ;;  %5536 = vmatprep.mubr.bf16.mxu0 %v6118_v39  ;;  %v1463_v56 = vsel %vm6719_vm8, %v1458_v45, %v1462_v43  ;;  %v6862_v4 = vld [vmem:[#allocation2 + $0x34] sm:$0x1]  ;;  %v1485_v39 = vor.u32 %v1484_v53, %v1481_v37  ;;  %v1544_v37 = vshll.u32 %v6870_v27, 16 }
  0xe1   : > { %5526 = vmatprep.subr.bf16.mxu0 %v6113_v34  ;;  %v4974_v59 = vcombine.low %v1449_v55, %v1463_v56  ;;  %v1516_v13 = vshll.u32 %v6862_v4, 16  ;;  %v1532_v60 = vrot.slane %v1530_v36, 5 }
  0xe2   : > { %v1486_v22 = vrot.slane %v1485_v39, 4  ;;  %v1546_v6 = vrot.slane %v1544_v37, 5  ;;  %v6132_v39 = vld [vmem:[#allocation7 + $0x150] sm:$0xff]  }
  0xe3   : > { %v6140_v37 = vld [vmem:[#allocation7 + $0x190] sm:$0xff]  }
  0xe4   : > { %5527 = vmatpush3.bf16.msra.mxu0 %v6113_v34  ;;  %v1432_v34 = vld [vmem:[#allocation2 + $0x38] sm:$0xf] }
  0xe5   : > { %5528 = vmatprep.subr.bf16.mxu0 %v6114_v8  ;;  %v1521_v15 = vshrl.u32 %v1432_v34, 16 }
  0xe7   : > { %v1523_v1 = vrot.slane %v1521_v15, 4  ;;  %v1704_v15 = vld [vmem:[#allocation2 + $0x20] sm:$0xe] }
  0xe8   : > { %5529 = vmatpush3.bf16.msra.mxu0 %v6114_v8  ;;  %v1488_v8 = vshll.u32 %v6858_v48, 16 }
  0xe9   : > { %5530 = vmatprep.subr.bf16.mxu0 %v6115_v28 }
  0xea   : > { %v1490_v23 = vrot.slane %v1488_v8, 5 }
  0xec   : > { %5531 = vmatpush3.bf16.msra.mxu0 %v6115_v28  ;;  %v1502_v28 = vshll.u32 %v6860_v2, 16  ;;  %v1491_v33 = vsel %vm6719_vm8, %v1486_v22, %v1490_v23  ;;  %v6137_v22 = vld [vmem:[#allocation7 + $0x178] sm:$0xff]   ;;  %v1708_v2 = vld [vmem:[#allocation2 + $0x40] sm:$0xe] }
  0xed   : > { %5532 = vmatprep.subr.bf16.mxu0 %v6116_v12 }
  0xee   : > { %v1504_v26 = vrot.slane %v1502_v28, 5 }
  0xf0   : > { %5533 = vmatpush3.bf16.msra.mxu0 %v6116_v12  ;;  %v1512_v12 = vrot.slane %v1510_v3, 5  ;;  %v1505_v55 = vsel %vm6719_vm8, %v1500_v42, %v1504_v26  ;;  %v6131_v3 = vld [vmem:[#allocation7 + $0x148] sm:$0xff]   ;;  %v4993_v42 = vrot.slane %v1708_v2, 9 }
  0xf1   : > { %5534 = vmatprep.subr.bf16.mxu0 %v6117_v16 }
  0xf2   : > { %v1513_v29 = vor.u32 %v1512_v12, %v1509_v10  ;;  %v6135_v10 = vld [vmem:[#allocation7 + $0x168] sm:$0xff]   ;;  %v6136_v12 = vld [vmem:[#allocation7 + $0x170] sm:$0xff]  }
  0xf4   : > { %5535 = vmatpush3.bf16.msra.mxu0 %v6117_v16  ;;  %v1524_v16 = vshll.u32 %v1432_v34, 16  ;;  %v1514_v43 = vrot.slane %v1513_v29, 4  ;;  %v1747_v29 = vrot.slane %v6862_v4, 5  ;;  %v1751_v4 = vrot.slane %v6868_v63, 5 }
  0xf5   : > { %5544 = vmatprep.subr.bf16.mxu0 %v6119_v31 }
  0xf6   : > { %v1526_v46 = vrot.slane %v1524_v16, 5  ;;  %v1705_v16 = vld [vmem:[#allocation2 + $0x28] sm:$0xe] }
  0xf7   : > { %5537 = vmatmul.mubr.bf16.vlgmr.msra.gmra.mrb[0].mxu0 %v6120_v51  ;;  %v6129_v51 = vld [vmem:[#allocation7 + $0x138] sm:$0xff]   ;;  %v4990_v23 = vrot.slane %v1705_v16, 9 }
  0xf8   : > { %5545 = vmatpush3.bf16.msra.mxu0 %v6119_v31  ;;  %5540 = vmatprep.mubr.bf16.mxu0 %v6126_v40  ;;  %v1518_v31 = vrot.slane %v1516_v13, 5  ;;  %v1540_v40 = vrot.slane %v1538_v20, 5  ;;  %v1527_v45 = vor.u32 %v1526_v46, %v1523_v1  ;;  %v1703_v13 = vld [vmem:[#allocation2 + $0x18] sm:$0xe]  ;;  %v1735_v20 = vrot.slane %v6856_v62, 5  ;;  %v6138_v62 = vld [vmem:[#allocation7 + $0x180] sm:$0xff]  }
  0xf9   : > { %5546 = vmatprep.subr.bf16.mxu0 %v6121_v47 }
  0xfa   : > { %v1519_v56 = vsel %vm6719_vm8, %v1514_v43, %v1518_v31  ;;  %v1755_v43 = vrot.slane %v6870_v27, 5  ;;  %v6142_v27 = vld [vmem:[#allocation7 + $0x1a0] sm:$0xff]  }
  0xfb   : > { %v4976_v34 = vcombine.low %v1505_v55, %v1519_v56  ;;  %v2082_v55 = vld [vmem:[#allocation2 + $0x18] sm:$0xf]  ;;  %v6144_v56 = vld [vmem:[#allocation7 + $0x1b0] sm:$0xff]  }
  0xfc   : > { %5547 = vmatpush3.bf16.msra.mxu0 %v6121_v47  ;;  %v1537_v47 = vrot.slane %v1535_v18, 4  ;;  %v4988_v18 = vrot.slane %v1703_v13, 9  ;;  %v1756_v36 = vsel %vm6775_vm11, %v4993_v42, %v1755_v43  ;;  %v6922_v42 = vld [vmem:[#allocation2 + $0x2c] sm:$0x1] }
  0xfd   : > { %5548 = vmatprep.subr.bf16.mxu0 %v6122_v32 }
  0xfe   : > { %v1541_v53 = vor.u32 %v1540_v40, %v1537_v47  ;;  %v1736_v31 = vsel %vm6775_vm11, %v4988_v18, %v1735_v20  ;;  %v6156_v18 = vld [vmem:[#allocation2 + $0x40] ss:$8 sps:$4 sm:$0xff]  }
  0xff   : > { %5541 = vmatmul.mubr.bf16.gmra.mrb[4].mxu0 %v6128_v54  ;;  %v6130_v54 = vld [vmem:[#allocation7 + $0x140] sm:$0xff]  }
 0x100   : > { %5549 = vmatpush3.bf16.msra.mxu0 %v6122_v32  ;;  %5560 = vmatprep.mubr.bf16.mxu0 %v4974_v59  ;;  %v1477_v32 = vsel %vm6719_vm8, %v1472_v11, %v1476_v50  ;;  %v1528_v59 = vrot.slane %v1527_v45, 4  ;;  %v1542_v5 = vrot.slane %v1541_v53, 4  ;;  %v4989_v11 = vrot.slane %v1704_v15, 9  ;;  %v6146_v53 = vld [vmem:[#allocation2 + $0x10] ss:$8 sps:$4 sm:$0xff]  }
 0x101   : > { %5550 = vmatprep.subr.bf16.mxu0 %v6123_v57  ;;  %v4975_v52 = vcombine.low %v1477_v32, %v1491_v33  ;;  %v1739_v50 = vrot.slane %v6858_v48, 5  ;;  %v1744_v48 = vsel %vm6775_vm11, %v4990_v23, %v1743_v25  ;;  %v6141_v32 = vld [vmem:[#allocation7 + $0x198] sm:$0xff]   ;;  %v6143_v33 = vld [vmem:[#allocation7 + $0x1a8] sm:$0xff]   ;;  %v6150_v15 = vld [vmem:[#allocation7 + $0x1d0] sm:$0xff]  }
 0x102   : > { %v1547_v17 = vsel %vm6719_vm8, %v1542_v5, %v1546_v6  ;;  %v6910_v6 = vld [vmem:[#allocation2 + $0x14] sm:$0x1]  ;;  %v2088_v23 = vld [vmem:[#allocation2 + $0x30] sm:$0xf]  ;;  %v2090_v25 = vld [vmem:[#allocation2 + $0x38] sm:$0xf] }
 0x103   : > { %v1740_v1 = vsel %vm6775_vm11, %v4989_v11, %v1739_v50  ;;  %v2084_v11 = vld [vmem:[#allocation2 + $0x20] sm:$0xf]  ;;  %v6151_v50 = vld [vmem:[#allocation7 + $0x1d8] sm:$0xff]   ;;  %v2170_v2 = vshll.u32 %v2090_v25, 16 }
 0x104   : > { %5551 = vmatpush3.bf16.msra.mxu0 %v6123_v57  ;;  %v4986_v57 = vrot.slane %v1701_v41, 9  ;;  %v4995_v47 = vcombine.low %v1736_v31, %v1740_v1 }
 0x105   : > { %5552 = vmatprep.subr.bf16.mxu0 %v6124_v0 }
 0x108   : > { %5553 = vmatpush3.bf16.msra.mxu0 %v6124_v0  ;;  %v1731_v0 = vrot.slane %v6848_v19, 5  ;;  %v1728_v19 = vsel %vm6775_vm11, %v4986_v57, %v1727_v58 }
 0x109   : > { %5554 = vmatprep.subr.bf16.mxu0 %v6125_v7 }
 0x10a   : > { %v1732_v8 = vsel %vm6775_vm11, %v4987_v61, %v1731_v0  ;;  %v6145_v61 = vld [vmem:[#allocation7 + $0x1b8] sm:$0xff]  }
 0x10b   : > { %v4994_v30 = vcombine.low %v1728_v19, %v1732_v8 }
 0x10c   : > { %5555 = vmatpush3.bf16.msra.mxu0 %v6125_v7  ;;  %v1533_v7 = vsel %vm6719_vm8, %v1528_v59, %v1532_v60  ;;  %v2111_v59 = vshrl.u32 %v2082_v55, 16  ;;  %v2114_v60 = vshll.u32 %v2082_v55, 16 }
 0x10d   : > { %5556 = vmatprep.subr.bf16.mxu0 %v6127_v24  ;;  %v4977_v28 = vcombine.low %v1533_v7, %v1547_v17  ;;  %v6147_v7 = vld [vmem:[#allocation7 + $0x1c0] sm:$0xff]  }
 0x10e   : > { %v2116_v5 = vrot.slane %v2114_v60, 5 }
 0x110   : > { %5557 = vmatpush3.bf16.msra.mxu0 %v6127_v24  ;;  %v1706_v24 = vld [vmem:[#allocation2 + $0x30] sm:$0xe] }
 0x111   : > { %5558 = vmatprep.subr.bf16.mxu0 %v6129_v51  ;;  %v4991_v26 = vrot.slane %v1706_v24, 9 }
 0x113   : > { %v1748_v46 = vsel %vm6775_vm11, %v4991_v26, %v1747_v29  ;;  %v2125_v26 = vshrl.u32 %v2084_v11, 16  ;;  %v2128_v29 = vshll.u32 %v2084_v11, 16 }
 0x114   : > { %5559 = vmatpush3.bf16.msra.mxu0 %v6129_v51  ;;  %v1707_v51 = vld [vmem:[#allocation2 + $0x38] sm:$0xe]  ;;  %v4996_v40 = vcombine.low %v1744_v48, %v1748_v46  ;;  %v2153_v48 = vshrl.u32 %v2088_v23, 16  ;;  %v2156_v46 = vshll.u32 %v2088_v23, 16 }
 0x115   : > { %5568 = vmatprep.subr.bf16.mxu0 %v6130_v54  ;;  %v4992_v41 = vrot.slane %v1707_v51, 9  ;;  %v2167_v51 = vshrl.u32 %v2090_v25, 16 }
 0x117   : > { %5561 = vmatmul.mubr.bf16.vlgmr.msra.gmra.mrb[0].mxu0 %v4975_v52  ;;  %v1752_v45 = vsel %vm6775_vm11, %v4992_v41, %v1751_v4  ;;  %v6920_v4 = vld [vmem:[#allocation2 + $0x24] sm:$0x1]  ;;  %v2130_v41 = vrot.slane %v2128_v29, 5 }
 0x118   : > { %5569 = vmatpush3.bf16.msra.mxu0 %v6130_v54  ;;  %5564 = vmatprep.mubr.bf16.mxu0 %v4976_v34  ;;  %v4997_v63 = vcombine.low %v1752_v45, %v1756_v36  ;;  %v2080_v54 = vld [vmem:[#allocation2 + $0x10] sm:$0xf]  ;;  %v6912_v34 = vld [vmem:[#allocation2 + $0x1c] sm:$0x1]  ;;  %v2092_v45 = vld [vmem:[#allocation2 + $0x40] sm:$0xf] }
 0x119   : > { %5570 = vmatprep.subr.bf16.mxu0 %v6131_v3  ;;  %v2097_v57 = vshrl.u32 %v2080_v54, 16  ;;  %v2100_v58 = vshll.u32 %v2080_v54, 16  ;;  %v2120_v8 = vshll.u32 %v6912_v34, 16  ;;  %v2155_v36 = vrot.slane %v2153_v48, 4 }
 0x11a   : > { %v2134_v55 = vshll.u32 %v6920_v4, 16 }
 0x11b   : > { %v2099_v0 = vrot.slane %v2097_v57, 4  ;;  %v2102_v52 = vrot.slane %v2100_v58, 5  ;;  %v2122_v13 = vrot.slane %v2120_v8, 5  ;;  %v2184_v57 = vshll.u32 %v2092_v45, 16 }
 0x11c   : > { %5571 = vmatpush3.bf16.msra.mxu0 %v6131_v3  ;;  %v2113_v3 = vrot.slane %v2111_v59, 4  ;;  %v2148_v59 = vshll.u32 %v6922_v42, 16 }
 0x11d   : > { %5572 = vmatprep.subr.bf16.mxu0 %v6132_v39  ;;  %v2103_v17 = vor.u32 %v2102_v52, %v2099_v0  ;;  %v6155_v0 = vld [vmem:[#allocation7 + $0x1f0] sm:$0xff]  }
 0x11e   : > { %v2117_v19 = vor.u32 %v2116_v5, %v2113_v3 }
 0x11f   : > { %5565 = vmatmul.mubr.bf16.gmra.mrb[4].mxu0 %v4977_v28  ;;  %v6154_v28 = vld [vmem:[#allocation2 + $0x30] ss:$8 sps:$4 sm:$0xff]  }
 0x120   : > { %5573 = vmatpush3.bf16.msra.mxu0 %v6132_v39  ;;  %5584 = vmatprep.mubr.bf16.mxu0 %v4994_v30  ;;  %v2106_v39 = vshll.u32 %v6910_v6, 16  ;;  %v6149_v30 = vld [vmem:[#allocation7 + $0x1c8] sm:$0xff]  }
 0x121   : > { %5574 = vmatprep.subr.bf16.mxu0 %v6133_v21 }
 0x124   : > { %5575 = vmatpush3.bf16.msra.mxu0 %v6133_v21  ;;  %v6148_v21 = vld [vmem:[#allocation2 + $0x20] ss:$8 sps:$4 sm:$0xff]  }
 0x125   : > { %5576 = vmatprep.subr.bf16.mxu0 %v6134_v9 }
 0x128   : > { %5577 = vmatpush3.bf16.msra.mxu0 %v6134_v9  ;;  %v2104_v9 = vrot.slane %v2103_v17, 4  ;;  %v6157_v17 = vld [vmem:[#allocation7 + $0x1f8] sm:$0xff]  }
 0x129   : > { %5578 = vmatprep.subr.bf16.mxu0 %v6135_v10 }
 0x12c   : > { %5579 = vmatpush3.bf16.msra.mxu0 %v6135_v10  ;;  %v2108_v10 = vrot.slane %v2106_v39, 5 }
 0x12d   : > { %5580 = vmatprep.subr.bf16.mxu0 %v6136_v12 }
 0x12e   : > { %v2109_v16 = vsel %vm6719_vm8, %v2104_v9, %v2108_v10  ;;  %v6932_v9 = vld [vmem:[#allocation2 + $0x44] sm:$0x1] }
 0x130   : > { %5581 = vmatpush3.bf16.msra.mxu0 %v6136_v12  ;;  %v2118_v12 = vrot.slane %v2117_v19, 4  ;;  %v2136_v19 = vrot.slane %v2134_v55, 5  ;;  %v6161_v55 = vld [vmem:[#allocation7 + $0x218] sm:$0xff]  }
 0x131   : > { %5582 = vmatprep.subr.bf16.mxu0 %v6137_v22 }
 0x132   : > { %v2123_v24 = vsel %vm6719_vm8, %v2118_v12, %v2122_v13 }
 0x133   : > { %v5018_v20 = vcombine.low %v2109_v16, %v2123_v24 }
 0x134   : > { %5583 = vmatpush3.bf16.msra.mxu0 %v6137_v22  ;;  %v2086_v22 = vld [vmem:[#allocation2 + $0x28] sm:$0xf] }
 0x135   : > { %5592 = vmatprep.subr.bf16.mxu0 %v6138_v62  ;;  %v2139_v31 = vshrl.u32 %v2086_v22, 16  ;;  %v2142_v1 = vshll.u32 %v2086_v22, 16  ;;  %v2190_v22 = vshll.u32 %v6932_v9, 16 }
 0x137   : > { %5585 = vmatmul.mubr.bf16.vlgmr.msra.gmra.mrb[0].mxu0 %v4995_v47  ;;  %v6153_v47 = vld [vmem:[#allocation7 + $0x1e8] sm:$0xff]   ;;  %v2141_v43 = vrot.slane %v2139_v31, 4 }
 0x138   : > { %5593 = vmatpush3.bf16.msra.mxu0 %v6138_v62  ;;  %5588 = vmatprep.mubr.bf16.mxu0 %v4996_v40  ;;  %v6152_v62 = vld [vmem:[#allocation7 + $0x1e0] sm:$0xff]   ;;  %v2127_v40 = vrot.slane %v2125_v26, 4 }
 0x139   : > { %5594 = vmatprep.subr.bf16.mxu0 %v6139_v44  ;;  %v6158_v26 = vld [vmem:[#allocation7 + $0x200] sm:$0xff]  }
 0x13a   : > { %v2131_v54 = vor.u32 %v2130_v41, %v2127_v40  ;;  %v6159_v41 = vld [vmem:[#allocation7 + $0x208] sm:$0xff]  }
 0x13c   : > { %5595 = vmatpush3.bf16.msra.mxu0 %v6139_v44  ;;  %v2144_v44 = vrot.slane %v2142_v1, 5  ;;  %v2132_v39 = vrot.slane %v2131_v54, 4  ;;  %v2361_v1 = vld [vmem:[#allocation2 + $0x10] sm:$0xe] }
 0x13d   : > { %5596 = vmatprep.subr.bf16.mxu0 %v6140_v37 }
 0x13e   : > { %v2145_v58 = vor.u32 %v2144_v44, %v2141_v43  ;;  %v5030_v43 = vrot.slane %v2361_v1, 9  ;;  %v2387_v44 = vrot.slane %v6910_v6, 5  ;;  %v6974_v1 = vld [vmem:[#allocation9] sm:$0xff]  }
 0x13f   : > { %5589 = vmatmul.mubr.bf16.gmra.mrb[4].mxu0 %v4997_v63  ;;  %v2169_v63 = vrot.slane %v2167_v51, 4 }
 0x140   : > { %5597 = vmatpush3.bf16.msra.mxu0 %v6140_v37  ;;  %5608 = vmatprep.mubr.bf16.mxu0 %v6146_v53  ;;  %v2158_v37 = vrot.slane %v2156_v46, 5  ;;  %v2172_v53 = vrot.slane %v2170_v2, 5  ;;  %v2192_v2 = vrot.slane %v2190_v22, 5  ;;  %v6166_v22 = vld [vmem:[#allocation9 + $0x40] sm:$0xff]  }
 0x141   : > { %5598 = vmatprep.subr.bf16.mxu0 %v6141_v32  ;;  %5664 = vmatprep.subr.bf16.mxu1 %v6166_v22 }
 0x142   : > { %v2159_v52 = vor.u32 %v2158_v37, %v2155_v36  ;;  %v2173_v5 = vor.u32 %v2172_v53, %v2169_v63  ;;  %v2391_v36 = vrot.slane %v6912_v34, 5  ;;  %v6160_v53 = vld [vmem:[#allocation7 + $0x210] sm:$0xff]   ;;  %5665 = vmatpush3.bf16.msra.mxu1 %v6166_v22 }
 0x144   : > { %5599 = vmatpush3.bf16.msra.mxu0 %v6141_v32  ;;  %v2094_v32 = vld [vmem:[#allocation2 + $0x48] sm:$0xf]  ;;  %v2160_v13 = vrot.slane %v2159_v52, 4  ;;  %v2174_v16 = vrot.slane %v2173_v5, 4 }
 0x145   : > { %5600 = vmatprep.subr.bf16.mxu0 %v6142_v27  ;;  %v2195_v60 = vshrl.u32 %v2094_v32, 16 }
 0x147   : > { %v2197_v10 = vrot.slane %v2195_v60, 4  ;;  %v2364_v60 = vld [vmem:[#allocation2 + $0x28] sm:$0xe] }
 0x148   : > { %5601 = vmatpush3.bf16.msra.mxu0 %v6142_v27  ;;  %v6924_v27 = vld [vmem:[#allocation2 + $0x34] sm:$0x1]  ;;  %v5033_v5 = vrot.slane %v2364_v60, 9 }
 0x149   : > { %5602 = vmatprep.subr.bf16.mxu0 %v6143_v33  ;;  %v2162_v3 = vshll.u32 %v6924_v27, 16 }
 0x14c   : > { %5603 = vmatpush3.bf16.msra.mxu0 %v6143_v33  ;;  %v6926_v33 = vld [vmem:[#allocation2 + $0x3c] sm:$0x1] }
 0x14d   : > { %5604 = vmatprep.subr.bf16.mxu0 %v6144_v56 }
 0x150   : > { %5605 = vmatpush3.bf16.msra.mxu0 %v6144_v56  ;;  %v2181_v56 = vshrl.u32 %v2092_v45, 16 }
 0x151   : > { %5606 = vmatprep.subr.bf16.mxu0 %v6145_v61 }
 0x152   : > { %v2183_v8 = vrot.slane %v2181_v56, 4  ;;  %v6162_v56 = vld [vmem:[#allocation7 + $0x220] sm:$0xff]  }
 0x154   : > { %5607 = vmatpush3.bf16.msra.mxu0 %v6145_v61  ;;  %v2198_v61 = vshll.u32 %v2094_v32, 16  ;;  %v2388_v32 = vsel %vm6775_vm11, %v5030_v43, %v2387_v44 }
 0x155   : > { %5616 = vmatprep.subr.bf16.mxu0 %v6147_v7 }
 0x156   : > { %v2200_v12 = vrot.slane %v2198_v61, 5  ;;  %v2365_v61 = vld [vmem:[#allocation2 + $0x30] sm:$0xe] }
 0x157   : > { %5609 = vmatmul.mubr.bf16.vlgmr.msra.gmra.mrb[0].mxu0 %v6148_v21  ;;  %v2186_v21 = vrot.slane %v2184_v57, 5  ;;  %v6163_v57 = vld [vmem:[#allocation7 + $0x228] sm:$0xff]  }
 0x158   : > { %5617 = vmatpush3.bf16.msra.mxu0 %v6147_v7  ;;  %5612 = vmatprep.mubr.bf16.mxu0 %v6154_v28  ;;  %v2176_v7 = vshll.u32 %v6926_v33, 16  ;;  %v2146_v28 = vrot.slane %v2145_v58, 4  ;;  %v2201_v23 = vor.u32 %v2200_v12, %v2197_v10  ;;  %v6164_v58 = vld [vmem:[#allocation7 + $0x230] sm:$0xff]   ;;  %v2367_v10 = vld [vmem:[#allocation2 + $0x40] sm:$0xe] }
 0x159   : > { %5618 = vmatprep.subr.bf16.mxu0 %v6149_v30  ;;  %v2187_v11 = vor.u32 %v2186_v21, %v2183_v8  ;;  %v2407_v21 = vrot.slane %v6926_v33, 5  ;;  %v2368_v12 = vld [vmem:[#allocation2 + $0x48] sm:$0xe] }
 0x15a   : > { %v2178_v24 = vrot.slane %v2176_v7, 5  ;;  %v2399_v7 = vrot.slane %v6922_v42, 5 }
 0x15b   : > { %v2188_v46 = vrot.slane %v2187_v11, 4 }
 0x15c   : > { %5619 = vmatpush3.bf16.msra.mxu0 %v6149_v30  ;;  %v2150_v30 = vrot.slane %v2148_v59, 5  ;;  %v2179_v31 = vsel %vm6719_vm8, %v2174_v16, %v2178_v24  ;;  %v2363_v59 = vld [vmem:[#allocation2 + $0x20] sm:$0xe]  ;;  %v5037_v16 = vrot.slane %v2368_v12, 9 }
 0x15d   : > { %5620 = vmatprep.subr.bf16.mxu0 %v6150_v15  ;;  %v2193_v37 = vsel %vm6719_vm8, %v2188_v46, %v2192_v2  ;;  %v5032_v52 = vrot.slane %v2363_v59, 9 }
 0x15f   : > { %5613 = vmatmul.mubr.bf16.gmra.mrb[4].mxu0 %v6156_v18  ;;  %v6934_v18 = vld [vmem:[#allocation2 + $0x4c] sm:$0x1] }
 0x160   : > { %5621 = vmatpush3.bf16.msra.mxu0 %v6150_v15  ;;  %5632 = vmatprep.mubr.bf16.mxu0 %v5018_v20  ;;  %v2164_v15 = vrot.slane %v2162_v3, 5  ;;  %v2137_v20 = vsel %vm6719_vm8, %v2132_v39, %v2136_v19  ;;  %v2204_v25 = vshll.u32 %v6934_v18, 16  ;;  %v2395_v3 = vrot.slane %v6920_v4, 5 }
 0x161   : > { %5622 = vmatprep.subr.bf16.mxu0 %v6151_v50  ;;  %v5034_v39 = vrot.slane %v2365_v61, 9  ;;  %v2403_v19 = vrot.slane %v6924_v27, 5  ;;  %v2415_v24 = vrot.slane %v6934_v18, 5  ;;  %v6169_v18 = vld [vmem:[#allocation9 + $0x58] sm:$0xff]  }
 0x162   : > { %v2165_v29 = vsel %vm6719_vm8, %v2160_v13, %v2164_v15  ;;  %v2206_v40 = vrot.slane %v2204_v25, 5  ;;  %v5036_v13 = vrot.slane %v2367_v10, 9  ;;  %v2411_v15 = vrot.slane %v6932_v9, 5  ;;  %v6168_v9 = vld [vmem:[#allocation9 + $0x50] sm:$0xff]   ;;  %v6170_v25 = vld [vmem:[#allocation9 + $0x60] sm:$0xff]  }
 0x163   : > { %v5020_v51 = vcombine.low %v2165_v29, %v2179_v31  ;;  %v2404_v4 = vsel %vm6775_vm11, %v5034_v39, %v2403_v19  ;;  %v2416_v11 = vsel %vm6775_vm11, %v5037_v16, %v2415_v24  ;;  %v6172_v29 = vld [vmem:[#allocation9 + $0x70] sm:$0xff]   ;;  %v6173_v31 = vld [vmem:[#allocation9 + $0x78] sm:$0xff]  }
 0x164   : > { %5623 = vmatpush3.bf16.msra.mxu0 %v6151_v50  ;;  %v2151_v50 = vsel %vm6719_vm8, %v2146_v28, %v2150_v30  ;;  %v2396_v28 = vsel %vm6775_vm11, %v5032_v52, %v2395_v3  ;;  %v2400_v30 = vsel %vm6775_vm11, %v5033_v5, %v2399_v7 }
 0x165   : > { %5624 = vmatprep.subr.bf16.mxu0 %v6152_v62  ;;  %v5019_v48 = vcombine.low %v2137_v20, %v2151_v50  ;;  %v5039_v27 = vcombine.low %v2396_v28, %v2400_v30  ;;  %v2412_v20 = vsel %vm6775_vm11, %v5036_v13, %v2411_v15 }
 0x166   : > { %v5041_v50 = vcombine.low %v2412_v20, %v2416_v11 }
 0x168   : > { %5625 = vmatpush3.bf16.msra.mxu0 %v6152_v62  ;;  %v2362_v62 = vld [vmem:[#allocation2 + $0x18] sm:$0xe] }
 0x169   : > { %5626 = vmatprep.subr.bf16.mxu0 %v6153_v47  ;;  %v5031_v45 = vrot.slane %v2362_v62, 9  ;;  %v5050_v62 = vld [vmem:[%s7340_s2] ss:$0 sm:$0xff] }
 0x16b   : > { %v2392_v6 = vsel %vm6775_vm11, %v5031_v45, %v2391_v36 }
 0x16c   : > { %5627 = vmatpush3.bf16.msra.mxu0 %v6153_v47  ;;  %v2202_v47 = vrot.slane %v2201_v23, 4  ;;  %v5038_v34 = vcombine.low %v2388_v32, %v2392_v6  ;;  %v6167_v23 = vld [vmem:[#allocation9 + $0x48] sm:$0xff]  }
 0x16d   : > { %5628 = vmatprep.subr.bf16.mxu0 %v6155_v0  ;;  %5666 = vmatprep.subr.bf16.mxu1 %v6167_v23 }
 0x16e   : > { %v2207_v63 = vsel %vm6719_vm8, %v2202_v47, %v2206_v40  ;;  %5667 = vmatpush3.bf16.msra.mxu1 %v6167_v23 }
 0x16f   : > { %v5021_v54 = vcombine.low %v2193_v37, %v2207_v63  ;;  %5668 = vmatprep.subr.bf16.mxu1 %v6168_v9 }
 0x170   : > { %5629 = vmatpush3.bf16.msra.mxu0 %v6155_v0  ;;  %v2366_v0 = vld [vmem:[#allocation2 + $0x38] sm:$0xe] }
 0x171   : > { %5630 = vmatprep.subr.bf16.mxu0 %v6157_v17  ;;  %v5035_v8 = vrot.slane %v2366_v0, 9 }
 0x172   : > { %5669 = vmatpush3.bf16.msra.mxu1 %v6168_v9 }
 0x173   : > { %v2408_v42 = vsel %vm6775_vm11, %v5035_v8, %v2407_v21  ;;  %5670 = vmatprep.subr.bf16.mxu1 %v6169_v18 }
 0x174   : > { %5631 = vmatpush3.bf16.msra.mxu0 %v6157_v17  ;;  %v6165_v17 = vld [vmem:[#allocation7 + $0x238] sm:$0xff]   ;;  %v5040_v33 = vcombine.low %v2404_v4, %v2408_v42 }
 0x175   : > { %5640 = vmatprep.subr.bf16.mxu0 %v6158_v26 }
 0x176   : > { %5671 = vmatpush3.bf16.msra.mxu1 %v6169_v18 }
 0x177   : > { %5633 = vmatmul.mubr.bf16.vlgmr.msra.gmra.mrb[0].mxu0 %v5019_v48  ;;  %5672 = vmatprep.subr.bf16.mxu1 %v6170_v25  ;;  %v6983_v48 = vld [vmem:[%s7341_s3] ss:$0 sm:$0xff] }
 0x178   : > { %5641 = vmatpush3.bf16.msra.mxu0 %v6158_v26  ;;  %5636 = vmatprep.mubr.bf16.mxu0 %v5020_v51  ;;  %v6171_v26 = vld [vmem:[#allocation9 + $0x68] sm:$0xff]   ;;  %v6985_v51 = vld [vmem:[#allocation3] sm:$0xf] }
 0x179   : > { %5642 = vmatprep.subr.bf16.mxu0 %v6159_v41  ;;  %v2802_v36 = vshrl.u32 %v6985_v51, 16 }
 0x17a   : > { %5673 = vmatpush3.bf16.msra.mxu1 %v6170_v25 }
 0x17b   : > { %5674 = vmatprep.subr.bf16.mxu1 %v6171_v26 }
 0x17c   : > { %5643 = vmatpush3.bf16.msra.mxu0 %v6159_v41 }
 0x17d   : > { %5644 = vmatprep.subr.bf16.mxu0 %v6160_v53 }
 0x17e   : > { %5675 = vmatpush3.bf16.msra.mxu1 %v6171_v26 }
 0x17f   : > { %5637 = vmatmul.mubr.bf16.gmra.mrb[4].mxu0 %v5021_v54  ;;  %5676 = vmatprep.subr.bf16.mxu1 %v6172_v29 }
 0x180   : > { %5645 = vmatpush3.bf16.msra.mxu0 %v6160_v53  ;;  %5656 = vmatprep.mubr.bf16.mxu0 %v5038_v34  ;;  %v2805_v53 = vshll.u32 %v6985_v51, 16 }
 0x181   : > { %5646 = vmatprep.subr.bf16.mxu0 %v6161_v55 }
 0x182   : > { %5677 = vmatpush3.bf16.msra.mxu1 %v6172_v29  ;;  %v6997_v0 = vrot.slane %v2805_v53, 5 }
 0x183   : > { %5678 = vmatprep.subr.bf16.mxu1 %v6173_v31 }
 0x184   : > { %5647 = vmatpush3.bf16.msra.mxu0 %v6161_v55 }
 0x185   : > { %5648 = vmatprep.subr.bf16.mxu0 %v6162_v56 }
 0x186   : > { %5679 = vmatpush3.bf16.msra.mxu1 %v6173_v31 }
 0x187   : > { %5688 = vmatprep.subr.bf16.mxu1 %v6974_v1 }
 0x188   : > { %5649 = vmatpush3.bf16.msra.mxu0 %v6162_v56 }
 0x189   : > { %5650 = vmatprep.subr.bf16.mxu0 %v6163_v57 }
 0x18c   : > { %5651 = vmatpush3.bf16.msra.mxu0 %v6163_v57  ;;  %v6993_v57 = vld [vmem:[#allocation3 + $0x4] sm:$0x1] }
 0x18d   : > { %5652 = vmatprep.subr.bf16.mxu0 %v6164_v58  ;;  %v2811_v52 = vshll.u32 %v6993_v57, 16 }
 0x190   : > { %5653 = vmatpush3.bf16.msra.mxu0 %v6164_v58  ;;  %v6995_v58 = vrot.slane %v2802_v36, 4 }
 0x191   : > { %5654 = vmatprep.subr.bf16.mxu0 %v6165_v17 }
 0x194   : > { %5655 = vmatpush3.bf16.msra.mxu0 %v6165_v17 }
 0x197   : > { %5657 = vmatmul.mubr.bf16.vlgmr.msra.gmra.mrb[0].mxu0 %v5039_v27 }
 0x198   : > { %5660 = vmatprep.mubr.bf16.mxu0 %v5040_v33 }
 0x19f   : > { %5661 = vmatmul.mubr.bf16.gmra.mrb[4].mxu0 %v5041_v50 }
 0x26a   : > { %v5658_v46 = vpop.f32.mrb[0].mxu0 }
 0x26b   : > { %v2578_v2 = vmul.f32 %v5658_v46, %v5050_v62  ;;  %v2531_v47 = vpop.f32.mrb[1].mxu0 }
 0x26c   : > { %v2576_v40 = vmul.f32 %v5050_v62, %v2531_v47  ;;  %v5659_v41 = vpop.f32.mrb[2].mxu0 }
 0x26d   : > { %v2592_v43 = vadd.f32 %v6983_v48, %v2578_v2  ;;  %v2579_v44 = vmul.f32 %v5659_v41, %v5050_v62  ;;  %v2534_v45 = vpop.f32.mrb[3].mxu0 }
 0x26e   : > { %v2590_v37 = vadd.f32 %v6983_v48, %v2576_v40  ;;  %v2577_v63 = vmul.f32 %v5050_v62, %v2534_v45 }
 0x26f   : > { %v2600_v32 = vmax.f32 %v2592_v43, 0.0  ;;  %v2593_v6 = vadd.f32 %v6983_v48, %v2579_v44 }
 0x270   : > { %v2598_v54 = vmax.f32 %v2590_v37, 0.0  ;;  %v2591_v34 = vadd.f32 %v6983_v48, %v2577_v63 }
 0x271   : > { %v2608_v55 = vpack.c.bf16 %v2600_v32, %v2600_v32  ;;  %v2601_v56 = vmax.f32 %v2593_v6, 0.0 }
 0x272   : > { %v2606_v59 = vpack.c.bf16 %v2598_v54, %v2598_v54  ;;  %v2599_v60 = vmax.f32 %v2591_v34, 0.0  ;;  %v5662_v61 = vpop.f32.mrb[4].mxu0 }
 0x273   : > { %v2629_v3 = vshrl.u32 %v2608_v55, 16  ;;  %v2632_v5 = vshll.u32 %v2608_v55, 16  ;;  %v2609_v7 = vpack.c.bf16 %v2601_v56, %v2601_v56  ;;  %v2582_v17 = vmul.f32 %v5662_v61, %v5050_v62  ;;  %v2547_v39 = vpop.f32.mrb[5].mxu0 }
 0x274   : > { %v2615_v19 = vshrl.u32 %v2606_v59, 16  ;;  %v2618_v8 = vshll.u32 %v2606_v59, 16  ;;  %v2607_v21 = vpack.c.bf16 %v2599_v60, %v2599_v60  ;;  %v2580_v28 = vmul.f32 %v5050_v62, %v2547_v39  ;;  %v5663_v30 = vpop.f32.mrb[6].mxu0 }
 0x275   : > { %v2631_v10 = vrot.slane %v2629_v3, 7  ;;  %v2636_v4 = vshrl.u32 %v2609_v7, 16  ;;  %v2639_v42 = vshll.u32 %v2609_v7, 16  ;;  %v2596_v12 = vadd.f32 %v6983_v48, %v2582_v17  ;;  %v2550_v27 = vpop.f32.mrb[7].mxu0 }
 0x276   : > { %v2617_v13 = vrot.slane %v2615_v19, 7  ;;  %v2622_v33 = vshrl.u32 %v2607_v21, 16  ;;  %v2625_v15 = vshll.u32 %v2607_v21, 16  ;;  %v2594_v16 = vadd.f32 %v6983_v48, %v2580_v28 }
 0x277   : > { %v2634_v24 = vor.u32 %v2632_v5, %v2631_v10  ;;  %v2638_v20 = vrot.slane %v2636_v4, 7  ;;  %v2604_v11 = vmax.f32 %v2596_v12, 0.0  ;;  %v2583_v50 = vmul.f32 %v5663_v30, %v5050_v62 }
 0x278   : > { %v2620_v22 = vor.u32 %v2618_v8, %v2617_v13  ;;  %v2624_v23 = vrot.slane %v2622_v33, 7  ;;  %v2602_v9 = vmax.f32 %v2594_v16, 0.0  ;;  %v2581_v18 = vmul.f32 %v5050_v62, %v2550_v27 }
 0x279   : > { %v2680_v25 = vsel %vm6659_vm4, 0, %v2634_v24  ;;  %v2641_v26 = vor.u32 %v2639_v42, %v2638_v20  ;;  %v2612_v29 = vpack.c.bf16 %v2604_v11, %v2604_v11  ;;  %v2597_v31 = vadd.f32 %v6983_v48, %v2583_v50 }
 0x27a   : > { %v2688_v46 = vsel %vm6674_vm5, %v2680_v25, 0  ;;  %v2678_v2 = vsel %vm6659_vm4, 0, %v2620_v22  ;;  %v2627_v47 = vor.u32 %v2625_v15, %v2624_v23  ;;  %v2610_v40 = vpack.c.bf16 %v2602_v9, %v2602_v9 }
 0x27b   : > { %v5056_v41 = vcombine.low %v2688_v46, %v2688_v46  ;;  %v5057_v43 = vcombine.high %v2688_v46, %v2688_v46  ;;  %v2686_v62 = vsel %vm6674_vm5, %v2678_v2, 0  ;;  %v2681_v44 = vsel %vm6659_vm4, 0, %v2641_v26 }
 0x27c   : > { %v5052_v45 = vcombine.low %v2686_v62, %v2686_v62  ;;  %v5053_v36 = vcombine.high %v2686_v62, %v2686_v62  ;;  %v2689_v37 = vsel %vm6674_vm5, %v2681_v44, 0  ;;  %v2679_v63 = vsel %vm6659_vm4, 0, %v2627_v47 }
 0x27d   : > { %2755 = vst [vmem:[#allocation3 + $0x18] sm:$0xf] %v5056_v41  ;;  %2756 = vst [vmem:[#allocation3 + $0x1c] sm:$0x1] %v5057_v43  ;;  %v5058_v53 = vcombine.low %v2689_v37, %v2689_v37  ;;  %v5059_v32 = vcombine.high %v2689_v37, %v2689_v37  ;;  %v2687_v6 = vsel %vm6674_vm5, %v2679_v63, 0  ;;  %v2657_v54 = vshrl.u32 %v2612_v29, 16 }
 0x27e   : > { %2751 = vst [vmem:[#allocation3 + $0x8] sm:$0xf] %v5052_v45  ;;  %2752 = vst [vmem:[#allocation3 + $0xc] sm:$0x1] %v5053_v36  ;;  %v5054_v34 = vcombine.low %v2687_v6, %v2687_v6  ;;  %v5055_v55 = vcombine.high %v2687_v6, %v2687_v6  ;;  %v2643_v56 = vshrl.u32 %v2610_v40, 16  ;;  %v2808_v59 = vor.u32 %v6997_v0, %v6995_v58 }
 0x27f   : > { %2757 = vst [vmem:[#allocation3 + $0x20] sm:$0xf] %v5058_v53  ;;  %2758 = vst [vmem:[#allocation3 + $0x24] sm:$0x1] %v5059_v32  ;;  %v2659_v60 = vrot.slane %v2657_v54, 7  ;;  %v2660_v61 = vshll.u32 %v2612_v29, 16  ;;  %v2595_v5 = vadd.f32 %v6983_v48, %v2581_v18 }
 0x280   : > { %v2605_v3 = vmax.f32 %v2597_v31, 0.0  ;;  %2753 = vst [vmem:[#allocation3 + $0x10] sm:$0xf] %v5054_v34  ;;  %2754 = vst [vmem:[#allocation3 + $0x14] sm:$0x1] %v5055_v55  ;;  %v2645_v7 = vrot.slane %v2643_v56, 7 }
 0x281   : > { %v2646_v17 = vshll.u32 %v2610_v40, 16  ;;  %v2662_v39 = vor.u32 %v2660_v61, %v2659_v60  ;;  %v2603_v8 = vmax.f32 %v2595_v5, 0.0  ;;  %v7024_v28 = vrot.slane %v2811_v52, 5 }
 0x282   : > { %v2613_v19 = vpack.c.bf16 %v2605_v3, %v2605_v3  ;;  %v7028_v10 = vrot.slane %v2808_v59, 4 }
 0x283   : > { %v2648_v21 = vor.u32 %v2646_v17, %v2645_v7  ;;  %v2684_v58 = vsel %vm6659_vm4, 0, %v2662_v39  ;;  %v2611_v30 = vpack.c.bf16 %v2603_v8, %v2603_v8 }
 0x284   : > { %v2664_v0 = vshrl.u32 %v2613_v19, 16  ;;  %v2692_v48 = vsel %vm6674_vm5, %v2684_v58, 0  ;;  %v2667_v42 = vshll.u32 %v2613_v19, 16  ;;  %v2814_v50 = vsel %vm6719_vm8, %v7028_v10, %v7024_v28  ;;  %v7055_v41 = vld [vmem:[#allocation3 + $0x18] sm:$0xf] }
 0x285   : > { %v2682_v4 = vsel %vm6659_vm4, 0, %v2648_v21  ;;  %v5064_v12 = vcombine.low %v2692_v48, %v2692_v48  ;;  %v5065_v27 = vcombine.high %v2692_v48, %v2692_v48  ;;  %v7036_v33 = vld [vmem:[#allocation3 + $0x8] sm:$0xf]  ;;  %v2650_v24 = vshrl.u32 %v2611_v30, 16  ;;  %v7038_v20 = vld [vmem:[#allocation3 + $0xc] sm:$0x1] }
 0x286   : > { %v2690_v52 = vsel %vm6674_vm5, %v2682_v4, 0  ;;  %v2666_v13 = vrot.slane %v2664_v0, 7  ;;  %v2816_v22 = vshrl.u32 %v7036_v33, 16  ;;  %v2819_v23 = vshll.u32 %v7036_v33, 16  ;;  %v7059_v44 = vld [vmem:[#allocation3 + $0x1c] sm:$0x1] }
 0x287   : > { %v5060_v15 = vcombine.low %v2690_v52, %v2690_v52  ;;  %v5061_v16 = vcombine.high %v2690_v52, %v2690_v52  ;;  %2763 = vst [vmem:[#allocation3 + $0x38] sm:$0xf] %v5064_v12  ;;  %2764 = vst [vmem:[#allocation3 + $0x3c] sm:$0x1] %v5065_v27  ;;  %v7046_v9 = vld [vmem:[#allocation3 + $0x10] sm:$0xf] }
 0x288   : > { %v2669_v11 = vor.u32 %v2667_v42, %v2666_v13  ;;  %v2652_v18 = vrot.slane %v2650_v24, 7  ;;  %v2653_v25 = vshll.u32 %v2611_v30, 16  ;;  %v7048_v26 = vld [vmem:[#allocation3 + $0x14] sm:$0x1]  ;;  %v2830_v29 = vshrl.u32 %v7046_v9, 16 }
 0x289   : > { %2759 = vst [vmem:[#allocation3 + $0x28] sm:$0xf] %v5060_v15  ;;  %2760 = vst [vmem:[#allocation3 + $0x2c] sm:$0x1] %v5061_v16  ;;  %v2833_v31 = vshll.u32 %v7046_v9, 16  ;;  %v2818_v2 = vrot.slane %v2816_v22, 4 }
 0x28a   : > { %v2685_v46 = vsel %vm6659_vm4, 0, %v2669_v11  ;;  %v2821_v47 = vrot.slane %v2819_v23, 5  ;;  %v2825_v40 = vshll.u32 %v7038_v20, 16  ;;  %v2655_v62 = vor.u32 %v2653_v25, %v2652_v18  ;;  %v7062_v6 = vld [vmem:[#allocation3 + $0x20] sm:$0xf]  ;;  %v6175_v25 = vld [vmem:[#allocation9 + $0x8] sm:$0xff]  }
 0x28b   : > { %v2693_v43 = vsel %vm6674_vm5, %v2685_v46, 0  ;;  %v2832_v45 = vrot.slane %v2830_v29, 4  ;;  %v2835_v36 = vrot.slane %v2833_v31, 5  ;;  %v2839_v32 = vshll.u32 %v7048_v26, 16  ;;  %v7077_v58 = vld [vmem:[#allocation3 + $0x24] sm:$0x1] }
 0x28c   : > { %v5066_v37 = vcombine.low %v2693_v43, %v2693_v43  ;;  %v5067_v63 = vcombine.high %v2693_v43, %v2693_v43  ;;  %v2822_v53 = vor.u32 %v2821_v47, %v2818_v2  ;;  %v2683_v54 = vsel %vm6659_vm4, 0, %v2655_v62  ;;  %v3197_v62 = vld [vmem:[#allocation3 + $0x10] sm:$0xe] }
 0x28d   : > { %v2836_v34 = vor.u32 %v2835_v36, %v2832_v45  ;;  %v2844_v55 = vshrl.u32 %v7055_v41, 16  ;;  %v2847_v56 = vshll.u32 %v7055_v41, 16  ;;  %v2691_v59 = vsel %vm6674_vm5, %v2683_v54, 0 }
 0x28e   : > { %2765 = vst [vmem:[#allocation3 + $0x40] sm:$0xf] %v5066_v37  ;;  %2766 = vst [vmem:[#allocation3 + $0x44] sm:$0x1] %v5067_v63  ;;  %v2823_v60 = vrot.slane %v2822_v53, 4  ;;  %v2827_v61 = vrot.slane %v2825_v40, 5  ;;  %v5062_v5 = vcombine.low %v2691_v59, %v2691_v59  ;;  %v5063_v7 = vcombine.high %v2691_v59, %v2691_v59 }
 0x28f   : > { %v2853_v3 = vshll.u32 %v7059_v44, 16  ;;  %v2837_v17 = vrot.slane %v2836_v34, 4  ;;  %v2846_v39 = vrot.slane %v2844_v55, 4  ;;  %v2849_v19 = vrot.slane %v2847_v56, 5  ;;  %v7075_v21 = vld [vmem:[#allocation3 + $0x38] sm:$0xf] }
 0x290   : > { %v2828_v35 = vsel %vm6719_vm8, %v2823_v60, %v2827_v61  ;;  %v7073_v8 = vld [vmem:[#allocation3 + $0x28] sm:$0xf]  ;;  %2761 = vst [vmem:[#allocation3 + $0x30] sm:$0xf] %v5062_v5  ;;  %2762 = vst [vmem:[#allocation3 + $0x34] sm:$0x1] %v5063_v7 }
 0x291   : > { %v5068_v49 = vcombine.low %v2814_v50, %v2828_v35  ;;  %v2841_v28 = vrot.slane %v2839_v32, 5  ;;  %v2858_v0 = vshrl.u32 %v7062_v6, 16  ;;  %v2850_v30 = vor.u32 %v2849_v19, %v2846_v39  ;;  %v7080_v48 = vld [vmem:[#allocation3 + $0x2c] sm:$0x1]  ;;  %v7093_v31 = vld [vmem:[#allocation3 + $0x3c] sm:$0x1] }
 0x292   : > { %v2855_v10 = vrot.slane %v2853_v3, 5  ;;  %v2861_v4 = vshll.u32 %v7062_v6, 16  ;;  %v2872_v42 = vshrl.u32 %v7073_v8, 16  ;;  %v2875_v52 = vshll.u32 %v7073_v8, 16  ;;  %v3198_v55 = vld [vmem:[#allocation3 + $0x18] sm:$0xe] }
 0x293   : > { %5680 = vmatprep.mubr.bf16.mxu1 %v5068_v49  ;;  %v2842_v12 = vsel %vm6719_vm8, %v2837_v17, %v2841_v28  ;;  %v2860_v27 = vrot.slane %v2858_v0, 4  ;;  %v2900_v13 = vshrl.u32 %v7075_v21, 16  ;;  %v2851_v15 = vrot.slane %v2850_v30, 4  ;;  %v6176_v5 = vld [vmem:[#allocation9 + $0x10] sm:$0xff]  }
 0x294   : > { %v2863_v16 = vrot.slane %v2861_v4, 5  ;;  %v2867_v24 = vshll.u32 %v7077_v58, 16  ;;  %v2874_v11 = vrot.slane %v2872_v42, 4  ;;  %v2877_v50 = vrot.slane %v2875_v52, 5 }
 0x295   : > { %v2881_v22 = vshll.u32 %v7080_v48, 16  ;;  %v2903_v23 = vshll.u32 %v7075_v21, 16  ;;  %v2856_v18 = vsel %vm6719_vm8, %v2851_v15, %v2855_v10  ;;  %v2902_v46 = vrot.slane %v2900_v13, 4  ;;  %v6178_v10 = vld [vmem:[#allocation9 + $0x18] sm:$0xff]   ;;  %v6179_v15 = vld [vmem:[#allocation9 + $0x20] sm:$0xff]  }
 0x296   : > { %v2864_v29 = vor.u32 %v2863_v16, %v2860_v27  ;;  %v5069_v2 = vcombine.low %v2842_v12, %v2856_v18  ;;  %v3229_v47 = vrot.slane %v7048_v26, 5  ;;  %v2878_v40 = vor.u32 %v2877_v50, %v2874_v11  ;;  %v6180_v16 = vld [vmem:[#allocation9 + $0x28] sm:$0xff]   ;;  %v6182_v11 = vld [vmem:[#allocation9 + $0x38] sm:$0xff]   ;;  %v6184_v50 = vld [vmem:[#allocation9 + $0x80] sm:$0xff]  }
 0x297   : > { %v2905_v43 = vrot.slane %v2903_v23, 5  ;;  %v2869_v36 = vrot.slane %v2867_v24, 5  ;;  %v7096_v37 = vld [vmem:[#allocation3 + $0x30] sm:$0xf]  ;;  %v7098_v63 = vld [vmem:[#allocation3 + $0x34] sm:$0x1]  ;;  %v5080_v13 = vcombine.low %v6985_v51, %v7036_v33  ;;  %v5081_v51 = vcombine.low %v7046_v9, %v7055_v41 }
 0x298   : > { %v2865_v45 = vrot.slane %v2864_v29, 4  ;;  %5681 = vmatmul.mubr.bf16.vlgmr.msra.gmra.mrb[0].mxu1 %v5069_v2  ;;  %v2879_v53 = vrot.slane %v2878_v40, 4  ;;  %v2883_v32 = vrot.slane %v2881_v22, 5  ;;  %v2886_v54 = vshrl.u32 %v7096_v37, 16  ;;  %v6181_v24 = vld [vmem:[#allocation9 + $0x30] sm:$0xff]   ;;  %v6186_v33 = vld [vmem:[#allocation9 + $0x88] sm:$0xff]  }
 0x299   : > { %v2889_v34 = vshll.u32 %v7096_v37, 16  ;;  %v3233_v56 = vrot.slane %v7059_v44, 5  ;;  %5689 = vmatpush3.bf16.msra.mxu1 %v6974_v1  ;;  %v2895_v26 = vshll.u32 %v7098_v63, 16  ;;  %v2906_v59 = vor.u32 %v2905_v43, %v2902_v46  ;;  %v3195_v22 = vld [vmem:[#allocation3] sm:$0xe] }
 0x29a   : > { %v2909_v60 = vshll.u32 %v7093_v31, 16  ;;  %5690 = vmatprep.subr.bf16.mxu1 %v6175_v25  ;;  %v2870_v61 = vsel %vm6719_vm8, %v2865_v45, %v2869_v36  ;;  %v2884_v3 = vsel %vm6719_vm8, %v2879_v53, %v2883_v32  ;;  %v2888_v7 = vrot.slane %v2886_v54, 4  ;;  %v3196_v23 = vld [vmem:[#allocation3 + $0x8] sm:$0xe]  ;;  %v6192_v43 = vld [vmem:[#allocation9 + $0xb0] sm:$0xff]   ;;  %v6194_v53 = vld [vmem:[#allocation9 + $0xc0] sm:$0xff]  }
 0x29b   : > { %v2891_v17 = vrot.slane %v2889_v34, 5  ;;  %v5070_v39 = vcombine.low %v2870_v61, %v2884_v3  ;;  %v5094_v35 = vrot.slane %v3197_v62, 9  ;;  %v2907_v19 = vrot.slane %v2906_v59, 4  ;;  %v3200_v62 = vld [vmem:[#allocation3 + $0x28] sm:$0xe] }
 0x29c   : > { %v5095_v1 = vrot.slane %v3198_v55, 9  ;;  %v2897_v0 = vrot.slane %v2895_v26, 5  ;;  %v2911_v30 = vrot.slane %v2909_v60, 5  ;;  %v5082_v18 = vcombine.low %v7062_v6, %v7073_v8  ;;  %v6190_v6 = vld [vmem:[#allocation9 + $0xa0] sm:$0xff]   ;;  %v6191_v8 = vld [vmem:[#allocation9 + $0xa8] sm:$0xff]   ;;  %v6193_v45 = vld [vmem:[#allocation9 + $0xb8] sm:$0xff]  }
 0x29d   : > { %v2892_v44 = vor.u32 %v2891_v17, %v2888_v7  ;;  %5691 = vmatpush3.bf16.msra.mxu1 %v6175_v25  ;;  %5684 = vmatprep.mubr.bf16.mxu1 %v5070_v39  ;;  %v7112_v49 = vsel %vm6775_vm11, %v5094_v35, %v3229_v47  ;;  %v3221_v25 = vrot.slane %v6993_v57, 5  ;;  %v3225_v29 = vrot.slane %v7038_v20, 5  ;;  %v6188_v47 = vld [vmem:[#allocation9 + $0x90] sm:$0xff]   ;;  %v6189_v57 = vld [vmem:[#allocation9 + $0x98] sm:$0xff]   ;;  %v3201_v55 = vld [vmem:[#allocation3 + $0x30] sm:$0xe] }
 0x29e   : > { %5692 = vmatprep.subr.bf16.mxu1 %v6176_v5  ;;  %v7116_v4 = vsel %vm6775_vm11, %v5095_v1, %v3233_v56  ;;  %v2912_v27 = vsel %vm6719_vm8, %v2907_v19, %v2911_v30  ;;  %v5092_v46 = vrot.slane %v3195_v22, 9  ;;  %v5093_v2 = vrot.slane %v3196_v23, 9  ;;  %v3199_v36 = vld [vmem:[#allocation3 + $0x20] sm:$0xe]  ;;  %v6195_v26 = vld [vmem:[#allocation9 + $0xc8] sm:$0xff]   ;;  %v6202_v30 = vld [vmem:[#allocation9 + $0xf8] sm:$0xff]  }
 0x29f   : > { %v2893_v28 = vrot.slane %v2892_v44, 4  ;;  %v5101_v42 = vcombine.low %v7112_v49, %v7116_v4  ;;  %v5083_v41 = vcombine.low %v7096_v37, %v7075_v21  ;;  %v5097_v21 = vrot.slane %v3200_v62, 9  ;;  %v3202_v59 = vld [vmem:[#allocation3 + $0x38] sm:$0xe]  ;;  %v6197_v35 = vld [vmem:[#allocation3 + $0x8] ss:$8 sps:$4 sm:$0xff]  }
 0x2a0   : > { %v3222_v40 = vsel %vm6775_vm11, %v5092_v46, %v3221_v25  ;;  %v3226_v9 = vsel %vm6775_vm11, %v5093_v2, %v3225_v29  ;;  %v3241_v37 = vrot.slane %v7080_v48, 5  ;;  %v5096_v32 = vrot.slane %v3199_v36, 9  ;;  %v6199_v44 = vld [vmem:[#allocation9 + $0xe0] sm:$0xff]   ;;  %v6201_v1 = vld [vmem:[#allocation9 + $0xf0] sm:$0xff]   ;;  %v3573_v49 = vld [vmem:[#allocation3 + $0x8] sm:$0xf] }
 0x2a1   : > { %v2898_v12 = vsel %vm6719_vm8, %v2893_v28, %v2897_v0  ;;  %5693 = vmatpush3.bf16.msra.mxu1 %v6176_v5  ;;  %v5100_v20 = vcombine.low %v3222_v40, %v3226_v9  ;;  %v3237_v54 = vrot.slane %v7077_v58, 5  ;;  %v5098_v61 = vrot.slane %v3201_v55, 9  ;;  %v6196_v5 = vld [vmem:[#allocation9 + $0xd0] sm:$0xff]   ;;  %v3575_v19 = vld [vmem:[#allocation3 + $0x10] sm:$0xf] }
 0x2a2   : > { %v5071_v52 = vcombine.low %v2898_v12, %v2912_v27  ;;  %5694 = vmatprep.subr.bf16.mxu1 %v6178_v10  ;;  %v3242_v34 = vsel %vm6775_vm11, %v5097_v21, %v3241_v37  ;;  %v3245_v48 = vrot.slane %v7098_v63, 5  ;;  %v5099_v58 = vrot.slane %v3202_v59, 9  ;;  %v6198_v63 = vld [vmem:[#allocation9 + $0xd8] sm:$0xff]   ;;  %v6204_v27 = vld [vmem:[#allocation9 + $0x100] sm:$0xff]   ;;  %v6208_v25 = vld [vmem:[#allocation9 + $0x110] sm:$0xff]  }
 0x2a3   : > { %v3238_v56 = vsel %vm6775_vm11, %v5096_v32, %v3237_v54  ;;  %v3249_v3 = vrot.slane %v7093_v31, 5  ;;  %v6200_v31 = vld [vmem:[#allocation9 + $0xe8] sm:$0xff]   ;;  %v3604_v28 = vshrl.u32 %v3575_v19, 16  ;;  %v3607_v0 = vshll.u32 %v3575_v19, 16  ;;  %v3581_v36 = vld [vmem:[#allocation3 + $0x28] sm:$0xf] }
 0x2a4   : > { %5685 = vmatmul.mubr.bf16.gmra.mrb[4].mxu1 %v5071_v52  ;;  %v5102_v60 = vcombine.low %v3238_v56, %v3242_v34  ;;  %v3246_v7 = vsel %vm6775_vm11, %v5098_v61, %v3245_v48  ;;  %v3593_v4 = vshll.u32 %v3573_v49, 16  ;;  %v6207_v40 = vld [vmem:[#allocation3 + $0x38] ss:$8 sps:$4 sm:$0xff]   ;;  %v3646_v34 = vshrl.u32 %v3581_v36, 16  ;;  %v7167_v19 = vld [vmem:[#allocation3 + $0x1c] sm:$0x1] }
 0x2a5   : > { %5704 = vmatprep.mubr.bf16.mxu1 %v5080_v13  ;;  %5695 = vmatpush3.bf16.msra.mxu1 %v6178_v10  ;;  %v3250_v17 = vsel %vm6775_vm11, %v5099_v58, %v3249_v3  ;;  %v3590_v10 = vshrl.u32 %v3573_v49, 16  ;;  %v3609_v12 = vrot.slane %v3607_v0, 5  ;;  %v6211_v54 = vld [vmem:[#allocation9 + $0x128] sm:$0xff]   ;;  %v3649_v55 = vshll.u32 %v3581_v36, 16  ;;  %v3587_v61 = vld [vmem:[#allocation3 + $0x40] sm:$0xf] }
 0x2a6   : > { %5696 = vmatprep.subr.bf16.mxu1 %v6179_v15  ;;  %v5103_v39 = vcombine.low %v3246_v7, %v3250_v17  ;;  %v3595_v13 = vrot.slane %v3593_v4, 5  ;;  %v6212_v48 = vld [vmem:[#allocation9 + $0x130] sm:$0xff]   ;;  %v3648_v7 = vrot.slane %v3646_v34, 4  ;;  %v7170_v0 = vld [vmem:[#allocation3 + $0x2c] sm:$0x1]  ;;  %v6215_v36 = vld [vmem:[#allocation9 + $0x148] sm:$0xff]  }
 0x2a7   : > { %v3592_v52 = vrot.slane %v3590_v10, 4  ;;  %v3651_v17 = vrot.slane %v3649_v55, 5  ;;  %v6213_v4 = vld [vmem:[#allocation9 + $0x138] sm:$0xff]  }
 0x2a9   : > { %5697 = vmatpush3.bf16.msra.mxu1 %v6179_v15  ;;  %v7153_v15 = vld [vmem:[#allocation3 + $0x14] sm:$0x1]  ;;  %v3596_v22 = vor.u32 %v3595_v13, %v3592_v52 }
 0x2aa   : > { %5698 = vmatprep.subr.bf16.mxu1 %v6180_v16  ;;  %v3613_v23 = vshll.u32 %v7153_v15, 16  ;;  %v3884_v34 = vrot.slane %v7153_v15, 5 }
 0x2ab   : > { %v3597_v29 = vrot.slane %v3596_v22, 4 }
 0x2ac   : > { %v3615_v46 = vrot.slane %v3613_v23, 5 }
 0x2ad   : > { %5699 = vmatpush3.bf16.msra.mxu1 %v6180_v16 }
 0x2ae   : > { %5700 = vmatprep.subr.bf16.mxu1 %v6181_v24 }
 0x2b1   : > { %5701 = vmatpush3.bf16.msra.mxu1 %v6181_v24  ;;  %v7155_v24 = vld [vmem:[#allocation3 + $0xc] sm:$0x1] }
 0x2b2   : > { %5702 = vmatprep.subr.bf16.mxu1 %v6182_v11 }
 0x2b5   : > { %5703 = vmatpush3.bf16.msra.mxu1 %v6182_v11  ;;  %v6203_v11 = vld [vmem:[#allocation3 + $0x18] ss:$8 sps:$4 sm:$0xff]  }
 0x2b6   : > { %5712 = vmatprep.subr.bf16.mxu1 %v6184_v50 }
 0x2b8   : > { %5705 = vmatmul.mubr.bf16.vlgmr.msra.gmra.mrb[0].mxu1 %v5081_v51  ;;  %v6205_v51 = vld [vmem:[#allocation3 + $0x28] ss:$8 sps:$4 sm:$0xff]  }
 0x2b9   : > { %5708 = vmatprep.mubr.bf16.mxu1 %v5082_v18  ;;  %5713 = vmatpush3.bf16.msra.mxu1 %v6184_v50  ;;  %v6206_v50 = vld [vmem:[#allocation9 + $0x108] sm:$0xff]  }
 0x2ba   : > { %5714 = vmatprep.subr.bf16.mxu1 %v6186_v33 }
 0x2bd   : > { %5715 = vmatpush3.bf16.msra.mxu1 %v6186_v33  ;;  %v3599_v33 = vshll.u32 %v7155_v24, 16 }
 0x2be   : > { %5716 = vmatprep.subr.bf16.mxu1 %v6188_v47 }
 0x2bf   : > { %v3601_v2 = vrot.slane %v3599_v33, 5 }
 0x2c0   : > { %5709 = vmatmul.mubr.bf16.gmra.mrb[4].mxu1 %v5083_v41  ;;  %v6209_v41 = vld [vmem:[#allocation9 + $0x118] sm:$0xff]  }
 0x2c1   : > { %5717 = vmatpush3.bf16.msra.mxu1 %v6188_v47  ;;  %5728 = vmatprep.mubr.bf16.mxu1 %v5100_v20  ;;  %v3602_v9 = vsel %vm6719_vm8, %v3597_v29, %v3601_v2  ;;  %v3579_v20 = vld [vmem:[#allocation3 + $0x20] sm:$0xf] }
 0x2c2   : > { %5718 = vmatprep.subr.bf16.mxu1 %v6189_v57  ;;  %v3632_v62 = vshrl.u32 %v3579_v20, 16 }
 0x2c4   : > { %v3634_v56 = vrot.slane %v3632_v62, 4 }
 0x2c5   : > { %5719 = vmatpush3.bf16.msra.mxu1 %v6189_v57 }
 0x2c6   : > { %5720 = vmatprep.subr.bf16.mxu1 %v6190_v6 }
 0x2c9   : > { %5721 = vmatpush3.bf16.msra.mxu1 %v6190_v6  ;;  %v3583_v6 = vld [vmem:[#allocation3 + $0x30] sm:$0xf] }
 0x2ca   : > { %5722 = vmatprep.subr.bf16.mxu1 %v6191_v8  ;;  %v3660_v21 = vshrl.u32 %v3583_v6, 16  ;;  %v3663_v37 = vshll.u32 %v3583_v6, 16 }
 0x2cc   : > { %v3662_v59 = vrot.slane %v3660_v21, 4 }
 0x2cd   : > { %5723 = vmatpush3.bf16.msra.mxu1 %v6191_v8  ;;  %v6210_v8 = vld [vmem:[#allocation9 + $0x120] sm:$0xff]  }
 0x2ce   : > { %5724 = vmatprep.subr.bf16.mxu1 %v6192_v43 }
 0x2d1   : > { %5725 = vmatpush3.bf16.msra.mxu1 %v6192_v43  ;;  %v3577_v43 = vld [vmem:[#allocation3 + $0x18] sm:$0xf] }
 0x2d2   : > { %5726 = vmatprep.subr.bf16.mxu1 %v6193_v45  ;;  %v3621_v32 = vshll.u32 %v3577_v43, 16 }
 0x2d4   : > { %v3623_v3 = vrot.slane %v3621_v32, 5  ;;  %v3854_v32 = vld [vmem:[#allocation3 + $0x8] sm:$0xe] }
 0x2d5   : > { %5727 = vmatpush3.bf16.msra.mxu1 %v6193_v45  ;;  %v3635_v45 = vshll.u32 %v3579_v20, 16 }
 0x2d6   : > { %5736 = vmatprep.subr.bf16.mxu1 %v6194_v53 }
 0x2d8   : > { %5729 = vmatmul.mubr.bf16.vlgmr.msra.gmra.mrb[0].mxu1 %v5101_v42  ;;  %v3606_v42 = vrot.slane %v3604_v28, 4 }
 0x2d9   : > { %5732 = vmatprep.mubr.bf16.mxu1 %v5102_v60  ;;  %5737 = vmatpush3.bf16.msra.mxu1 %v6194_v53  ;;  %v3618_v53 = vshrl.u32 %v3577_v43, 16  ;;  %v3665_v60 = vrot.slane %v3663_v37, 5  ;;  %v3855_v43 = vld [vmem:[#allocation3 + $0x10] sm:$0xe] }
 0x2da   : > { %5738 = vmatprep.subr.bf16.mxu1 %v6195_v26  ;;  %v3610_v16 = vor.u32 %v3609_v12, %v3606_v42  ;;  %v3652_v42 = vor.u32 %v3651_v17, %v3648_v7  ;;  %v6217_v17 = vld [vmem:[#allocation9 + $0x158] sm:$0xff]  }
 0x2db   : > { %v3620_v58 = vrot.slane %v3618_v53, 4 }
 0x2dc   : > { %v3611_v18 = vrot.slane %v3610_v16, 4 }
 0x2dd   : > { %5739 = vmatpush3.bf16.msra.mxu1 %v6195_v26  ;;  %v3637_v26 = vrot.slane %v3635_v45, 5  ;;  %v3624_v49 = vor.u32 %v3623_v3, %v3620_v58 }
 0x2de   : > { %5740 = vmatprep.subr.bf16.mxu1 %v6196_v5  ;;  %v3616_v47 = vsel %vm6719_vm8, %v3611_v18, %v3615_v46  ;;  %v6214_v18 = vld [vmem:[#allocation9 + $0x140] sm:$0xff]   ;;  %v7175_v46 = vld [vmem:[#allocation3 + $0x44] sm:$0x1] }
 0x2df   : > { %v5124_v57 = vcombine.low %v3602_v9, %v3616_v47  ;;  %v3625_v22 = vrot.slane %v3624_v49, 4  ;;  %v6221_v49 = vld [vmem:[#allocation9 + $0x178] sm:$0xff]  }
 0x2e0   : > { %5733 = vmatmul.mubr.bf16.gmra.mrb[4].mxu1 %v5103_v39  ;;  %v3585_v39 = vld [vmem:[#allocation3 + $0x38] sm:$0xf] }
 0x2e1   : > { %5741 = vmatpush3.bf16.msra.mxu1 %v6196_v5  ;;  %5752 = vmatprep.mubr.bf16.mxu1 %v6197_v35  ;;  %v7163_v5 = vld [vmem:[#allocation3 + $0x24] sm:$0x1]  ;;  %v7165_v35 = vld [vmem:[#allocation3 + $0x34] sm:$0x1]  ;;  %v3677_v10 = vshll.u32 %v3585_v39, 16 }
 0x2e2   : > { %5742 = vmatprep.subr.bf16.mxu1 %v6198_v63  ;;  %v3641_v28 = vshll.u32 %v7163_v5, 16  ;;  %v3669_v12 = vshll.u32 %v7165_v35, 16 }
 0x2e3   : > { %v3679_v33 = vrot.slane %v3677_v10, 5  ;;  %v3892_v10 = vrot.slane %v7163_v5, 5  ;;  %v3861_v5 = vld [vmem:[#allocation3 + $0x40] sm:$0xe] }
 0x2e4   : > { %v3643_v23 = vrot.slane %v3641_v28, 5  ;;  %v3671_v29 = vrot.slane %v3669_v12, 5  ;;  %v3856_v28 = vld [vmem:[#allocation3 + $0x18] sm:$0xe]  ;;  %v3900_v12 = vrot.slane %v7165_v35, 5 }
 0x2e5   : > { %5743 = vmatpush3.bf16.msra.mxu1 %v6198_v63  ;;  %v3638_v63 = vor.u32 %v3637_v26, %v3634_v56  ;;  %v6216_v26 = vld [vmem:[#allocation9 + $0x150] sm:$0xff]  }
 0x2e6   : > { %5744 = vmatprep.subr.bf16.mxu1 %v6199_v44 }
 0x2e7   : > { %v3639_v52 = vrot.slane %v3638_v63, 4  ;;  %v6219_v63 = vld [vmem:[#allocation9 + $0x168] sm:$0xff]  }
 0x2e9   : > { %5745 = vmatpush3.bf16.msra.mxu1 %v6199_v44  ;;  %v3688_v44 = vshrl.u32 %v3587_v61, 16  ;;  %v3644_v47 = vsel %vm6719_vm8, %v3639_v52, %v3643_v23  ;;  %v3888_v52 = vrot.slane %v7167_v19, 5 }
 0x2ea   : > { %5746 = vmatprep.subr.bf16.mxu1 %v6200_v31 }
 0x2eb   : > { %v3690_v13 = vrot.slane %v3688_v44, 4  ;;  %v6220_v44 = vld [vmem:[#allocation9 + $0x170] sm:$0xff]  }
 0x2ed   : > { %5747 = vmatpush3.bf16.msra.mxu1 %v6200_v31  ;;  %v3691_v31 = vshll.u32 %v3587_v61, 16 }
 0x2ee   : > { %5748 = vmatprep.subr.bf16.mxu1 %v6201_v1 }
 0x2ef   : > { %v3693_v16 = vrot.slane %v3691_v31, 5  ;;  %v3857_v31 = vld [vmem:[#allocation3 + $0x20] sm:$0xe] }
 0x2f1   : > { %5749 = vmatpush3.bf16.msra.mxu1 %v6201_v1  ;;  %v3666_v1 = vor.u32 %v3665_v60, %v3662_v59  ;;  %v5136_v59 = vrot.slane %v3854_v32, 9  ;;  %v3880_v60 = vrot.slane %v7155_v24, 5  ;;  %v6218_v24 = vld [vmem:[#allocation9 + $0x160] sm:$0xff]  }
 0x2f2   : > { %5750 = vmatprep.subr.bf16.mxu1 %v6202_v30 }
 0x2f3   : > { %v3881_v7 = vsel %vm6775_vm11, %v5136_v59, %v3880_v60  ;;  %v7219_v60 = vld [vmem:[#allocation3 + $0x1c] sm:$0x1] }
 0x2f5   : > { %5751 = vmatpush3.bf16.msra.mxu1 %v6202_v30  ;;  %v3674_v30 = vshrl.u32 %v3585_v39, 16 }
 0x2f6   : > { %5760 = vmatprep.subr.bf16.mxu1 %v6204_v27 }
 0x2f8   : > { %5753 = vmatmul.mubr.bf16.vlgmr.msra.gmra.mrb[0].mxu1 %v6203_v11  ;;  %v3655_v11 = vshll.u32 %v7170_v0, 16 }
 0x2f9   : > { %5756 = vmatprep.mubr.bf16.mxu1 %v6205_v51  ;;  %5761 = vmatpush3.bf16.msra.mxu1 %v6204_v27  ;;  %v3627_v27 = vshll.u32 %v7167_v19, 16  ;;  %v3676_v51 = vrot.slane %v3674_v30, 4  ;;  %v5139_v30 = vrot.slane %v3857_v31, 9 }
 0x2fa   : > { %5762 = vmatprep.subr.bf16.mxu1 %v6206_v50  ;;  %v3657_v9 = vrot.slane %v3655_v11, 5  ;;  %v3896_v11 = vrot.slane %v7170_v0, 5  ;;  %v5143_v0 = vrot.slane %v3861_v5, 9  ;;  %v6239_v5 = vld [vmem:[#allocation9 + $0x1e8] sm:$0xff]  }
 0x2fb   : > { %v3629_v2 = vrot.slane %v3627_v27, 5  ;;  %v3680_v6 = vor.u32 %v3679_v33, %v3676_v51  ;;  %v5138_v27 = vrot.slane %v3856_v28, 9  ;;  %v6223_v51 = vld [vmem:[#allocation9 + $0x188] sm:$0xff]   ;;  %v6237_v28 = vld [vmem:[#allocation9 + $0x1d8] sm:$0xff]  }
 0x2fc   : > { %v3860_v33 = vld [vmem:[#allocation3 + $0x38] sm:$0xe] }
 0x2fd   : > { %5763 = vmatpush3.bf16.msra.mxu1 %v6206_v50  ;;  %v3667_v50 = vrot.slane %v3666_v1, 4  ;;  %v3630_v20 = vsel %vm6719_vm8, %v3625_v22, %v3629_v2  ;;  %v3681_v55 = vrot.slane %v3680_v6, 4  ;;  %v3859_v1 = vld [vmem:[#allocation3 + $0x30] sm:$0xe]  ;;  %v3889_v35 = vsel %vm6775_vm11, %v5138_v27, %v3888_v52 }
 0x2fe   : > { %5764 = vmatprep.subr.bf16.mxu1 %v6208_v25  ;;  %v5125_v62 = vcombine.low %v3630_v20, %v3644_v47  ;;  %v6224_v47 = vld [vmem:[#allocation9 + $0x190] sm:$0xff]   ;;  %v6226_v20 = vld [vmem:[#allocation9 + $0x198] sm:$0xff]   ;;  %v6225_v6 = vld [vmem:[#allocation3 + $0x10] ss:$8 sps:$4 sm:$0xff]  }
 0x300   : > { %5757 = vmatmul.mubr.bf16.gmra.mrb[4].mxu1 %v6207_v40  ;;  %v3694_v40 = vor.u32 %v3693_v16, %v3690_v13  ;;  %v6222_v13 = vld [vmem:[#allocation9 + $0x180] sm:$0xff]  }
 0x301   : > { %5765 = vmatpush3.bf16.msra.mxu1 %v6208_v25  ;;  %5776 = vmatprep.mubr.bf16.mxu1 %v5124_v57  ;;  %v3653_v25 = vrot.slane %v3652_v42, 4  ;;  %v7181_v57 = vld [vmem:[#allocation3 + $0x3c] sm:$0x1]  ;;  %v5141_v42 = vrot.slane %v3859_v1, 9  ;;  %v6235_v1 = vld [vmem:[#allocation3 + $0x40] ss:$8 sps:$4 sm:$0xff]  }
 0x302   : > { %5766 = vmatprep.subr.bf16.mxu1 %v6209_v41  ;;  %v3683_v37 = vshll.u32 %v7181_v57, 16  ;;  %v3695_v53 = vrot.slane %v3694_v40, 4  ;;  %v3904_v2 = vrot.slane %v7181_v57, 5  ;;  %v6228_v57 = vld [vmem:[#allocation9 + $0x1a8] sm:$0xff]  }
 0x303   : > { %v3658_v45 = vsel %vm6719_vm8, %v3653_v25, %v3657_v9  ;;  %v3901_v22 = vsel %vm6775_vm11, %v5141_v42, %v3900_v12  ;;  %v3908_v25 = vrot.slane %v7175_v46, 5  ;;  %v6238_v42 = vld [vmem:[#allocation9 + $0x1e0] sm:$0xff]   ;;  %v4237_v12 = vld [vmem:[#allocation3 + $0x20] sm:$0xf] }
 0x304   : > { %v3685_v61 = vrot.slane %v3683_v37, 5 }
 0x305   : > { %5767 = vmatpush3.bf16.msra.mxu1 %v6209_v41  ;;  %v3672_v41 = vsel %vm6719_vm8, %v3667_v50, %v3671_v29  ;;  %v3893_v50 = vsel %vm6775_vm11, %v5139_v30, %v3892_v10  ;;  %v5142_v29 = vrot.slane %v3860_v33, 9  ;;  %v3909_v40 = vsel %vm6775_vm11, %v5143_v0, %v3908_v25  ;;  %v4239_v10 = vld [vmem:[#allocation3 + $0x28] sm:$0xf]  ;;  %v4245_v25 = vld [vmem:[#allocation3 + $0x40] sm:$0xf] }
 0x306   : > { %5768 = vmatprep.subr.bf16.mxu1 %v6210_v8  ;;  %v5126_v21 = vcombine.low %v3658_v45, %v3672_v41  ;;  %v3686_v15 = vsel %vm6719_vm8, %v3681_v55, %v3685_v61  ;;  %v5145_v23 = vcombine.low %v3889_v35, %v3893_v50  ;;  %v6231_v61 = vld [vmem:[#allocation3 + $0x20] ss:$8 sps:$4 sm:$0xff]   ;;  %v4292_v27 = vshrl.u32 %v4239_v10, 16 }
 0x307   : > { %v3905_v9 = vsel %vm6775_vm11, %v5142_v29, %v3904_v2  ;;  %v4295_v52 = vshll.u32 %v4239_v10, 16  ;;  %v4278_v50 = vshrl.u32 %v4237_v12, 16 }
 0x308   : > { %v5147_v41 = vcombine.low %v3905_v9, %v3909_v40  ;;  %v6240_v40 = vld [vmem:[#allocation9 + $0x1f0] sm:$0xff]   ;;  %v7227_v9 = vld [vmem:[#allocation3 + $0x2c] sm:$0x1] }
 0x309   : > { %5769 = vmatpush3.bf16.msra.mxu1 %v6210_v8  ;;  %v3697_v8 = vshll.u32 %v7175_v46, 16  ;;  %v6227_v46 = vld [vmem:[#allocation9 + $0x1a0] sm:$0xff]   ;;  %v4297_v33 = vrot.slane %v4295_v52, 5  ;;  %v4280_v29 = vrot.slane %v4278_v50, 4 }
 0x30a   : > { %5770 = vmatprep.subr.bf16.mxu1 %v6211_v54 }
 0x30b   : > { %v3699_v56 = vrot.slane %v3697_v8, 5  ;;  %v4233_v8 = vld [vmem:[#allocation3 + $0x10] sm:$0xf] }
 0x30c   : > { %v4250_v45 = vshrl.u32 %v4233_v8, 16 }
 0x30d   : > { %5771 = vmatpush3.bf16.msra.mxu1 %v6211_v54  ;;  %v5137_v54 = vrot.slane %v3855_v43, 9  ;;  %v6229_v43 = vld [vmem:[#allocation9 + $0x1b0] sm:$0xff]  }
 0x30e   : > { %5772 = vmatprep.subr.bf16.mxu1 %v6212_v48  ;;  %v4252_v32 = vrot.slane %v4250_v45, 4 }
 0x30f   : > { %v3885_v58 = vsel %vm6775_vm11, %v5137_v54, %v3884_v34  ;;  %v6232_v34 = vld [vmem:[#allocation9 + $0x1c0] sm:$0xff]  }
 0x310   : > { %v5144_v39 = vcombine.low %v3881_v7, %v3885_v58 }
 0x311   : > { %5773 = vmatpush3.bf16.msra.mxu1 %v6212_v48  ;;  %v3700_v48 = vsel %vm6719_vm8, %v3695_v53, %v3699_v56 }
 0x312   : > { %5774 = vmatprep.subr.bf16.mxu1 %v6213_v4  ;;  %v5127_v3 = vcombine.low %v3686_v15, %v3700_v48  ;;  %v6234_v48 = vld [vmem:[#allocation9 + $0x1c8] sm:$0xff]  }
 0x315   : > { %5775 = vmatpush3.bf16.msra.mxu1 %v6213_v4  ;;  %v3858_v4 = vld [vmem:[#allocation3 + $0x28] sm:$0xe] }
 0x316   : > { %5784 = vmatprep.subr.bf16.mxu1 %v6214_v18  ;;  %v5140_v16 = vrot.slane %v3858_v4, 9  ;;  %v4241_v4 = vld [vmem:[#allocation3 + $0x30] sm:$0xf] }
 0x318   : > { %5777 = vmatmul.mubr.bf16.vlgmr.msra.gmra.mrb[0].mxu1 %v5125_v62  ;;  %v3897_v19 = vsel %vm6775_vm11, %v5140_v16, %v3896_v11  ;;  %v4235_v62 = vld [vmem:[#allocation3 + $0x18] sm:$0xf]  ;;  %v4306_v16 = vshrl.u32 %v4241_v4, 16  ;;  %v4309_v11 = vshll.u32 %v4241_v4, 16 }
 0x319   : > { %5780 = vmatprep.mubr.bf16.mxu1 %v5126_v21  ;;  %5785 = vmatpush3.bf16.msra.mxu1 %v6214_v18  ;;  %v5146_v18 = vcombine.low %v3897_v19, %v3901_v22  ;;  %v6230_v21 = vld [vmem:[#allocation9 + $0x1b8] sm:$0xff]   ;;  %v4264_v37 = vshrl.u32 %v4235_v62, 16  ;;  %v4267_v53 = vshll.u32 %v4235_v62, 16  ;;  %v4281_v22 = vshll.u32 %v4237_v12, 16  ;;  %v7231_v62 = vld [vmem:[#allocation3 + $0x24] sm:$0x1] }
 0x31a   : > { %5786 = vmatprep.subr.bf16.mxu1 %v6215_v36  ;;  %v4247_v19 = vld [vmem:[#allocation3 + $0x48] sm:$0xf]  ;;  %v4311_v0 = vrot.slane %v4309_v11, 5 }
 0x31b   : > { %v4266_v55 = vrot.slane %v4264_v37, 4  ;;  %v4269_v56 = vrot.slane %v4267_v53, 5  ;;  %v4283_v2 = vrot.slane %v4281_v22, 5  ;;  %v7234_v37 = vld [vmem:[#allocation3 + $0x3c] sm:$0x1]  ;;  %v6241_v53 = vld [vmem:[#allocation9 + $0x1f8] sm:$0xff]  }
 0x31d   : > { %5787 = vmatpush3.bf16.msra.mxu1 %v6215_v36  ;;  %v4253_v36 = vshll.u32 %v4233_v8, 16  ;;  %v4270_v15 = vor.u32 %v4269_v56, %v4266_v55  ;;  %v4334_v8 = vshrl.u32 %v4245_v25, 16  ;;  %v4287_v56 = vshll.u32 %v7231_v62, 16 }
 0x31e   : > { %5788 = vmatprep.subr.bf16.mxu1 %v6216_v26 }
 0x31f   : > { %v4255_v54 = vrot.slane %v4253_v36, 5  ;;  %v4284_v36 = vor.u32 %v4283_v2, %v4280_v29 }
 0x320   : > { %5781 = vmatmul.mubr.bf16.gmra.mrb[4].mxu1 %v5127_v3  ;;  %v6233_v3 = vld [vmem:[#allocation3 + $0x30] ss:$8 sps:$4 sm:$0xff]  }
 0x321   : > { %5789 = vmatpush3.bf16.msra.mxu1 %v6216_v26  ;;  %5800 = vmatprep.mubr.bf16.mxu1 %v5144_v39  ;;  %v7217_v26 = vld [vmem:[#allocation3 + $0x14] sm:$0x1]  ;;  %v4256_v59 = vor.u32 %v4255_v54, %v4252_v32  ;;  %v6236_v39 = vld [vmem:[#allocation9 + $0x1d0] sm:$0xff]  }
 0x322   : > { %5790 = vmatprep.subr.bf16.mxu1 %v6217_v17  ;;  %v4259_v58 = vshll.u32 %v7217_v26, 16 }
 0x323   : > { %v4257_v7 = vrot.slane %v4256_v59, 4 }
 0x325   : > { %5791 = vmatpush3.bf16.msra.mxu1 %v6217_v17  ;;  %v4273_v17 = vshll.u32 %v7219_v60, 16 }
 0x326   : > { %5792 = vmatprep.subr.bf16.mxu1 %v6218_v24 }
 0x327   : > { %v4275_v31 = vrot.slane %v4273_v17, 5  ;;  %v7239_v17 = vld [vmem:[#allocation3 + $0x4c] sm:$0x1] }
 0x329   : > { %5793 = vmatpush3.bf16.msra.mxu1 %v6218_v24  ;;  %v4261_v24 = vrot.slane %v4259_v58, 5 }
 0x32a   : > { %5794 = vmatprep.subr.bf16.mxu1 %v6219_v63 }
 0x32d   : > { %5795 = vmatpush3.bf16.msra.mxu1 %v6219_v63  ;;  %v4271_v63 = vrot.slane %v4270_v15, 4  ;;  %v4329_v15 = vshll.u32 %v7234_v37, 16 }
 0x32e   : > { %5796 = vmatprep.subr.bf16.mxu1 %v6220_v44 }
 0x32f   : > { %v4331_v4 = vrot.slane %v4329_v15, 5 }
 0x331   : > { %5797 = vmatpush3.bf16.msra.mxu1 %v6220_v44  ;;  %v4262_v44 = vsel %vm6719_vm8, %v4257_v7, %v4261_v24 }
 0x332   : > { %5798 = vmatprep.subr.bf16.mxu1 %v6221_v49 }
 0x335   : > { %5799 = vmatpush3.bf16.msra.mxu1 %v6221_v49  ;;  %v4276_v49 = vsel %vm6719_vm8, %v4271_v63, %v4275_v31 }
 0x336   : > { %5808 = vmatprep.subr.bf16.mxu1 %v6222_v13  ;;  %v5168_v30 = vcombine.low %v4262_v44, %v4276_v49  ;;  %v7241_v44 = vld [vmem:[#allocation3 + $0x44] sm:$0x1] }
 0x337   : > { %v4343_v12 = vshll.u32 %v7241_v44, 16 }
 0x338   : > { %5801 = vmatmul.mubr.bf16.vlgmr.msra.gmra.mrb[0].mxu1 %v5145_v23 }
 0x339   : > { %5804 = vmatprep.mubr.bf16.mxu1 %v5146_v18  ;;  %5809 = vmatpush3.bf16.msra.mxu1 %v6222_v13  ;;  %v4243_v13 = vld [vmem:[#allocation3 + $0x38] sm:$0xf]  ;;  %v4308_v18 = vrot.slane %v4306_v16, 4 }
 0x33a   : > { %5810 = vmatprep.subr.bf16.mxu1 %v6223_v51  ;;  %v4320_v35 = vshrl.u32 %v4243_v13, 16  ;;  %v4323_v23 = vshll.u32 %v4243_v13, 16  ;;  %v6243_v16 = vld [vmem:[#allocation9 + $0x208] sm:$0xff]  }
 0x33b   : > { %v4312_v45 = vor.u32 %v4311_v0, %v4308_v18  ;;  %v4544_v0 = vrot.slane %v7219_v60, 5  ;;  %v6246_v60 = vld [vmem:[#allocation9 + $0x220] sm:$0xff]  }
 0x33d   : > { %5811 = vmatpush3.bf16.msra.mxu1 %v6223_v51  ;;  %v4294_v51 = vrot.slane %v4292_v27, 4  ;;  %v4313_v58 = vrot.slane %v4312_v45, 4  ;;  %v4514_v27 = vld [vmem:[#allocation3 + $0x10] sm:$0xe] }
 0x33e   : > { %5812 = vmatprep.subr.bf16.mxu1 %v6224_v47 }
 0x340   : > { %5805 = vmatmul.mubr.bf16.gmra.mrb[4].mxu1 %v5147_v41  ;;  %v4322_v41 = vrot.slane %v4320_v35, 4  ;;  %v4515_v35 = vld [vmem:[#allocation3 + $0x18] sm:$0xe] }
 0x341   : > { %5813 = vmatpush3.bf16.msra.mxu1 %v6224_v47  ;;  %5824 = vmatprep.mubr.bf16.mxu1 %v6225_v6  ;;  %v4348_v47 = vshrl.u32 %v4247_v19, 16  ;;  %v4351_v6 = vshll.u32 %v4247_v19, 16  ;;  %v4540_v19 = vrot.slane %v7217_v26, 5  ;;  %v5181_v18 = vrot.slane %v4515_v35, 9 }
 0x342   : > { %5814 = vmatprep.subr.bf16.mxu1 %v6226_v20 }
 0x343   : > { %v4353_v55 = vrot.slane %v4351_v6, 5  ;;  %v4545_v26 = vsel %vm6775_vm11, %v5181_v18, %v4544_v0  ;;  %v4517_v6 = vld [vmem:[#allocation3 + $0x28] sm:$0xe] }
 0x344   : > { %v5183_v45 = vrot.slane %v4517_v6, 9 }
 0x345   : > { %5815 = vmatpush3.bf16.msra.mxu1 %v6226_v20  ;;  %v4325_v20 = vrot.slane %v4323_v23, 5  ;;  %v5180_v23 = vrot.slane %v4514_v27, 9 }
 0x346   : > { %5816 = vmatprep.subr.bf16.mxu1 %v6227_v46 }
 0x347   : > { %v4326_v54 = vor.u32 %v4325_v20, %v4322_v41  ;;  %v4541_v2 = vsel %vm6775_vm11, %v5180_v23, %v4540_v19  ;;  %v6248_v20 = vld [vmem:[#allocation9 + $0x230] sm:$0xff]  }
 0x348   : > { %v5188_v41 = vcombine.low %v4541_v2, %v4545_v26 }
 0x349   : > { %5817 = vmatpush3.bf16.msra.mxu1 %v6227_v46  ;;  %v4298_v46 = vor.u32 %v4297_v33, %v4294_v51  ;;  %v4327_v63 = vrot.slane %v4326_v54, 4  ;;  %v4345_v51 = vrot.slane %v4343_v12, 5  ;;  %v6244_v33 = vld [vmem:[#allocation9 + $0x210] sm:$0xff]  }
 0x34a   : > { %5818 = vmatprep.subr.bf16.mxu1 %v6228_v57 }
 0x34b   : > { %v4299_v59 = vrot.slane %v4298_v46, 4  ;;  %v4332_v13 = vsel %vm6719_vm8, %v4327_v63, %v4331_v4  ;;  %v4518_v46 = vld [vmem:[#allocation3 + $0x30] sm:$0xe] }
 0x34d   : > { %5819 = vmatpush3.bf16.msra.mxu1 %v6228_v57  ;;  %v7229_v57 = vld [vmem:[#allocation3 + $0x34] sm:$0x1] }
 0x34e   : > { %5820 = vmatprep.subr.bf16.mxu1 %v6229_v43  ;;  %v4315_v32 = vshll.u32 %v7229_v57, 16 }
 0x350   : > { %v4317_v24 = vrot.slane %v4315_v32, 5  ;;  %v4556_v32 = vrot.slane %v7229_v57, 5 }
 0x351   : > { %5821 = vmatpush3.bf16.msra.mxu1 %v6229_v43  ;;  %v4337_v43 = vshll.u32 %v4245_v25, 16 }
 0x352   : > { %5822 = vmatprep.subr.bf16.mxu1 %v6230_v21  ;;  %v4318_v10 = vsel %vm6719_vm8, %v4313_v58, %v4317_v24 }
 0x353   : > { %v5170_v11 = vcombine.low %v4318_v10, %v4332_v13 }
 0x355   : > { %5823 = vmatpush3.bf16.msra.mxu1 %v6230_v21  ;;  %v4301_v21 = vshll.u32 %v7227_v9, 16 }
 0x356   : > { %5832 = vmatprep.subr.bf16.mxu1 %v6232_v34 }
 0x357   : > { %v4303_v7 = vrot.slane %v4301_v21, 5  ;;  %v4519_v21 = vld [vmem:[#allocation3 + $0x38] sm:$0xe] }
 0x358   : > { %5825 = vmatmul.mubr.bf16.vlgmr.msra.gmra.mrb[0].mxu1 %v6231_v61  ;;  %v4336_v61 = vrot.slane %v4334_v8, 4  ;;  %v6249_v8 = vld [vmem:[#allocation9 + $0x238] sm:$0xff]  }
 0x359   : > { %5828 = vmatprep.mubr.bf16.mxu1 %v6233_v3  ;;  %5833 = vmatpush3.bf16.msra.mxu1 %v6232_v34  ;;  %v4350_v34 = vrot.slane %v4348_v47, 4  ;;  %v4285_v3 = vrot.slane %v4284_v36, 4  ;;  %v4304_v49 = vsel %vm6719_vm8, %v4299_v59, %v4303_v7  ;;  %v4552_v36 = vrot.slane %v7227_v9, 5  ;;  %v4520_v9 = vld [vmem:[#allocation3 + $0x40] sm:$0xe] }
 0x35a   : > { %5834 = vmatprep.subr.bf16.mxu1 %v6234_v48  ;;  %v5186_v7 = vrot.slane %v4520_v9, 9 }
 0x35b   : > { %v4354_v31 = vor.u32 %v4353_v55, %v4350_v34  ;;  %v4548_v34 = vrot.slane %v7231_v62, 5  ;;  %v5185_v55 = vrot.slane %v4519_v21, 9  ;;  %v4553_v59 = vsel %vm6775_vm11, %v5183_v45, %v4552_v36 }
 0x35d   : > { %5835 = vmatpush3.bf16.msra.mxu1 %v6234_v48  ;;  %v4339_v48 = vrot.slane %v4337_v43, 5  ;;  %v4355_v22 = vrot.slane %v4354_v31, 4  ;;  %v4516_v43 = vld [vmem:[#allocation3 + $0x20] sm:$0xe] }
 0x35e   : > { %5836 = vmatprep.subr.bf16.mxu1 %v6236_v39  ;;  %v5182_v54 = vrot.slane %v4516_v43, 9 }
 0x360   : > { %5829 = vmatmul.mubr.bf16.gmra.mrb[4].mxu1 %v6235_v1  ;;  %v4289_v1 = vrot.slane %v4287_v56, 5  ;;  %v4560_v56 = vrot.slane %v7234_v37, 5  ;;  %v4549_v57 = vsel %vm6775_vm11, %v5182_v54, %v4548_v34  ;;  %v4564_v37 = vrot.slane %v7241_v44, 5  ;;  %v5201_v44 = vld [vmem:[%s7344_s6] ss:$0 sm:$0xff] }
 0x361   : > { %5837 = vmatpush3.bf16.msra.mxu1 %v6236_v39  ;;  %5848 = vmatprep.mubr.bf16.mxu1 %v5168_v30  ;;  %v6242_v39 = vld [vmem:[#allocation9 + $0x200] sm:$0xff]   ;;  %v4357_v30 = vshll.u32 %v7239_v17, 16  ;;  %v5189_v58 = vcombine.low %v4549_v57, %v4553_v59 }
 0x362   : > { %5838 = vmatprep.subr.bf16.mxu1 %v6237_v28  ;;  %v4561_v62 = vsel %vm6775_vm11, %v5185_v55, %v4560_v56  ;;  %v4565_v24 = vsel %vm6775_vm11, %v5186_v7, %v4564_v37 }
 0x365   : > { %5839 = vmatpush3.bf16.msra.mxu1 %v6237_v28  ;;  %v4340_v28 = vor.u32 %v4339_v48, %v4336_v61  ;;  %v4521_v61 = vld [vmem:[#allocation3 + $0x48] sm:$0xe] }
 0x366   : > { %5840 = vmatprep.subr.bf16.mxu1 %v6238_v42  ;;  %v5187_v15 = vrot.slane %v4521_v61, 9 }
 0x367   : > { %v4341_v50 = vrot.slane %v4340_v28, 4 }
 0x369   : > { %5841 = vmatpush3.bf16.msra.mxu1 %v6238_v42  ;;  %v4290_v42 = vsel %vm6719_vm8, %v4285_v3, %v4289_v1  ;;  %v4346_v25 = vsel %vm6719_vm8, %v4341_v50, %v4345_v51  ;;  %v5200_v1 = vld [vmem:[%s7343_s5] ss:$0 sm:$0xff] }
 0x36a   : > { %5842 = vmatprep.subr.bf16.mxu1 %v6239_v5  ;;  %v5169_v52 = vcombine.low %v4290_v42, %v4304_v49 }
 0x36d   : > { %5843 = vmatpush3.bf16.msra.mxu1 %v6239_v5  ;;  %v4359_v5 = vrot.slane %v4357_v30, 5 }
 0x36e   : > { %5844 = vmatprep.subr.bf16.mxu1 %v6240_v40 }
 0x36f   : > { %v4360_v29 = vsel %vm6719_vm8, %v4355_v22, %v4359_v5 }
 0x370   : > { %v5171_v47 = vcombine.low %v4346_v25, %v4360_v29 }
 0x371   : > { %5845 = vmatpush3.bf16.msra.mxu1 %v6240_v40  ;;  %v6245_v40 = vld [vmem:[#allocation9 + $0x218] sm:$0xff]  }
 0x372   : > { %5846 = vmatprep.subr.bf16.mxu1 %v6241_v53 }
 0x375   : > { %5847 = vmatpush3.bf16.msra.mxu1 %v6241_v53  ;;  %v5184_v53 = vrot.slane %v4518_v46, 9 }
 0x376   : > { %5856 = vmatprep.subr.bf16.mxu1 %v6242_v39 }
 0x377   : > { %v4557_v48 = vsel %vm6775_vm11, %v5184_v53, %v4556_v32 }
 0x378   : > { %5849 = vmatmul.mubr.bf16.vlgmr.msra.gmra.mrb[0].mxu1 %v5169_v52  ;;  %v5190_v3 = vcombine.low %v4557_v48, %v4561_v62 }
 0x379   : > { %5852 = vmatprep.mubr.bf16.mxu1 %v5170_v11  ;;  %5857 = vmatpush3.bf16.msra.mxu1 %v6242_v39  ;;  %v4568_v39 = vrot.slane %v7239_v17, 5 }
 0x37a   : > { %5858 = vmatprep.subr.bf16.mxu1 %v6243_v16 }
 0x37b   : > { %v4569_v63 = vsel %vm6775_vm11, %v5187_v15, %v4568_v39 }
 0x37c   : > { %v5191_v31 = vcombine.low %v4565_v24, %v4569_v63 }
 0x37d   : > { %5859 = vmatpush3.bf16.msra.mxu1 %v6243_v16 }
 0x37e   : > { %5860 = vmatprep.subr.bf16.mxu1 %v6244_v33 }
 0x380   : > { %5853 = vmatmul.mubr.bf16.gmra.mrb[4].mxu1 %v5171_v47 }
 0x381   : > { %5861 = vmatpush3.bf16.msra.mxu1 %v6244_v33  ;;  %5872 = vmatprep.mubr.bf16.mxu1 %v5188_v41 }
 0x382   : > { %5862 = vmatprep.subr.bf16.mxu1 %v6245_v40 }
 0x385   : > { %5863 = vmatpush3.bf16.msra.mxu1 %v6245_v40 }
 0x386   : > { %5864 = vmatprep.subr.bf16.mxu1 %v6246_v60 }
 0x389   : > { %5865 = vmatpush3.bf16.msra.mxu1 %v6246_v60 }
 0x38a   : > { %5866 = vmatprep.subr.bf16.mxu1 %v6247_v38 }
 0x38d   : > { %5867 = vmatpush3.bf16.msra.mxu1 %v6247_v38 }
 0x38e   : > { %5868 = vmatprep.subr.bf16.mxu1 %v6248_v20 }
 0x391   : > { %5869 = vmatpush3.bf16.msra.mxu1 %v6248_v20 }
 0x392   : > { %5870 = vmatprep.subr.bf16.mxu1 %v6249_v8 }
 0x395   : > { %5871 = vmatpush3.bf16.msra.mxu1 %v6249_v8 }
 0x398   : > { %5873 = vmatmul.mubr.bf16.vlgmr.msra.gmra.mrb[0].mxu1 %v5189_v58 }
 0x399   : > { %5876 = vmatprep.mubr.bf16.mxu1 %v5190_v3 }
 0x3a0   : > { %5877 = vmatmul.mubr.bf16.gmra.mrb[4].mxu1 %v5191_v31 }
 0x46b   : > { %v5874_v17 = vpop.f32.mrb[0].mxu1 }
 0x46c   : > { %v4731_v49 = vmul.f32 %v5874_v17, %v5200_v1  ;;  %v4684_v28 = vpop.f32.mrb[1].mxu1 }
 0x46d   : > { %v4729_v30 = vmul.f32 %v5200_v1, %v4684_v28  ;;  %v5875_v10 = vpop.f32.mrb[2].mxu1 }
 0x46e   : > { %v4745_v4 = vadd.f32 %v5201_v44, %v4731_v49  ;;  %v4732_v42 = vmul.f32 %v5875_v10, %v5200_v1  ;;  %v4687_v14 = vpop.f32.mrb[3].mxu1 }
 0x46f   : > { %v4743_v12 = vadd.f32 %v5201_v44, %v4729_v30  ;;  %v4730_v27 = vmul.f32 %v5200_v1, %v4687_v14 }
 0x470   : > { %v4746_v52 = vadd.f32 %v5201_v44, %v4732_v42  ;;  %v4753_v16 = vmax.f32 %v4745_v4, 0.0 }
 0x471   : > { %v4744_v13 = vadd.f32 %v5201_v44, %v4730_v27  ;;  %v4751_v50 = vmax.f32 %v4743_v12, 0.0 }
 0x472   : > { %v4754_v11 = vmax.f32 %v4746_v52, 0.0 }
 0x473   : > { %v4752_v22 = vmax.f32 %v4744_v13, 0.0  ;;  %v5878_v5 = vpop.f32.mrb[4].mxu1 }
 0x474   : > { %v5217_v35 = vpack.c.bf16 %v4754_v11, %v4753_v16  ;;  %v4735_v23 = vmul.f32 %v5878_v5, %v5200_v1  ;;  %v4700_v19 = vpop.f32.mrb[5].mxu1 }
 0x475   : > { %v5212_v51 = vpack.c.bf16 %v4752_v22, %v4751_v50  ;;  %v4733_v33 = vmul.f32 %v5200_v1, %v4700_v19  ;;  %v5879_v18 = vpop.f32.mrb[6].mxu1 }
 0x476   : > { %5229 = vst [vmem:[%s325_s14 + $0x8] sm:$0xff] %v5217_v35   ;;  %v4749_v0 = vadd.f32 %v5201_v44, %v4735_v23  ;;  %v4736_v25 = vmul.f32 %v5879_v18, %v5200_v1  ;;  %v4703_v29 = vpop.f32.mrb[7].mxu1 }
 0x477   : > { %5213 = vst [vmem:[%s325_s14] sm:$0xff] %v5212_v51   ;;  %v4747_v2 = vadd.f32 %v5201_v44, %v4733_v33  ;;  %v4734_v47 = vmul.f32 %v5200_v1, %v4703_v29 }
 0x478   : > { %v4750_v26 = vadd.f32 %v5201_v44, %v4736_v25  ;;  %v4757_v41 = vmax.f32 %v4749_v0, 0.0 }
 0x479   : > { %v4748_v40 = vadd.f32 %v5201_v44, %v4734_v47  ;;  %v4755_v38 = vmax.f32 %v4747_v2, 0.0 }
 0x47a   : > { %v4758_v60 = vmax.f32 %v4750_v26, 0.0 }
 0x47b   : > { %v4756_v20 = vmax.f32 %v4748_v40, 0.0 }
 0x47c   : > { %v5227_v6 = vpack.c.bf16 %v4758_v60, %v4757_v41 }
 0x47d   : > { %v5222_v46 = vpack.c.bf16 %v4756_v20, %v4755_v38 }
 0x47e   : > { %5231 = vst [vmem:[%s325_s14 + $0x18] sm:$0xff] %v5227_v6  }
 0x47f   : > { %5230 = vst [vmem:[%s325_s14 + $0x10] sm:$0xff] %v5222_v46  }
 0x480   : > { %6349 = shalt.err (!%p6346_p2)
}
 0x481   : > { %s6350_s15 = scalar_lea.hbm %s7294_s9, 512  ;;  %s6354_s14 = scalar_lea.hbm %s7345_s7, 1024 }
 0x482   : > { %p6351_p13 = scmp.ne.s32.totalorder %s7294_s9, %s6350_s15  ;;  %p6355_p4 = scmp.lt.u32.totalorder %s7294_s9, %s7345_s7 }
 0x483   : > { %p6356_p5 = scmp.lt.u32.totalorder %s6354_s14, %s6350_s15  ;;  %p6358_p11 = scmp.lt.u32.totalorder %s6350_s15, %s7294_s9 }
 0x484   : > { %p6352_p6 = pnand %p6351_p13, %p7367_p0 }
 0x485   : > { %p6357_p8 = por %p6356_p5, %p6355_p4 }
 0x486   : > { %p6353_p10 = pneg %p6352_p6 }
 0x487   : > { %p6359_p1 = por %p6358_p11, %p6357_p8 }
 0x489   : > { %p6360_p3 = pnand %p6359_p1, %p6353_p10 }
 0x48b   : > { %6363 = shalt.err (!%p6360_p3)
}
 0x48c   : > { %s6417_s30 = smov 64   ;;  %s6418_s28 = smov 4  }
 0x48d   : > { %6018 = dma.vmem_to_hbm [thread:$0]  (%p7367_p0), %s7289_s29, 512, %s7294_s9, %s4776_s20, %s6417_s30, %s6417_s30, %s6418_s28  }
 0x48e PF: > { %s4804_s11 = sand.u32 1, %s6394_s24   ;;  %p7368_p7 = scmp.ne.s32.totalorder %s7350_s8, 0 }
 0x48f   : > { %p7369_p9 = scmp.ge.s32.totalorder %s6406_s27, 2  ;;  %s4805_s22 = scalar_lea.sflag [#allocation6], %s4804_s11 }
 0x491   : > { %p6032_p12 = pnand %p7369_p9, %p7368_p7 }
 0x493   : > { %6389 = dma.done.wait (!%p6032_p12), %s4805_s22, 512  }
 0x494   : > { %6391 = vsyncadd (!%p6032_p12), %s4805_s22, 4294966784  ;;  %p21_p2 = scmp.ge.s32.totalorder %s6569_s13, 4   ;;  %s7370_s24 = smov %s6398_s25 }
 0x495   : > { %s7371_s25 = smov %s6402_s26  ;;  %s7372_s26 = smov %s6585_s17 }
 0x496   : > { %s7373_s27 = smov %s6569_s13  ;;  %23 = sbr.rel (!%p21_p2) target bundleno = 6 (0x6), region = 107 }
 0x49d   :  { %4810 = vsyncpa [#allocation5], 1 }
 0x49e   :  { %4812 = vsyncpa [#allocation5 + $0x1], 1 }
 0x49f   :  { %4813 = vsyncpa [#allocation8], 1 }
 0x4a0   :  { %4814 = vsyncpa [#allocation6], 1 }
 0x4a1   :  { %4816 = vsyncpa [#allocation6 + $0x1], 1 }

</bundles_post_ra>
